<compile_context>
chip_gen: v6e
topology: v6e:2x2x1
jax: 0.10.0
libtpu: 0.0.40
codegen_flags: <defaults>
</compile_context>

<pallas_src>
import math
import jax
import jax.numpy as jnp
from jax import lax
from jax.experimental import pallas as pl
from jax.experimental.pallas import tpu as pltpu


def ln_linear_gelu_kernel(x_ref, w_ref, b_ref, o_ref, xn_ref):
    # x_ref: (N, C) f32   w_ref: (C, FT) bf16   b_ref: (1, FT) f32
    # o_ref: (N, FT) f32  xn_ref: (N, C) bf16 scratch (persists across F steps)

    # LayerNorm once per core (first F step owned by this core), reused after.
    @pl.when(pl.program_id(1) == 0)
    def _():
        x = x_ref[...].astype(jnp.float32)
        mean = jnp.mean(x, axis=-1, keepdims=True)
        xc = x - mean
        var = jnp.mean(xc * xc, axis=-1, keepdims=True)       # two-pass variance
        xn_ref[...] = (xc * lax.rsqrt(var + 1e-5)).astype(xn_ref.dtype)
    # (affine gamma/beta is pre-folded into w_ref/b_ref on the host)

    # Linear tile: (N, C) @ (C, FT) on the MXU, bf16 inputs, f32 accumulation.
    y = jnp.dot(xn_ref[...], w_ref[...], preferred_element_type=jnp.float32)
    y = y + b_ref[...]

    # Exact GELU: 0.5 * y * (1 + erf(y / sqrt(2)))  (matches approximate='none')
    inv_sqrt2 = jnp.float32(0.7071067811865476)
    o_ref[...] = (0.5 * y * (1.0 + lax.erf(y * inv_sqrt2))).astype(o_ref.dtype)


def _pick_ft():
    # 3 F-steps per TensorCore on dual-TC v7x (deeper per-core pipeline);
    # fewer, larger steps on single-TC v5e/v6e (per-step overhead dominates).
    try:
        kind = jax.devices()[0].device_kind.lower()
    except Exception:
        kind = ""
    return 256 if "v7" in kind else 384


def layernorm_linear_gelu(x, gamma, beta, w, b, *, ft=None):
    """x: (B, H, W, C=384), w: (C, F), returns (B, H, W, F)."""
    B, H, W, C = x.shape
    N = B * H * W
    F = w.shape[1]
    if ft is None:
        ft = _pick_ft()
    assert F % (2 * ft) == 0 and ft % 128 == 0
    steps = F // (2 * ft)  # F steps per "parallel" core slice

    # Fold LayerNorm affine into the linear layer (host-side, params are
    # constants). Weight streamed as bf16 (dominant HBM traffic), bias in f32.
    w_f = (gamma[:, None] * w).astype(jnp.bfloat16)            # (C, F)
    b_f = (b + beta @ w).reshape(1, F).astype(jnp.float32)     # (1, F)

    x2 = x.reshape(N, C)

    cost = pl.CostEstimate(
        flops=2 * N * C * F,
        transcendentals=N * F,
        bytes_accessed=N * C * 4 + C * F * 2 + F * 4 + N * F * 4,
    )

    out = pl.pallas_call(
        ln_linear_gelu_kernel,
        out_shape=jax.ShapeDtypeStruct((N, F), x.dtype),
        grid=(2, steps),
        in_specs=[
            # Input rows stay VMEM-resident (block index never changes).
            pl.BlockSpec((N, C), lambda i, j: (0, 0)),
            # Weight / bias tiles stream along F -> double-buffered by Pallas.
            pl.BlockSpec((C, ft), lambda i, j: (0, i * steps + j)),
            pl.BlockSpec((1, ft), lambda i, j: (0, i * steps + j)),
        ],
        out_specs=pl.BlockSpec((N, ft), lambda i, j: (0, i * steps + j)),
        scratch_shapes=[pltpu.VMEM((N, C), jnp.bfloat16)],  # hoisted xn
        compiler_params=pltpu.CompilerParams(
            # Axis 0 splits the F range across the two TensorCores on v7x
            # (each core reads only half the weight); axis 1 is the per-core
            # sequential F pipeline. Harmless on single-TC v5e/v6e.
            dimension_semantics=("parallel", "arbitrary"),
        ),
        cost_estimate=cost,
    )(x2, w_f, b_f)
    return out.reshape(B, H, W, F)


if __name__ == "__main__":
    key = jax.random.PRNGKey(0)
    k_x, k_w, k_b, k_g, k_be = jax.random.split(key, 5)

    B, H, W, C, F = 1, 14, 14, 384, 1536

    x = jax.random.normal(k_x, (B, H, W, C), dtype=jnp.float32)

    # Shapes match nn.LayerNorm(384) and nn.Linear(384, 1536); PyTorch Linear
    # weight is (out, in) -> stored transposed here as (in, out).
    bound = 1.0 / math.sqrt(C)
    w = jax.random.uniform(k_w, (C, F), minval=-bound, maxval=bound,
                           dtype=jnp.float32)
    b = jax.random.uniform(k_b, (F,), minval=-bound, maxval=bound,
                           dtype=jnp.float32)
    # Non-trivial affine params so the weight-fold path is actually exercised.
    gamma = 1.0 + 0.1 * jax.random.normal(k_g, (C,), dtype=jnp.float32)
    beta = 0.1 * jax.random.normal(k_be, (C,), dtype=jnp.float32)

    out = layernorm_linear_gelu(x, gamma, beta, w, b)
    jax.block_until_ready(out)

    # Plain-JAX f32 reference (unfused LayerNorm -> Linear -> exact GELU).
    xr = x.reshape(-1, C)
    mean = jnp.mean(xr, axis=-1, keepdims=True)
    var = jnp.mean((xr - mean) ** 2, axis=-1, keepdims=True)
    xn = (xr - mean) / jnp.sqrt(var + 1e-5) * gamma + beta
    y = xn @ w + b
    ref = (0.5 * y * (1.0 + lax.erf(y / jnp.sqrt(2.0)))).reshape(B, H, W, F)

    # bf16 weight/activation streaming (f32 accumulation) => slightly looser
    # tolerance than a pure-f32 comparison.
    err = float(jnp.max(jnp.abs(out - ref)))
    assert jnp.allclose(out, ref, atol=3e-2, rtol=3e-2), err

    print("KERNEL_OK")
</pallas_src>

<mosaic_0001>
module attributes {stable_mosaic.version = 11 : i64} {
  func.func @ln_linear_gelu_kernel(%arg0: i32, %arg1: i32, %arg2: memref<196x384xf32, #tpu.memory_space<vmem>>, %arg3: memref<384x384xbf16, #tpu.memory_space<vmem>>, %arg4: memref<1x384xf32, #tpu.memory_space<vmem>>, %arg5: memref<196x384xf32, #tpu.memory_space<vmem>>, %arg6: memref<196x384xbf16, #tpu.memory_space<vmem>>) attributes {dimension_semantics = [#tpu.dimension_semantics<parallel>, #tpu.dimension_semantics<arbitrary>], iteration_bounds = array<i64: 2, 2>, scalar_prefetch = 0 : i64, scratch_operands = 1 : i64, tpu.core_type = #tpu.core_type<tc>, window_params = [{pipeline_mode = #tpu.pipeline_mode<synchronous>, transform_indices = @transform_0, window_bounds = array<i64: 196, 384>}, {transform_indices = @transform_1, window_bounds = array<i64: 384, 384>}, {transform_indices = @transform_2, window_bounds = array<i64: 1, 384>}, {transform_indices = @transform_3, window_bounds = array<i64: 196, 384>}]} {
    %c0_i32 = arith.constant 0 : i32
    %0 = arith.cmpi eq, %arg1, %c0_i32 : i32
    %1 = arith.extui %0 : i1 to i32
    %c0_i32_0 = arith.constant 0 : i32
    %2 = arith.cmpi ne, %1, %c0_i32_0 : i32
    scf.if %2 {
      %c0_11 = arith.constant 0 : index
      %c0_12 = arith.constant 0 : index
      %18 = vector.load %arg2[%c0_11, %c0_12] : memref<196x384xf32, #tpu.memory_space<vmem>>, vector<196x384xf32>
      %cst_13 = arith.constant dense<0.000000e+00> : vector<196xf32>
      %19 = vector.multi_reduction <add>, %18, %cst_13 [1] : vector<196x384xf32> to vector<196xf32>
      %20 = vector.shape_cast %19 : vector<196xf32> to vector<196x1xf32>
      %cst_14 = arith.constant 3.840000e+02 : f32
      %21 = vector.broadcast %cst_14 : f32 to vector<196x1xf32>
      %22 = arith.divf %20, %21 : vector<196x1xf32>
      %23 = vector.broadcast %22 : vector<196x1xf32> to vector<196x384xf32>
      %24 = arith.subf %18, %23 : vector<196x384xf32>
      %25 = arith.mulf %24, %24 : vector<196x384xf32>
      %cst_15 = arith.constant dense<0.000000e+00> : vector<196xf32>
      %26 = vector.multi_reduction <add>, %25, %cst_15 [1] : vector<196x384xf32> to vector<196xf32>
      %27 = vector.shape_cast %26 : vector<196xf32> to vector<196x1xf32>
      %cst_16 = arith.constant 3.840000e+02 : f32
      %28 = vector.broadcast %cst_16 : f32 to vector<196x1xf32>
      %29 = arith.divf %27, %28 : vector<196x1xf32>
      %cst_17 = arith.constant 9.99999974E-6 : f32
      %30 = vector.broadcast %cst_17 : f32 to vector<196x1xf32>
      %31 = arith.addf %29, %30 : vector<196x1xf32>
      %32 = math.rsqrt %31 : vector<196x1xf32>
      %33 = vector.broadcast %32 : vector<196x1xf32> to vector<196x384xf32>
      %34 = arith.mulf %24, %33 : vector<196x384xf32>
      %35 = arith.truncf %34 : vector<196x384xf32> to vector<196x384xbf16>
      %c0_18 = arith.constant 0 : index
      %c0_19 = arith.constant 0 : index
      %36 = vector.load %arg6[%c0_18, %c0_19] : memref<196x384xbf16, #tpu.memory_space<vmem>>, vector<196x384xbf16>
      tpu.vector_store %arg6[%c0_18, %c0_19], %35 {strides = array<i32>} : memref<196x384xbf16, #tpu.memory_space<vmem>>, vector<196x384xbf16>,
    } else {
    }
    %c0 = arith.constant 0 : index
    %c0_1 = arith.constant 0 : index
    %3 = vector.load %arg6[%c0, %c0_1] : memref<196x384xbf16, #tpu.memory_space<vmem>>, vector<196x384xbf16>
    %c0_2 = arith.constant 0 : index
    %c0_3 = arith.constant 0 : index
    %4 = vector.load %arg3[%c0_2, %c0_3] : memref<384x384xbf16, #tpu.memory_space<vmem>>, vector<384x384xbf16>
    %cst = arith.constant dense<0.000000e+00> : vector<196x384xf32>
    %5 = tpu.matmul %3, %4, %cst {dimension_numbers = #tpu.dot_dimension_numbers<[1], [0], [0], [1], [0, 0, 1, 1], [], []>} : vector<196x384xbf16>, vector<384x384xbf16>, vector<196x384xf32> -> vector<196x384xf32>
    %c0_4 = arith.constant 0 : index
    %c0_5 = arith.constant 0 : index
    %6 = vector.load %arg4[%c0_4, %c0_5] : memref<1x384xf32, #tpu.memory_space<vmem>>, vector<1x384xf32>
    %7 = vector.broadcast %6 : vector<1x384xf32> to vector<196x384xf32>
    %8 = arith.addf %5, %7 : vector<196x384xf32>
    %cst_6 = arith.constant 5.000000e-01 : f32
    %9 = vector.broadcast %cst_6 : f32 to vector<196x384xf32>
    %10 = arith.mulf %9, %8 : vector<196x384xf32>
    %cst_7 = arith.constant 0.707106769 : f32
    %11 = vector.broadcast %cst_7 : f32 to vector<196x384xf32>
    %12 = arith.mulf %8, %11 : vector<196x384xf32>
    %13 = math.erf %12 : vector<196x384xf32>
    %cst_8 = arith.constant 1.000000e+00 : f32
    %14 = vector.broadcast %cst_8 : f32 to vector<196x384xf32>
    %15 = arith.addf %14, %13 : vector<196x384xf32>
    %16 = arith.mulf %10, %15 : vector<196x384xf32>
    %c0_9 = arith.constant 0 : index
    %c0_10 = arith.constant 0 : index
    %17 = vector.load %arg5[%c0_9, %c0_10] : memref<196x384xf32, #tpu.memory_space<vmem>>, vector<196x384xf32>
    tpu.vector_store %arg5[%c0_9, %c0_10], %16 {strides = array<i32>} : memref<196x384xf32, #tpu.memory_space<vmem>>, vector<196x384xf32>,
    return
  }
  func.func @transform_0(%arg0: i32, %arg1: i32) -> (i32, i32) {
    %c0_i32 = arith.constant 0 : i32
    %c0_i32_0 = arith.constant 0 : i32
    %c0_i32_1 = arith.constant 0 : i32
    return %c0_i32, %c0_i32_0 : i32, i32
  }
  func.func @transform_1(%arg0: i32, %arg1: i32) -> (i32, i32) {
    %c2_i32 = arith.constant 2 : i32
    %0 = arith.muli %arg0, %c2_i32 : i32
    %1 = arith.addi %0, %arg1 : i32
    %c0_i32 = arith.constant 0 : i32
    %c0_i32_0 = arith.constant 0 : i32
    return %c0_i32, %1 : i32, i32
  }
  func.func @transform_2(%arg0: i32, %arg1: i32) -> (i32, i32) {
    %c2_i32 = arith.constant 2 : i32
    %0 = arith.muli %arg0, %c2_i32 : i32
    %1 = arith.addi %0, %arg1 : i32
    %c0_i32 = arith.constant 0 : i32
    %c0_i32_0 = arith.constant 0 : i32
    return %c0_i32, %1 : i32, i32
  }
  func.func @transform_3(%arg0: i32, %arg1: i32) -> (i32, i32) {
    %c2_i32 = arith.constant 2 : i32
    %0 = arith.muli %arg0, %c2_i32 : i32
    %1 = arith.addi %0, %arg1 : i32
    %c0_i32 = arith.constant 0 : i32
    %c0_i32_0 = arith.constant 0 : i32
    return %c0_i32, %1 : i32, i32
  }
}

</mosaic_0001>

<bundles_post_ra>
// kernel: tpu_custom_call.1
= control target key start
LH: loop header
LB: loop body
LE: loop exit
PB: predicated region body
PF: predicated region fallthrough
CT: control target
= control target key end

     0   :  { %s6109_s0 = inlined_call_operand.hbm [shape: f32[196,384], index: 0, kind: input, shape index: {}]   ;;  %s6110_s1 = inlined_call_operand.hbm [shape: bf16[384,1536], index: 1, kind: input, shape index: {}]   ;;  %s6111_s2 = inlined_call_operand.hbm [shape: f32[1,1536], index: 2, kind: input, shape index: {}]   ;;  %s6112_s3 = inlined_call_operand.hbm [shape: f32[196,1536], index: 3, kind: output, shape index: {}]  }
   0x1   :  { %6176 = sst [smem:[#allocation59_spill]] %s6110_s1 }
   0x2   :  { %8 = vsyncpa [#allocation4], 0 }
   0x3   :  { %9 = vsyncpa [#allocation7], 0 }
   0x4   :  { %11 = vsyncpa [#allocation7 + $0x1], 0 }
   0x5   :  { %12 = vsyncpa [#allocation5], 0 }
   0x6   :  { %14 = vsyncpa [#allocation5 + $0x1], 0  ;;  %s4235_s12 = smov 0   ;;  %s4237_s13 = smov 0  }
   0x7   :  { %s4239_s14 = smov 0   ;;  %s4241_s15 = smov 0  }
   0x8   :  { %s4243_s16 = smov 0   ;;  %s4245_s17 = smov 0  }
   0x9   :  { %s4247_s18 = smov 0   ;;  %s4249_s19 = smov 0  }
   0xa LB: > { %s29_s20 = sadd.s32 1, %s4190_s17  ;;  %s32_s21 = sadd.s32 1, %s4194_s18  ;;  %s4198_s19 = sphi %s4249_s19, %s20_s19   ;;  %s4194_s18 = sphi %s4247_s18, %s6316_s18   ;;  %s4190_s17 = sphi %s4245_s17, %s6315_s17   ;;  %s4186_s16 = sphi %s4243_s16, %s6314_s16   ;;  %s4182_s15 = sphi %s4241_s15, %s6313_s15   ;;  %s4178_s14 = sphi %s4239_s14, %s6312_s14   ;;  %s4174_s13 = sphi %s4237_s13, %s6311_s13   ;;  %s4170_s12 = sphi %s4235_s12, %s6310_s12  }
   0xb   : > { %p30_p0 = scmp.ge.s32.totalorder %s29_s20, 2  ;;  %s3126_s22 = sshll.u32 %s4194_s18, 1 }
   0xc   : > { %s4279_s23 = sadd.s32 %s4190_s17, %s3126_s22  ;;  %s64_s24 = sadd.s32 1, %s4178_s14 }
   0xd   : > { %s6318_s20 = smov (%p30_p0, %s29_s20), 0  ;;  %s6320_s21 = smov (!%p30_p0, %s32_s21), %s4194_s18 }
   0xe   : > { %6177 = sst [smem:[#allocation13_spill]] %s6318_s20  ;;  %p71_p1 = scmp.ne.s32.totalorder %s4178_s14, %s4174_s13 }
   0xf   : > { %p72_p2 = scmp.eq.s32.totalorder %s4198_s19, 0  ;;  %p34_p3 = scmp.ge.s32.totalorder %s6320_s21, 2 }
  0x10   : > { %p3590_p5 = scmp.lt.s32.totalorder %s4198_s19, 4  ;;  %s174_s26 = sand.u32 1, %s4198_s19  }
  0x11   : > { %p4291_p4 = por %p72_p2, %p71_p1  ;;  %s6322_s21 = smov (%p34_p3, %s6320_s21), 0 }
  0x12   : > { %6179 = sst [smem:[#allocation14_spill]] %s6322_s21  ;;  %s176_s27 = sand.u32 1, %s4178_s14  }
  0x13   : > { %s3127_s28 = sshll.u32 %s6322_s21, 1  ;;  %s3559_s30 = smul.u32 576, %s176_s27 }
  0x14   : > { %s60_s29 = sadd.s32 %s3127_s28, %s6318_s20  ;;  %s3307_s5 = smul.u32 192, %s4279_s23 }
  0x15   : > { %s61_s4 = ssub.s32 %s4279_s23, %s60_s29  ;;  %s6180_s1 = sld [smem:[#allocation59_spill]] }
  0x16   : > { %p62_p6 = scmp.eq.s32.totalorder %s61_s4, 0  ;;  %s178_s9 = scalar_lea.vmem [#allocation6], %s3559_s30 }
  0x17   : > { %s187_s10 = sshll.u32 %s178_s9, 4  ;;  %p4316_p7 = pnand %p3590_p5, %p4291_p4  ;;  %s188_s10 = int_to_ptr.vmem [resolvable:$true] %s187_s10 }
  0x18   : > { %s4310_s11 = scalar_select %p62_p6, %s4178_s14, %s64_s24  }
  0x19   : > { %s4320_s28 = scalar_lea.sflag [#allocation7], %s174_s26  ;;  %p6116_p8 = pneg %p4316_p7 }
  0x1a   : > { %s4029_s29 = scalar_lea.vmem %s188_s10, 9216  ;;  %s4200_s24 = smov [#allocation6]  }
  0x1b   : > { %s186_s8 = scalar_lea.hbm %s6180_s1, %s3307_s5  ;;  %p4030_p9 = scmp.ne.s32.totalorder %s188_s10, %s4029_s29 }
  0x1c   : > { %s4034_s30 = sshll.u32 %s4200_s24, 4  ;;  %s4035_s30 = int_to_ptr.vmem [resolvable:$false] %s4034_s30 }
  0x1d   : > { %p4032_p10 = pnand %p4030_p9, %p6116_p8  ;;  %s4036_s25 = scalar_lea.vmem %s4035_s30, 18432 }
  0x1e   : > { %p4037_p12 = scmp.lt.s32.totalorder %s188_s10, %s4035_s30  ;;  %p4038_p13 = scmp.lt.s32.totalorder %s4036_s25, %s4029_s29 }
  0x1f   : > { %p4033_p11 = pneg %p4032_p10 }
  0x20   : > { %p4039_p0 = por %p4038_p13, %p4037_p12 }
  0x22   : > { %p4040_p2 = pnand %p4039_p0, %p4033_p11 }
  0x24   : > { %4043 = shalt.err (!%p4040_p2)
}
  0x25   : > { %s4201_s4 = smov 768   ;;  %s4202_s26 = smov 192  }
  0x26   : > { %s4203_s5 = smov 12   ;;  %s4331_s6 = sadd.s32 4294967295, %s4198_s19  }
  0x27   : > { %3581 = dma.hbm_to_vmem [thread:$0]  (!%p4316_p7), %s186_s8, 9216, %s188_s10, %s4320_s28, %s4201_s4, %s4202_s26, %s4203_s5  }
  0x28   : > { %s3125_s7 = sadd.s32 4294967294, %s4198_s19   ;;  %p77_p3 = scmp.ne.s32.totalorder %s4174_s13, %s4170_s12 }
  0x29   : > { %p6115_p4 = scmp.eq.s32.totalorder %s4331_s6, 0  ;;  %p135_p5 = scmp.eq.s32.totalorder %s4331_s6, 3 }
  0x2a   : > { %p141_p6 = scmp.eq.s32.totalorder %s3125_s7, 3  ;;  %p3132_p10 = scmp.ge.s32.totalorder %s4198_s19, 1 }
  0x2b   : > { %p4340_p9 = por %p6115_p4, %p77_p3  ;;  %p4348_p11 = por %p135_p5, %p71_p1 }
  0x2c   : > { %p4352_p12 = por %p141_p6, %p77_p3  ;;  %p148_p13 = scmp.lt.s32.totalorder %s4198_s19, 5 }
  0x2d   : > { %s6183_s8 = scalar_select %p4348_p11, 1, 0 }
  0x2e   : > { %s6184_s10 = scalar_select %p4352_p12, 1, 0 }
  0x2f   : > { %p4357_p0 = pnand %p3132_p10, %p148_p13  ;;  %s4204_s24 = smov [#allocation3]  }
  0x30   : > { %s160_s30 = sshll.u32 %s4204_s24, 4  ;;  %s3560_s25 = smul.u32 3, %s176_s27  ;;  %s161_s30 = int_to_ptr.vmem [resolvable:$true] %s160_s30 }
  0x31   : > { %p3574_p2 = pneg %p4357_p0  ;;  %s3308_s4 = smul.u32 48, %s4279_s23 }
  0x32   : > { %s201_s21 = scalar_lea.vmem [#allocation8], %s3560_s25  ;;  %s4055_s24 = scalar_lea.vmem %s161_s30, 9600 }
  0x33   : > { %p4368_p1 = pnand %p3574_p2, %p6115_p4  ;;  %s4375_s1 = scalar_lea.hbm %s6111_s2, %s3308_s4 }
  0x34   : > { %s211_s20 = sshll.u32 %s201_s21, 4  ;;  %p4056_p5 = scmp.ne.s32.totalorder %s161_s30, %s4055_s24  ;;  %s212_s20 = int_to_ptr.vmem [resolvable:$true] %s211_s20 }
  0x35   : > { %p4046_p3 = pneg %p4368_p1  ;;  %p4063_p13 = scmp.lt.s32.totalorder %s161_s30, %s161_s30 }
  0x36   : > { %p4064_p2 = scmp.lt.s32.totalorder %s4055_s24, %s4055_s24 }
  0x37   : > { %p4058_p6 = pnand %p4056_p5, %p4046_p3 }
  0x38   : > { %p4065_p4 = por %p4064_p2, %p4063_p13 }
  0x39   : > { %p4059_p10 = pneg %p4058_p6 }
  0x3b   : > { %p4066_p8 = pnand %p4065_p4, %p4059_p10 }
  0x3d   : > { %4069 = shalt.err (!%p4066_p8)
}
  0x3e   : > { %s4205_s23 = smov 384   ;;  %s4206_s27 = smov 24  }
  0x3f   : > { %3577 = dma.hbm_to_vmem [thread:$0]  (!%p4368_p1), %s6109_s0, 9600, %s161_s30, [#allocation4], %s4205_s23, %s4205_s23, %s4206_s27  }
  0x40   : > { %s4083_s21 = scalar_lea.vmem %s212_s20, 48  ;;  %p6187_p11 = pneg %p4316_p7 }
  0x41   : > { %p4084_p12 = scmp.ne.s32.totalorder %s212_s20, %s4083_s21  ;;  %s4207_s5 = smov [#allocation8]  }
  0x42   : > { %s4088_s7 = sshll.u32 %s4207_s5, 4  ;;  %s4089_s7 = int_to_ptr.vmem [resolvable:$false] %s4088_s7 }
  0x43   : > { %p4086_p3 = pnand %p4084_p12, %p6187_p11  ;;  %s4090_s24 = scalar_lea.vmem %s4089_s7, 96 }
  0x44   : > { %p4091_p8 = scmp.lt.s32.totalorder %s212_s20, %s4089_s7  ;;  %p4092_p4 = scmp.lt.s32.totalorder %s4090_s24, %s4083_s21 }
  0x45   : > { %p4087_p5 = pneg %p4086_p3 }
  0x46   : > { %p4093_p6 = por %p4092_p4, %p4091_p8 }
  0x48   : > { %p4094_p10 = pnand %p4093_p6, %p4087_p5 }
  0x4a   : > { %4097 = shalt.err (!%p4094_p10)
}
  0x4b   : > { %3584 = dma.hbm_to_vmem [thread:$0]  (!%p4316_p7), %s4375_s1, 48, %s212_s20, %s4320_s28  }
  0x4c   : > { %220 = sbr.rel (%p4357_p0) target bundleno = 950 (0x3b6), region = 32  ;;  %p6188_p11 = scmp.eq.s32.totalorder (!%p4357_p0), %s4331_s6, 0 }
  0x51   : > { %4157 = dma.done.wait (%p6188_p11), [#allocation4], 9600   ;;  %p6189_p12 = pmov %p6188_p11 }
  0x52   : > { %s226_s30 = sand.u32 1, %s4331_s6   ;;  %s4399_s26 = sand.u32 1, %s4174_s13  }
  0x53   : > { %4159 = vsyncadd (%p6189_p12), [#allocation4], 4294957696  ;;  %s3561_s22 = smul.u32 576, %s4399_s26  ;;  %s227_s23 = scalar_lea.sflag [#allocation7], %s226_s30 }
  0x55   : > { %s4402_s27 = scalar_lea.vmem [#allocation6], %s3561_s22 }
  0x56   : > { %4161 = dma.done.wait (%p4340_p9), %s227_s23, 9264  }
  0x57   : > { %4163 = vsyncadd (%p4340_p9), %s227_s23, 4294958032  ;;  %s3562_s1 = smul.u32 3, %s4399_s26  ;;  %p3141_p7 = scmp.ne.s32.totalorder %s4182_s15, 0 }
  0x58   : > { %s3563_s20 = smul.u32 600, %s4399_s26 }
  0x59   : > { %s4410_s28 = scalar_lea.vmem [#allocation8], %s3562_s1  ;;  %280 = sbr.rel (%p3141_p7) target bundleno = 467 (0x1d3), region = 48 }
  0x5a   : > { %s4412_s29 = scalar_lea.vmem [#allocation9], %s3563_s20 }
  0x5e   : > { %v4415_v0 = vld [vmem:[#allocation3 + $0x18] sm:$0xff]  ;;  %v4417_v1 = vld [vmem:[#allocation3 + $0x20] sm:$0xff]  ;;  %v4419_v2 = vld [vmem:[#allocation3 + $0x28] sm:$0xff]  ;;  %vm452_vm0 = vcmask 1043456  }
  0x5f   : > { %v360_v3 = vadd.f32 %v4417_v1, %v4415_v0  ;;  %v4423_v4 = vld [vmem:[#allocation3] sm:$0xff]  ;;  %v4425_v5 = vld [vmem:[#allocation3 + $0x8] sm:$0xff]  ;;  %v4427_v6 = vld [vmem:[#allocation3 + $0x10] sm:$0xff] }
  0x60   : > { %v356_v7 = vadd.f32 %v4425_v5, %v4423_v4  ;;  %v4431_v8 = vld [vmem:[#allocation3 + $0x30] sm:$0xff]  ;;  %v4433_v9 = vld [vmem:[#allocation3 + $0x38] sm:$0xff]  ;;  %v4435_v10 = vld [vmem:[#allocation3 + $0x40] sm:$0xff] }
  0x61   : > { %v361_v11 = vadd.f32 %v360_v3, %v4419_v2  ;;  %v364_v12 = vadd.f32 %v4433_v9, %v4431_v8  ;;  %v4440_v13 = vld [vmem:[#allocation3 + $0x240] sm:$0xf]  ;;  %v4442_v14 = vld [vmem:[#allocation3 + $0x248] sm:$0xf]  ;;  %v4444_v15 = vld [vmem:[#allocation3 + $0x250] sm:$0xf] }
  0x62   : > { %v357_v16 = vadd.f32 %v356_v7, %v4427_v6  ;;  %v453_v17 = vsel %vm452_vm0, %v4440_v13, 0.0  ;;  %v454_v18 = vsel %vm452_vm0, %v4442_v14, 0.0  ;;  %v456_v19 = vsel %vm452_vm0, %v4444_v15, 0.0  ;;  %v4453_v20 = vld [vmem:[#allocation3 + $0x60] sm:$0xff]  ;;  %v4455_v21 = vld [vmem:[#allocation3 + $0x68] sm:$0xff]  ;;  %v4462_v26 = vld [vmem:[#allocation3 + $0x50] sm:$0xff] }
  0x63   : > { %362 = vadd.xlane.f32.xlu1 %v361_v11  ;;  %v365_v22 = vadd.f32 %v364_v12, %v4435_v10  ;;  %v455_v23 = vadd.f32 %v454_v18, %v453_v17  ;;  %v372_v24 = vadd.f32 %v4455_v21, %v4453_v20  ;;  %v4460_v25 = vld [vmem:[#allocation3 + $0x48] sm:$0xff]  ;;  %v4464_v27 = vld [vmem:[#allocation3 + $0x70] sm:$0xff]  ;;  %v4470_v30 = vld [vmem:[#allocation3 + $0x98] sm:$0xff] }
  0x64   : > { %358 = vadd.xlane.f32.xlu0 %v357_v16  ;;  %v368_v28 = vadd.f32 %v4462_v26, %v4460_v25  ;;  %v4468_v29 = vld [vmem:[#allocation3 + $0x90] sm:$0xff]  ;;  %v4472_v32 = vld [vmem:[#allocation3 + $0x58] sm:$0xff]  ;;  %v4476_v34 = vld [vmem:[#allocation3 + $0x80] sm:$0xff] }
  0x65   : > { %v457_v31 = vadd.f32 %v456_v19, %v455_v23  ;;  %v4474_v33 = vld [vmem:[#allocation3 + $0x78] sm:$0xff]  ;;  %v373_v35 = vadd.f32 %v372_v24, %v4464_v27  ;;  %v380_v36 = vadd.f32 %v4470_v30, %v4468_v29  ;;  %v4482_v38 = vld [vmem:[#allocation3 + $0xa0] sm:$0xff]  ;;  %v4488_v41 = vld [vmem:[#allocation3 + $0xc8] sm:$0xff] }
  0x66   : > { %v369_v37 = vadd.f32 %v368_v28, %v4472_v32  ;;  %v376_v39 = vadd.f32 %v4476_v34, %v4474_v33  ;;  %v4486_v40 = vld [vmem:[#allocation3 + $0xc0] sm:$0xff]  ;;  %v4490_v42 = vld [vmem:[#allocation3 + $0x88] sm:$0xff]  ;;  %v4494_v44 = vld [vmem:[#allocation3 + $0xb0] sm:$0xff] }
  0x67   : > { %366 = vadd.xlane.f32.xlu1 %v365_v22  ;;  %v4492_v43 = vld [vmem:[#allocation3 + $0xa8] sm:$0xff]  ;;  %v381_v45 = vadd.f32 %v380_v36, %v4482_v38  ;;  %v388_v46 = vadd.f32 %v4488_v41, %v4486_v40  ;;  %v4500_v48 = vld [vmem:[#allocation3 + $0xd0] sm:$0xff]  ;;  %v4506_v51 = vld [vmem:[#allocation3 + $0xf8] sm:$0xff] }
  0x68   : > { %458 = vadd.xlane.f32.xlu0 %v457_v31  ;;  %v377_v47 = vadd.f32 %v376_v39, %v4490_v42  ;;  %v384_v49 = vadd.f32 %v4494_v44, %v4492_v43  ;;  %v4504_v50 = vld [vmem:[#allocation3 + $0xf0] sm:$0xff]  ;;  %v4508_v52 = vld [vmem:[#allocation3 + $0xb8] sm:$0xff]  ;;  %v4512_v54 = vld [vmem:[#allocation3 + $0xe0] sm:$0xff] }
  0x69   : > { %v4510_v53 = vld [vmem:[#allocation3 + $0xd8] sm:$0xff]  ;;  %v389_v55 = vadd.f32 %v388_v46, %v4500_v48  ;;  %v396_v56 = vadd.f32 %v4506_v51, %v4504_v50  ;;  %v4518_v58 = vld [vmem:[#allocation3 + $0x100] sm:$0xff]  ;;  %v4524_v61 = vld [vmem:[#allocation3 + $0x128] sm:$0xff] }
  0x6a   : > { %v385_v57 = vadd.f32 %v384_v49, %v4508_v52  ;;  %v392_v59 = vadd.f32 %v4512_v54, %v4510_v53  ;;  %v4522_v60 = vld [vmem:[#allocation3 + $0x120] sm:$0xff]  ;;  %v4526_v62 = vld [vmem:[#allocation3 + $0xe8] sm:$0xff]  ;;  %v4530_v3 = vld [vmem:[#allocation3 + $0x110] sm:$0xff] }
  0x6b   : > { %374 = vadd.xlane.f32.xlu1 %v373_v35  ;;  %v4528_v63 = vld [vmem:[#allocation3 + $0x108] sm:$0xff]  ;;  %v397_v7 = vadd.f32 %v396_v56, %v4518_v58  ;;  %v404_v11 = vadd.f32 %v4524_v61, %v4522_v60  ;;  %v4536_v16 = vld [vmem:[#allocation3 + $0x130] sm:$0xff]  ;;  %v4542_v19 = vld [vmem:[#allocation3 + $0x158] sm:$0xff] }
  0x6c   : > { %370 = vadd.xlane.f32.xlu0 %v369_v37  ;;  %v393_v12 = vadd.f32 %v392_v59, %v4526_v62  ;;  %v400_v17 = vadd.f32 %v4530_v3, %v4528_v63  ;;  %v4540_v18 = vld [vmem:[#allocation3 + $0x150] sm:$0xff]  ;;  %v4544_v22 = vld [vmem:[#allocation3 + $0x118] sm:$0xff]  ;;  %v4548_v24 = vld [vmem:[#allocation3 + $0x140] sm:$0xff] }
  0x6d   : > { %v4546_v23 = vld [vmem:[#allocation3 + $0x138] sm:$0xff]  ;;  %6190 = vst [vmem:[#allocation15_spill] sm:$0xff] %v4548_v24  ;;  %v405_v28 = vadd.f32 %v404_v11, %v4536_v16  ;;  %v412_v31 = vadd.f32 %v4542_v19, %v4540_v18  ;;  %v4554_v36 = vld [vmem:[#allocation3 + $0x160] sm:$0xff]  ;;  %v4562_v46 = vld [vmem:[#allocation3 + $0x148] sm:$0xff] }
  0x6e   : > { %v401_v35 = vadd.f32 %v400_v17, %v4544_v22  ;;  %v408_v37 = vadd.f32 %v4548_v24, %v4546_v23  ;;  %v4558_v39 = vld [vmem:[#allocation3 + $0x180] sm:$0xff]  ;;  %6193 = vst [vmem:[#allocation18_spill] sm:$0xff] %v4562_v46  ;;  %v4566_v49 = vld [vmem:[#allocation3 + $0x170] sm:$0xff]  ;;  %v4580_v17 = vld [vmem:[#allocation3 + $0x178] sm:$0xff] }
  0x6f   : > { %382 = vadd.xlane.f32.xlu1 %v381_v45  ;;  %6191 = vst [vmem:[#allocation16_spill] sm:$0xff] %v4558_v39  ;;  %v4560_v45 = vld [vmem:[#allocation3 + $0x188] sm:$0xff]  ;;  %6195 = vst [vmem:[#allocation20_spill] sm:$0xff] %v4566_v49  ;;  %v4572_v59 = vld [vmem:[#allocation3 + $0x190] sm:$0xff] }
  0x70   : > { %378 = vadd.xlane.f32.xlu0 %v377_v47  ;;  %6192 = vst [vmem:[#allocation17_spill] sm:$0xff] %v4560_v45  ;;  %v4564_v47 = vld [vmem:[#allocation3 + $0x168] sm:$0xff]  ;;  %v420_v56 = vadd.f32 %v4560_v45, %v4558_v39  ;;  %6196 = vst [vmem:[#allocation21_spill] sm:$0xff] %v4572_v59  ;;  %v4576_v11 = vld [vmem:[#allocation3 + $0x1b0] sm:$0xff] }
  0x71   : > { %6194 = vst [vmem:[#allocation19_spill] sm:$0xff] %v4564_v47  ;;  %6197 = vst [vmem:[#allocation22_spill] sm:$0xff] %v4576_v11  ;;  %v4594_v39 = vld [vmem:[#allocation3 + $0x1e0] sm:$0xff]  ;;  %v4598_v24 = vld [vmem:[#allocation3 + $0x1a8] sm:$0xff] }
  0x72   : > { %6199 = vst [vmem:[#allocation24_spill] sm:$0xff] %v4580_v17  ;;  %6203 = vst [vmem:[#allocation28_spill] sm:$0xff] %v4594_v39 }
  0x73   : > { %390 = vadd.xlane.f32.xlu1 %v389_v55  ;;  %v413_v55 = vadd.f32 %v412_v31, %v4554_v36  ;;  %v4584_v31 = vld [vmem:[#allocation3 + $0x1a0] sm:$0xff]  ;;  %6205 = vst [vmem:[#allocation30_spill] sm:$0xff] %v4598_v24 }
  0x74   : > { %386 = vadd.xlane.f32.xlu0 %v385_v57  ;;  %v409_v57 = vadd.f32 %v408_v37, %v4562_v46  ;;  %6201 = vst [vmem:[#allocation26_spill] sm:$0xff] %v4584_v31  ;;  %v4596_v46 = vld [vmem:[#allocation3 + $0x1e8] sm:$0xff] }
  0x75   : > { %6204 = vst [vmem:[#allocation29_spill] sm:$0xff] %v4596_v46 }
  0x77   : > { %398 = vadd.xlane.f32.xlu1 %v397_v7  ;;  %v416_v7 = vadd.f32 %v4566_v49, %v4564_v47  ;;  %v4590_v49 = vld [vmem:[#allocation3 + $0x1c0] sm:$0xff] }
  0x78   : > { %394 = vadd.xlane.f32.xlu0 %v393_v12  ;;  %v4578_v12 = vld [vmem:[#allocation3 + $0x1b8] sm:$0xff]  ;;  %6202 = vst [vmem:[#allocation27_spill] sm:$0xff] %v4590_v49 }
  0x79   : > { %6198 = vst [vmem:[#allocation23_spill] sm:$0xff] %v4578_v12  ;;  %v428_v37 = vadd.f32 %v4578_v12, %v4576_v11  ;;  %v417_v45 = vadd.f32 %v416_v7, %v4580_v17  ;;  %v436_v7 = vadd.f32 %v4596_v46, %v4594_v39  ;;  %v4612_v11 = vld [vmem:[#allocation3 + $0x210] sm:$0xff]  ;;  %v4614_v17 = vld [vmem:[#allocation3 + $0x218] sm:$0xff]  ;;  %v4630_v39 = vld [vmem:[#allocation3 + $0x208] sm:$0xff] }
  0x7a   : > { %6208 = vst [vmem:[#allocation33_spill] sm:$0xff] %v4612_v11  ;;  %6209 = vst [vmem:[#allocation34_spill] sm:$0xff] %v4614_v17 }
  0x7b   : > { %406 = vadd.xlane.f32.xlu1 %v405_v28  ;;  %v4582_v28 = vld [vmem:[#allocation3 + $0x198] sm:$0xff] }
  0x7c   : > { %402 = vadd.xlane.f32.xlu0 %v401_v35  ;;  %6200 = vst [vmem:[#allocation25_spill] sm:$0xff] %v4582_v28  ;;  %v421_v35 = vadd.f32 %v420_v56, %v4572_v59  ;;  %v424_v47 = vadd.f32 %v4584_v31, %v4582_v28  ;;  %v4602_v56 = vld [vmem:[#allocation3 + $0x1d0] sm:$0xff]  ;;  %v4616_v59 = vld [vmem:[#allocation3 + $0x1d8] sm:$0xff] }
  0x7d   : > { %6207 = vst [vmem:[#allocation32_spill] sm:$0xff] %v4602_v56  ;;  %v4608_v31 = vld [vmem:[#allocation3 + $0x1f0] sm:$0xff]  ;;  %6210 = vst [vmem:[#allocation35_spill] sm:$0xff] %v4616_v59 }
  0x7e   : > { %v425_v12 = vadd.f32 %v424_v47, %v4598_v24  ;;  %v444_v47 = vadd.f32 %v4614_v17, %v4612_v11  ;;  %v4632_v24 = vld [vmem:[#allocation3 + $0x228] sm:$0xff] }
  0x7f   : > { %414 = vadd.xlane.f32.xlu1 %v413_v55  ;;  %v4600_v55 = vld [vmem:[#allocation3 + $0x1c8] sm:$0xff] }
  0x80   : > { %410 = vadd.xlane.f32.xlu0 %v409_v57  ;;  %6206 = vst [vmem:[#allocation31_spill] sm:$0xff] %v4600_v55  ;;  %v429_v57 = vadd.f32 %v428_v37, %v4590_v49  ;;  %v432_v28 = vadd.f32 %v4602_v56, %v4600_v55  ;;  %v4620_v37 = vld [vmem:[#allocation3 + $0x200] sm:$0xff]  ;;  %v4634_v49 = vld [vmem:[#allocation3 + $0x230] sm:$0xff] }
  0x81   : > { %6212 = vst [vmem:[#allocation37_spill] sm:$0xff] %v4620_v37  ;;  %v4626_v56 = vld [vmem:[#allocation3 + $0x220] sm:$0xff] }
  0x82   : > { %v433_v46 = vadd.f32 %v432_v28, %v4616_v59  ;;  %v4640_v28 = vld [vmem:[#allocation3 + $0x238] sm:$0xff] }
  0x83   : > { %422 = vadd.xlane.f32.xlu1 %v421_v35  ;;  %v4618_v35 = vld [vmem:[#allocation3 + $0x1f8] sm:$0xff]  ;;  %6213 = vst [vmem:[#allocation38_spill] sm:$0xff] %v4640_v28 }
  0x84   : > { %418 = vadd.xlane.f32.xlu0 %v417_v45  ;;  %6211 = vst [vmem:[#allocation36_spill] sm:$0xff] %v4618_v35  ;;  %v437_v45 = vadd.f32 %v436_v7, %v4608_v31  ;;  %v440_v55 = vadd.f32 %v4620_v37, %v4618_v35 }
  0x86   : > { %v441_v7 = vadd.f32 %v440_v55, %v4630_v39 }
  0x87   : > { %430 = vadd.xlane.f32.xlu1 %v429_v57  ;;  %v445_v57 = vadd.f32 %v444_v47, %v4626_v56 }
  0x88   : > { %426 = vadd.xlane.f32.xlu0 %v425_v12  ;;  %v448_v12 = vadd.f32 %v4634_v49, %v4632_v24 }
  0x8a   : > { %v449_v37 = vadd.f32 %v448_v12, %v4640_v28 }
  0x8b   : > { %438 = vadd.xlane.f32.xlu1 %v437_v45 }
  0x8c   : > { %434 = vadd.xlane.f32.xlu0 %v433_v46 }
  0x8f   : > { %446 = vadd.xlane.f32.xlu1 %v445_v57 }
  0x90   : > { %442 = vadd.xlane.f32.xlu0 %v441_v7 }
  0x94   : > { %450 = vadd.xlane.f32.xlu0 %v449_v37 }
  0xec   : > { %v363_v35 = vpop.xlane.xlu1 %362 }
  0xed   : > { %v462_v17 = vmul.f32 0.0026041667, %v363_v35  ;;  %v359_v11 = vpop.xlane.xlu0 %358 }
  0xee   : > { %v461_v59 = vmul.f32 0.0026041667, %v359_v11 }
  0xef   : > { %v4644_v45 = vsub.f32 %v4415_v0, %v462_v17  ;;  %v4647_v46 = vsub.f32 %v4417_v1, %v462_v17  ;;  %v4650_v55 = vsub.f32 %v4419_v2, %v462_v17 }
  0xf0   : > { %v4653_v47 = vsub.f32 %v4423_v4, %v461_v59  ;;  %v4656_v57 = vsub.f32 %v4425_v5, %v461_v59  ;;  %v4659_v37 = vsub.f32 %v4427_v6, %v461_v59  ;;  %v367_v35 = vpop.xlane.xlu1 %366 }
  0xf1   : > { %6214 = vst [vmem:[#allocation39_spill] sm:$0xff] %v4644_v45  ;;  %6215 = vst [vmem:[#allocation40_spill] sm:$0xff] %v4647_v46  ;;  %v463_v11 = vmul.f32 0.0026041667, %v367_v35  ;;  %v459_v7 = vpop.xlane.xlu0 %458  ;;  %v564_v0 = vmul.f32 %v4644_v45, %v4644_v45  ;;  %v565_v1 = vmul.f32 %v4647_v46, %v4647_v46  ;;  %v566_v4 = vmul.f32 %v4650_v55, %v4650_v55 }
  0xf2   : > { %6216 = vst [vmem:[#allocation41_spill] sm:$0xff] %v4650_v55  ;;  %6217 = vst [vmem:[#allocation42_spill] sm:$0xff] %v4653_v47  ;;  %v485_v2 = vmul.f32 0.0026041667, %v459_v7  ;;  %v561_v5 = vmul.f32 %v4653_v47, %v4653_v47  ;;  %v562_v6 = vmul.f32 %v4656_v57, %v4656_v57  ;;  %v563_v55 = vmul.f32 %v4659_v37, %v4659_v37 }
  0xf3   : > { %6218 = vst [vmem:[#allocation43_spill] sm:$0xff] %v4656_v57  ;;  %v4672_v59 = vsub.f32 %v4431_v8, %v463_v11  ;;  %v4675_v17 = vsub.f32 %v4433_v9, %v463_v11  ;;  %v4678_v12 = vsub.f32 %v4435_v10, %v463_v11  ;;  %v640_v35 = vadd.f32 %v565_v1, %v564_v0 }
  0xf4   : > { %v375_v7 = vpop.xlane.xlu1 %374  ;;  %v636_v46 = vadd.f32 %v562_v6, %v561_v5  ;;  %v4687_v9 = vsub.f32 %v4440_v13, %v485_v2 }
  0xf5   : > { %v465_v45 = vmul.f32 0.0026041667, %v375_v7  ;;  %v371_v47 = vpop.xlane.xlu0 %370  ;;  %v641_v28 = vadd.f32 %v640_v35, %v566_v4  ;;  %v567_v57 = vmul.f32 %v4672_v59, %v4672_v59  ;;  %v568_v8 = vmul.f32 %v4675_v17, %v4675_v17 }
  0xf6   : > { %6219 = vst [vmem:[#allocation44_spill] sm:$0xff] %v4687_v9  ;;  %v464_v10 = vmul.f32 0.0026041667, %v371_v47  ;;  %v637_v11 = vadd.f32 %v636_v46, %v563_v55  ;;  %v569_v0 = vmul.f32 %v4678_v12, %v4678_v12  ;;  %v4701_v35 = vsub.f32 %v4442_v14, %v485_v2 }
  0xf7   : > { %v4692_v1 = vsub.f32 %v4453_v20, %v465_v45  ;;  %v4695_v5 = vsub.f32 %v4455_v21, %v465_v45  ;;  %v4698_v4 = vsub.f32 %v4464_v27, %v465_v45  ;;  %642 = vadd.xlane.f32.xlu0 %v641_v28  ;;  %v644_v6 = vadd.f32 %v568_v8, %v567_v57 }
  0xf8   : > { %6220 = vst [vmem:[#allocation45_spill] sm:$0xff] %v4701_v35  ;;  %v4704_v13 = vsub.f32 %v4460_v25, %v464_v10  ;;  %v4707_v46 = vsub.f32 %v4462_v26, %v464_v10  ;;  %v4710_v20 = vsub.f32 %v4472_v32, %v464_v10  ;;  %638 = vadd.xlane.f32.xlu1 %v637_v11  ;;  %v383_v21 = vpop.xlane.xlu1 %382 }
  0xf9   : > { %v467_v55 = vmul.f32 0.0026041667, %v383_v21  ;;  %v379_v47 = vpop.xlane.xlu0 %378  ;;  %v645_v27 = vadd.f32 %v644_v6, %v569_v0  ;;  %v573_v28 = vmul.f32 %v4692_v1, %v4692_v1  ;;  %v574_v14 = vmul.f32 %v4695_v5, %v4695_v5 }
  0xfa   : > { %v4717_v25 = vsub.f32 %v4444_v15, %v485_v2  ;;  %v466_v45 = vmul.f32 0.0026041667, %v379_v47  ;;  %v570_v26 = vmul.f32 %v4704_v13, %v4704_v13  ;;  %v571_v32 = vmul.f32 %v4707_v46, %v4707_v46 }
  0xfb   : > { %v4724_v57 = vsub.f32 %v4468_v29, %v467_v55  ;;  %v4727_v7 = vsub.f32 %v4470_v30, %v467_v55  ;;  %v575_v8 = vmul.f32 %v4698_v4, %v4698_v4  ;;  %v652_v10 = vadd.f32 %v574_v14, %v573_v28 }
  0xfc   : > { %v4732_v15 = vsub.f32 %v4482_v38, %v467_v55  ;;  %v4735_v2 = vsub.f32 %v4474_v33, %v466_v45  ;;  %v4738_v11 = vsub.f32 %v4476_v34, %v466_v45  ;;  %646 = vadd.xlane.f32.xlu1 %v645_v27  ;;  %v391_v0 = vpop.xlane.xlu1 %390  ;;  %v572_v29 = vmul.f32 %v4710_v20, %v4710_v20 }
  0xfd   : > { %v469_v30 = vmul.f32 0.0026041667, %v391_v0  ;;  %v387_v6 = vpop.xlane.xlu0 %386  ;;  %v653_v21 = vadd.f32 %v652_v10, %v575_v8  ;;  %v648_v47 = vadd.f32 %v571_v32, %v570_v26  ;;  %v579_v28 = vmul.f32 %v4724_v57, %v4724_v57 }
  0xfe   : > { %v4745_v38 = vsub.f32 %v4490_v42, %v466_v45  ;;  %v468_v33 = vmul.f32 0.0026041667, %v387_v6  ;;  %v580_v34 = vmul.f32 %v4727_v7, %v4727_v7  ;;  %v576_v55 = vmul.f32 %v4735_v2, %v4735_v2 }
  0xff   : > { %v4752_v27 = vsub.f32 %v4486_v40, %v469_v30  ;;  %v4755_v14 = vsub.f32 %v4488_v41, %v469_v30  ;;  %v4758_v26 = vsub.f32 %v4500_v48, %v469_v30  ;;  %v649_v32 = vadd.f32 %v648_v47, %v572_v29 }
 0x100   : > { %v4761_v42 = vsub.f32 %v4492_v43, %v468_v33  ;;  %654 = vadd.xlane.f32.xlu1 %v653_v21  ;;  %v399_v45 = vpop.xlane.xlu1 %398  ;;  %v581_v8 = vmul.f32 %v4732_v15, %v4732_v15  ;;  %v660_v10 = vadd.f32 %v580_v34, %v579_v28  ;;  %v4767_v40 = vmul.f32 %v4687_v9, %v4687_v9 }
 0x101   : > { %v4770_v41 = vsub.f32 %v4494_v44, %v468_v33  ;;  %650 = vadd.xlane.f32.xlu0 %v649_v32  ;;  %v471_v48 = vmul.f32 0.0026041667, %v399_v45  ;;  %v395_v0 = vpop.xlane.xlu0 %394  ;;  %v577_v43 = vmul.f32 %v4738_v11, %v4738_v11  ;;  %v585_v29 = vmul.f32 %v4752_v27, %v4752_v27 }
 0x102   : > { %v4777_v30 = vsub.f32 %v4508_v52, %v468_v33  ;;  %v470_v6 = vmul.f32 0.0026041667, %v395_v0  ;;  %v661_v21 = vadd.f32 %v660_v10, %v581_v8  ;;  %v586_v47 = vmul.f32 %v4755_v14, %v4755_v14 }
 0x103   : > { %v4782_v44 = vsub.f32 %v4504_v50, %v471_v48  ;;  %v578_v28 = vmul.f32 %v4745_v38, %v4745_v38  ;;  %v656_v34 = vadd.f32 %v577_v43, %v576_v55  ;;  %v587_v32 = vmul.f32 %v4758_v26, %v4758_v26 }
 0x104   : > { %v4789_v45 = vsub.f32 %v4506_v51, %v471_v48  ;;  %v4792_v52 = vsub.f32 %v4518_v58, %v471_v48  ;;  %v4795_v33 = vsub.f32 %v4510_v53, %v470_v6  ;;  %662 = vadd.xlane.f32.xlu1 %v661_v21  ;;  %v407_v8 = vpop.xlane.xlu1 %406  ;;  %v668_v50 = vadd.f32 %v586_v47, %v585_v29 }
 0x105   : > { %v657_v10 = vadd.f32 %v656_v34, %v578_v28  ;;  %v473_v0 = vmul.f32 0.0026041667, %v407_v8  ;;  %v403_v9 = vpop.xlane.xlu0 %402  ;;  %v582_v55 = vmul.f32 %v4761_v42, %v4761_v42  ;;  %v583_v43 = vmul.f32 %v4770_v41, %v4770_v41 }
 0x106   : > { %6221 = vst [vmem:[#allocation46_spill] sm:$0xff] %v4795_v33  ;;  %v4802_v51 = vsub.f32 %v4512_v54, %v470_v6  ;;  %v472_v58 = vmul.f32 0.0026041667, %v403_v9  ;;  %v669_v48 = vadd.f32 %v668_v50, %v587_v32  ;;  %v591_v53 = vmul.f32 %v4782_v44, %v4782_v44 }
 0x107   : > { %v4807_v21 = vsub.f32 %v4526_v62, %v470_v6  ;;  %658 = vadd.xlane.f32.xlu0 %v657_v10  ;;  %v584_v29 = vmul.f32 %v4777_v30, %v4777_v30  ;;  %v664_v47 = vadd.f32 %v583_v43, %v582_v55  ;;  %v4813_v28 = vmul.f32 %v4701_v35, %v4701_v35  ;;  %v6234_v35 = vld [vmem:[#allocation15_spill] sm:$0xff] }
 0x108   : > { %6222 = vst [vmem:[#allocation47_spill] sm:$0xff] %v4802_v51  ;;  %v4816_v54 = vsub.f32 %v4522_v60, %v473_v0  ;;  %v4819_v9 = vsub.f32 %v4524_v61, %v473_v0  ;;  %v4822_v34 = vsub.f32 %v4528_v63, %v472_v58  ;;  %670 = vadd.xlane.f32.xlu1 %v669_v48  ;;  %v415_v62 = vpop.xlane.xlu1 %414 }
 0x109   : > { %6223 = vst [vmem:[#allocation48_spill] sm:$0xff] %v4807_v21  ;;  %v592_v6 = vmul.f32 %v4789_v45, %v4789_v45  ;;  %v4827_v32 = vsub.f32 %v4530_v3, %v472_v58  ;;  %v665_v8 = vadd.f32 %v664_v47, %v584_v29  ;;  %v475_v50 = vmul.f32 0.0026041667, %v415_v62  ;;  %v411_v10 = vpop.xlane.xlu0 %410 }
 0x10a   : > { %6224 = vst [vmem:[#allocation49_spill] sm:$0xff] %v4816_v54  ;;  %6225 = vst [vmem:[#allocation50_spill] sm:$0xff] %v4819_v9  ;;  %v588_v60 = vmul.f32 %v4795_v33, %v4795_v33  ;;  %v474_v55 = vmul.f32 0.0026041667, %v411_v10  ;;  %v593_v61 = vmul.f32 %v4792_v52, %v4792_v52  ;;  %v589_v43 = vmul.f32 %v4802_v51, %v4802_v51 }
 0x10b   : > { %6226 = vst [vmem:[#allocation51_spill] sm:$0xff] %v4822_v34  ;;  %6227 = vst [vmem:[#allocation52_spill] sm:$0xff] %v4827_v32  ;;  %v676_v63 = vadd.f32 %v592_v6, %v591_v53  ;;  %v4836_v48 = vsub.f32 %v4536_v16, %v473_v0  ;;  %v4839_v3 = vsub.f32 %v4544_v22, %v472_v58  ;;  %666 = vadd.xlane.f32.xlu0 %v665_v8 }
 0x10c   : > { %v4842_v29 = vsub.f32 %v4540_v18, %v475_v50  ;;  %v590_v47 = vmul.f32 %v4807_v21, %v4807_v21  ;;  %v4847_v62 = vsub.f32 %v4542_v19, %v475_v50  ;;  %v4850_v53 = vsub.f32 %v4554_v36, %v475_v50  ;;  %v423_v10 = vpop.xlane.xlu1 %422 }
 0x10d   : > { %6228 = vst [vmem:[#allocation53_spill] sm:$0xff] %v4836_v48  ;;  %6229 = vst [vmem:[#allocation54_spill] sm:$0xff] %v4839_v3  ;;  %v677_v6 = vadd.f32 %v676_v63, %v593_v61  ;;  %v597_v16 = vmul.f32 %v4816_v54, %v4816_v54  ;;  %v4855_v22 = vsub.f32 %v4546_v23, %v474_v55  ;;  %v477_v18 = vmul.f32 0.0026041667, %v423_v10  ;;  %v419_v58 = vpop.xlane.xlu0 %418  ;;  %v6236_v63 = vld [vmem:[#allocation18_spill] sm:$0xff] }
 0x10e   : > { %6230 = vst [vmem:[#allocation55_spill] sm:$0xff] %v4842_v29  ;;  %6231 = vst [vmem:[#allocation56_spill] sm:$0xff] %v4847_v62  ;;  %v672_v0 = vadd.f32 %v589_v43, %v588_v60  ;;  %v598_v8 = vmul.f32 %v4819_v9, %v4819_v9  ;;  %v4860_v19 = vsub.f32 %v6234_v35, %v474_v55  ;;  %v476_v36 = vmul.f32 0.0026041667, %v419_v58  ;;  %v6237_v35 = vld [vmem:[#allocation16_spill] sm:$0xff] }
 0x10f   : > { %6232 = vst [vmem:[#allocation57_spill] sm:$0xff] %v4850_v53  ;;  %6233 = vst [vmem:[#allocation58_spill] sm:$0xff] %v4855_v22  ;;  %678 = vadd.xlane.f32.xlu1 %v677_v6  ;;  %v594_v50 = vmul.f32 %v4822_v34, %v4822_v34  ;;  %v595_v61 = vmul.f32 %v4827_v32, %v4827_v32  ;;  %v4867_v23 = vsub.f32 %v6236_v63, %v474_v55  ;;  %v6239_v6 = vld [vmem:[#allocation17_spill] sm:$0xff] }
 0x110   : > { %6235 = vst [vmem:[#allocation15_spill] sm:$0xff] %v4860_v19  ;;  %v673_v60 = vadd.f32 %v672_v0, %v590_v47  ;;  %v599_v43 = vmul.f32 %v4836_v48, %v4836_v48  ;;  %v596_v10 = vmul.f32 %v4839_v3, %v4839_v3  ;;  %v4874_v9 = vsub.f32 %v6237_v35, %v477_v18  ;;  %v6241_v34 = vld [vmem:[#allocation21_spill] sm:$0xff]  ;;  %v431_v21 = vpop.xlane.xlu1 %430  ;;  %v6243_v35 = vld [vmem:[#allocation19_spill] sm:$0xff] }
 0x111   : > { %v4877_v58 = vsub.f32 %v6239_v6, %v477_v18  ;;  %v4880_v54 = vsub.f32 %v6241_v34, %v477_v18  ;;  %v684_v32 = vadd.f32 %v598_v8, %v597_v16  ;;  %v680_v55 = vadd.f32 %v595_v61, %v594_v50  ;;  %v427_v0 = vpop.xlane.xlu0 %426  ;;  %v6244_v6 = vld [vmem:[#allocation20_spill] sm:$0xff] }
 0x112   : > { %6238 = vst [vmem:[#allocation18_spill] sm:$0xff] %v4874_v9  ;;  %674 = vadd.xlane.f32.xlu0 %v673_v60  ;;  %v479_v47 = vmul.f32 0.0026041667, %v431_v21  ;;  %v603_v63 = vmul.f32 %v4842_v29, %v4842_v29  ;;  %v604_v3 = vmul.f32 %v4847_v62, %v4847_v62  ;;  %v4887_v48 = vsub.f32 %v6243_v35, %v476_v36  ;;  %v6246_v16 = vld [vmem:[#allocation24_spill] sm:$0xff]  ;;  %v6247_v60 = vld [vmem:[#allocation22_spill] sm:$0xff]  ;;  %v6249_v35 = vld [vmem:[#allocation23_spill] sm:$0xff] }
 0x113   : > { %6240 = vst [vmem:[#allocation16_spill] sm:$0xff] %v4877_v58  ;;  %6242 = vst [vmem:[#allocation17_spill] sm:$0xff] %v4880_v54  ;;  %v4890_v51 = vsub.f32 %v6244_v6, %v476_v36  ;;  %v685_v34 = vadd.f32 %v684_v32, %v599_v43  ;;  %v478_v18 = vmul.f32 0.0026041667, %v427_v0  ;;  %v4893_v8 = vsub.f32 %v6246_v16, %v476_v36  ;;  %v6251_v6 = vld [vmem:[#allocation27_spill] sm:$0xff] }
 0x114   : > { %v681_v50 = vadd.f32 %v680_v55, %v596_v10  ;;  %v605_v21 = vmul.f32 %v4850_v53, %v4850_v53  ;;  %v600_v61 = vmul.f32 %v4855_v22, %v4855_v22  ;;  %v4900_v62 = vsub.f32 %v6247_v60, %v479_v47  ;;  %v439_v36 = vpop.xlane.xlu1 %438  ;;  %v6253_v10 = vld [vmem:[#allocation25_spill] sm:$0xff]  ;;  %v6254_v22 = vld [vmem:[#allocation26_spill] sm:$0xff] }
 0x115   : > { %6245 = vst [vmem:[#allocation21_spill] sm:$0xff] %v4890_v51  ;;  %686 = vadd.xlane.f32.xlu1 %v685_v34  ;;  %v4903_v29 = vsub.f32 %v6249_v35, %v479_v47  ;;  %v4906_v32 = vsub.f32 %v6251_v6, %v479_v47  ;;  %v692_v43 = vadd.f32 %v604_v3, %v603_v63  ;;  %v481_v16 = vmul.f32 0.0026041667, %v439_v36  ;;  %v435_v34 = vpop.xlane.xlu0 %434  ;;  %v6255_v63 = vld [vmem:[#allocation30_spill] sm:$0xff] }
 0x116   : > { %6248 = vst [vmem:[#allocation19_spill] sm:$0xff] %v4900_v62  ;;  %682 = vadd.xlane.f32.xlu0 %v681_v50  ;;  %v4909_v55 = vsub.f32 %v6253_v10, %v478_v18  ;;  %v601_v0 = vmul.f32 %v4860_v19, %v4860_v19  ;;  %v609_v60 = vmul.f32 %v4874_v9, %v4874_v9  ;;  %v480_v47 = vmul.f32 0.0026041667, %v435_v34  ;;  %v6256_v9 = vld [vmem:[#allocation28_spill] sm:$0xff] }
 0x117   : > { %6250 = vst [vmem:[#allocation20_spill] sm:$0xff] %v4903_v29  ;;  %6252 = vst [vmem:[#allocation24_spill] sm:$0xff] %v4906_v32  ;;  %v4916_v35 = vsub.f32 %v6254_v22, %v478_v18  ;;  %v693_v53 = vadd.f32 %v692_v43, %v605_v21  ;;  %v610_v3 = vmul.f32 %v4877_v58, %v4877_v58  ;;  %v6257_v22 = vld [vmem:[#allocation29_spill] sm:$0xff]  ;;  %v6258_v58 = vld [vmem:[#allocation31_spill] sm:$0xff] }
 0x118   : > { %v4921_v50 = vsub.f32 %v6255_v63, %v478_v18  ;;  %v602_v6 = vmul.f32 %v4867_v23, %v4867_v23  ;;  %v688_v10 = vadd.f32 %v601_v0, %v600_v61  ;;  %v611_v36 = vmul.f32 %v4880_v54, %v4880_v54  ;;  %v447_v18 = vpop.xlane.xlu1 %446 }
 0x119   : > { %694 = vadd.xlane.f32.xlu1 %v693_v53  ;;  %v4928_v19 = vsub.f32 %v6256_v9, %v481_v16  ;;  %v4931_v21 = vsub.f32 %v6257_v22, %v481_v16  ;;  %v4934_v43 = vsub.f32 %v4608_v31, %v481_v16  ;;  %v700_v34 = vadd.f32 %v610_v3, %v609_v60  ;;  %v443_v9 = vpop.xlane.xlu0 %442  ;;  %v6259_v16 = vld [vmem:[#allocation32_spill] sm:$0xff] }
 0x11a   : > { %v689_v63 = vadd.f32 %v688_v10, %v602_v6  ;;  %v4937_v33 = vsub.f32 %v6258_v58, %v480_v47  ;;  %v606_v61 = vmul.f32 %v4887_v48, %v4887_v48  ;;  %v607_v53 = vmul.f32 %v4890_v51, %v4890_v51  ;;  %v6260_v10 = vld [vmem:[#allocation35_spill] sm:$0xff] }
 0x11b   : > { %v701_v0 = vadd.f32 %v700_v34, %v611_v36  ;;  %v483_v54 = vmul.f32 0.0026041667, %v447_v18  ;;  %v482_v22 = vmul.f32 0.0026041667, %v443_v9  ;;  %v615_v31 = vmul.f32 %v4900_v62, %v4900_v62  ;;  %v6261_v36 = vld [vmem:[#allocation33_spill] sm:$0xff] }
 0x11c   : > { %690 = vadd.xlane.f32.xlu0 %v689_v63  ;;  %v4946_v60 = vsub.f32 %v6259_v16, %v480_v47  ;;  %v608_v58 = vmul.f32 %v4893_v8, %v4893_v8  ;;  %v696_v3 = vadd.f32 %v607_v53, %v606_v61  ;;  %v616_v6 = vmul.f32 %v4903_v29, %v4903_v29  ;;  %v6262_v16 = vld [vmem:[#allocation34_spill] sm:$0xff] }
 0x11d   : > { %v4953_v51 = vsub.f32 %v6260_v10, %v480_v47  ;;  %702 = vadd.xlane.f32.xlu1 %v701_v0  ;;  %v4956_v34 = vsub.f32 %v6261_v36, %v483_v54  ;;  %v617_v18 = vmul.f32 %v4906_v32, %v4906_v32  ;;  %v612_v63 = vmul.f32 %v4909_v55, %v4909_v55  ;;  %v451_v47 = vpop.xlane.xlu0 %450  ;;  %v6264_v10 = vld [vmem:[#allocation36_spill] sm:$0xff] }
 0x11e   : > { %v697_v9 = vadd.f32 %v696_v3, %v608_v58  ;;  %v4963_v62 = vsub.f32 %v6262_v16, %v483_v54  ;;  %v4966_v61 = vsub.f32 %v4626_v56, %v483_v54  ;;  %v708_v53 = vadd.f32 %v616_v6, %v615_v31  ;;  %v6266_v58 = vld [vmem:[#allocation37_spill] sm:$0xff] }
 0x11f   : > { %v4969_v0 = vsub.f32 %v6264_v10, %v482_v22  ;;  %v613_v36 = vmul.f32 %v4916_v35, %v4916_v35  ;;  %v484_v29 = vmul.f32 0.0026041667, %v451_v47  ;;  %v621_v32 = vmul.f32 %v4928_v19, %v4928_v19 }
 0x120   : > { %6263 = vst [vmem:[#allocation22_spill] sm:$0xff] %v4963_v62  ;;  %698 = vadd.xlane.f32.xlu0 %v697_v9  ;;  %v4976_v3 = vsub.f32 %v6266_v58, %v482_v22  ;;  %v709_v16 = vadd.f32 %v708_v53, %v617_v18  ;;  %v622_v56 = vmul.f32 %v4931_v21, %v4931_v21 }
 0x121   : > { %6265 = vst [vmem:[#allocation23_spill] sm:$0xff] %v4969_v0  ;;  %v618_v54 = vmul.f32 %v4937_v33, %v4937_v33  ;;  %v4983_v31 = vsub.f32 %v4630_v39, %v482_v22  ;;  %v614_v6 = vmul.f32 %v4921_v50, %v4921_v50  ;;  %v704_v47 = vadd.f32 %v613_v36, %v612_v63 }
 0x122   : > { %6267 = vst [vmem:[#allocation27_spill] sm:$0xff] %v4976_v3  ;;  %v623_v9 = vmul.f32 %v4934_v43, %v4934_v43  ;;  %710 = vadd.xlane.f32.xlu1 %v709_v16  ;;  %v4990_v10 = vsub.f32 %v4632_v24, %v484_v29  ;;  %v716_v18 = vadd.f32 %v622_v56, %v621_v32 }
 0x123   : > { %v619_v53 = vmul.f32 %v4946_v60, %v4946_v60  ;;  %v627_v58 = vmul.f32 %v4956_v34, %v4956_v34  ;;  %v705_v39 = vadd.f32 %v704_v47, %v614_v6  ;;  %v4997_v22 = vsub.f32 %v4634_v49, %v484_v29 }
 0x124   : > { %6268 = vst [vmem:[#allocation25_spill] sm:$0xff] %v4990_v10  ;;  %v628_v63 = vmul.f32 %v4963_v62, %v4963_v62  ;;  %v624_v36 = vmul.f32 %v4969_v0, %v4969_v0  ;;  %v717_v16 = vadd.f32 %v716_v18, %v623_v9  ;;  %v620_v24 = vmul.f32 %v4953_v51, %v4953_v51  ;;  %v6270_v0 = vld [vmem:[#allocation38_spill] sm:$0xff] }
 0x125   : > { %6269 = vst [vmem:[#allocation26_spill] sm:$0xff] %v4997_v22  ;;  %v712_v32 = vadd.f32 %v619_v53, %v618_v54  ;;  %v625_v56 = vmul.f32 %v4976_v3, %v4976_v3  ;;  %706 = vadd.xlane.f32.xlu0 %v705_v39  ;;  %v629_v6 = vmul.f32 %v4966_v61, %v4966_v61  ;;  %v732_v47 = vsel %vm452_vm0, %v4767_v40, 0.0 }
 0x126   : > { %v724_v49 = vadd.f32 %v628_v63, %v627_v58  ;;  %v733_v62 = vsel %vm452_vm0, %v4813_v28, 0.0  ;;  %v5014_v9 = vsub.f32 %v6270_v0, %v484_v29  ;;  %718 = vadd.xlane.f32.xlu1 %v717_v16  ;;  %v630_v53 = vmul.f32 %v4990_v10, %v4990_v10 }
 0x127   : > { %v713_v18 = vadd.f32 %v712_v32, %v620_v24  ;;  %v720_v54 = vadd.f32 %v625_v56, %v624_v36  ;;  %v626_v3 = vmul.f32 %v4983_v31, %v4983_v31  ;;  %v635_v58 = vmul.f32 %v4717_v25, %v4717_v25 }
 0x128   : > { %6271 = vst [vmem:[#allocation30_spill] sm:$0xff] %v5014_v9  ;;  %v725_v39 = vadd.f32 %v724_v49, %v629_v6  ;;  %v631_v40 = vmul.f32 %v4997_v22, %v4997_v22  ;;  %v734_v28 = vadd.f32 %v733_v62, %v732_v47  ;;  %v632_v36 = vmul.f32 %v5014_v9, %v5014_v9 }
 0x129   : > { %714 = vadd.xlane.f32.xlu0 %v713_v18  ;;  %v721_v29 = vadd.f32 %v720_v54, %v626_v3  ;;  %v735_v63 = vsel %vm452_vm0, %v635_v58, 0.0 }
 0x12a   : > { %v728_v0 = vadd.f32 %v631_v40, %v630_v53  ;;  %726 = vadd.xlane.f32.xlu1 %v725_v39  ;;  %v736_v16 = vadd.f32 %v735_v63, %v734_v28 }
 0x12c   : > { %v729_v24 = vadd.f32 %v728_v0, %v632_v36 }
 0x12d   : > { %722 = vadd.xlane.f32.xlu0 %v721_v29 }
 0x12e   : > { %737 = vadd.xlane.f32.xlu1 %v736_v16 }
 0x131   : > { %730 = vadd.xlane.f32.xlu0 %v729_v24 }
 0x180   : > { %v643_v32 = vpop.xlane.xlu0 %642 }
 0x181   : > { %v639_v56 = vpop.xlane.xlu1 %638  ;;  %v740_v6 = vmul.f32 0.0026041667, %v643_v32 }
 0x182   : > { %v739_v49 = vmul.f32 0.0026041667, %v639_v56 }
 0x183   : > { %v765_v22 = vadd.f32 1e-05, %v740_v6  ;;  %v6272_v6 = vld [vmem:[#allocation39_spill] sm:$0xff] }
 0x184   : > { %v764_v62 = vadd.f32 1e-05, %v739_v49 }
 0x185   : > { %3669 = vrsqrt.f32 %v765_v22  ;;  %v647_v3 = vpop.xlane.xlu1 %646 }
 0x186   : > { %3671 = vrsqrt.f32 %v764_v62  ;;  %v741_v47 = vmul.f32 0.0026041667, %v647_v3  ;;  %v6273_v62 = vld [vmem:[#allocation40_spill] sm:$0xff] }
 0x188   : > { %v766_v18 = vadd.f32 1e-05, %v741_v47  ;;  %v6274_v47 = vld [vmem:[#allocation41_spill] sm:$0xff] }
 0x189   : > { %v655_v54 = vpop.xlane.xlu1 %654 }
 0x18a   : > { %3673 = vrsqrt.f32 %v766_v18  ;;  %v743_v53 = vmul.f32 0.0026041667, %v655_v54  ;;  %v651_v39 = vpop.xlane.xlu0 %650 }
 0x18b   : > { %v742_v58 = vmul.f32 0.0026041667, %v651_v39 }
 0x18c   : > { %v768_v40 = vadd.f32 1e-05, %v743_v53  ;;  %v6275_v53 = vld [vmem:[#allocation42_spill] sm:$0xff] }
 0x18d   : > { %v767_v28 = vadd.f32 1e-05, %v742_v58  ;;  %v663_v29 = vpop.xlane.xlu1 %662  ;;  %v6276_v58 = vld [vmem:[#allocation43_spill] sm:$0xff] }
 0x18e   : > { %3675 = vrsqrt.f32 %v768_v40  ;;  %v745_v0 = vmul.f32 0.0026041667, %v663_v29 }
 0x18f   : > { %3677 = vrsqrt.f32 %v767_v28 }
 0x190   : > { %v770_v63 = vadd.f32 1e-05, %v745_v0  ;;  %v659_v36 = vpop.xlane.xlu0 %658 }
 0x191   : > { %v744_v16 = vmul.f32 0.0026041667, %v659_v36  ;;  %v671_v24 = vpop.xlane.xlu1 %670 }
 0x192   : > { %v3670_v22 = vpop.eup %3669  ;;  %3679 = vrsqrt.f32 %v770_v63  ;;  %v747_v32 = vmul.f32 0.0026041667, %v671_v24 }
 0x193   : > { %v3672_v56 = vpop.eup %3671  ;;  %v817_v49 = vmul.f32 %v3670_v22, %v6272_v6  ;;  %v818_v3 = vmul.f32 %v3670_v22, %v6273_v62  ;;  %v819_v18 = vmul.f32 %v3670_v22, %v6274_v47  ;;  %v769_v54 = vadd.f32 1e-05, %v744_v16 }
 0x194   : > { %v814_v39 = vmul.f32 %v3672_v56, %v6275_v53  ;;  %v815_v40 = vmul.f32 %v3672_v56, %v6276_v58  ;;  %v816_v28 = vmul.f32 %v3672_v56, %v4659_v37  ;;  %v772_v29 = vadd.f32 1e-05, %v747_v32  ;;  %v667_v0 = vpop.xlane.xlu0 %666 }
 0x195   : > { %v3311_v36 = vpack.c.bf16 %v818_v3, %v817_v49  ;;  %v3312_v9 = vpack.c.bf16 %v819_v18, %v819_v18  ;;  %3681 = vrsqrt.f32 %v769_v54  ;;  %v746_v63 = vmul.f32 0.0026041667, %v667_v0 }
 0x196   : > { %v3309_v24 = vpack.c.bf16 %v815_v40, %v814_v39  ;;  %v3310_v10 = vpack.c.bf16 %v816_v28, %v816_v28  ;;  %3683 = vrsqrt.f32 %v772_v29 }
 0x197   : > { %v3674_v6 = vpop.eup %3673  ;;  %1144 = vst [vmem:[#allocation2 + $0xc] sm:$0xff] %v3311_v36  ;;  %1145 = vst [vmem:[#allocation2 + $0x14] sm:$0xf] %v3312_v9  ;;  %v771_v22 = vadd.f32 1e-05, %v746_v63 }
 0x198   : > { %v679_v16 = vpop.xlane.xlu1 %678  ;;  %1142 = vst [vmem:[#allocation2] sm:$0xff] %v3309_v24  ;;  %1143 = vst [vmem:[#allocation2 + $0x8] sm:$0xf] %v3310_v10  ;;  %v820_v62 = vmul.f32 %v3674_v6, %v4672_v59  ;;  %v821_v37 = vmul.f32 %v3674_v6, %v4675_v17  ;;  %v822_v32 = vmul.f32 %v3674_v6, %v4678_v12 }
 0x199   : > { %v749_v56 = vmul.f32 0.0026041667, %v679_v16  ;;  %3685 = vrsqrt.f32 %v771_v22 }
 0x19a   : > { %v3313_v49 = vpack.c.bf16 %v821_v37, %v820_v62  ;;  %v3314_v3 = vpack.c.bf16 %v822_v32, %v822_v32 }
 0x19b   : > { %v774_v47 = vadd.f32 1e-05, %v749_v56  ;;  %v675_v18 = vpop.xlane.xlu0 %674  ;;  %v3676_v54 = vpop.eup %3675 }
 0x19c   : > { %v748_v53 = vmul.f32 0.0026041667, %v675_v18  ;;  %v3678_v39 = vpop.eup %3677  ;;  %1146 = vst [vmem:[#allocation2 + $0x18] sm:$0xff] %v3313_v49  ;;  %1147 = vst [vmem:[#allocation2 + $0x20] sm:$0xf] %v3314_v3  ;;  %v826_v9 = vmul.f32 %v3676_v54, %v4692_v1  ;;  %v827_v10 = vmul.f32 %v3676_v54, %v4695_v5  ;;  %v828_v59 = vmul.f32 %v3676_v54, %v4698_v4 }
 0x19d   : > { %3687 = vrsqrt.f32 %v774_v47  ;;  %v823_v17 = vmul.f32 %v3678_v39, %v4704_v13  ;;  %v824_v12 = vmul.f32 %v3678_v39, %v4707_v46  ;;  %v825_v58 = vmul.f32 %v3678_v39, %v4710_v20 }
 0x19e   : > { %v773_v40 = vadd.f32 1e-05, %v748_v53  ;;  %v687_v28 = vpop.xlane.xlu1 %686  ;;  %v3317_v29 = vpack.c.bf16 %v827_v10, %v826_v9  ;;  %v3318_v0 = vpack.c.bf16 %v828_v59, %v828_v59 }
 0x19f   : > { %v751_v36 = vmul.f32 0.0026041667, %v687_v28  ;;  %v683_v63 = vpop.xlane.xlu0 %682  ;;  %v3680_v24 = vpop.eup %3679  ;;  %v3315_v6 = vpack.c.bf16 %v824_v12, %v823_v17  ;;  %v3316_v1 = vpack.c.bf16 %v825_v58, %v825_v58 }
 0x1a0   : > { %3689 = vrsqrt.f32 %v773_v40  ;;  %v750_v5 = vmul.f32 0.0026041667, %v683_v63  ;;  %1150 = vst [vmem:[#allocation2 + $0x30] sm:$0xff] %v3317_v29  ;;  %1151 = vst [vmem:[#allocation2 + $0x38] sm:$0xf] %v3318_v0  ;;  %v832_v4 = vmul.f32 %v3680_v24, %v4724_v57  ;;  %v833_v13 = vmul.f32 %v3680_v24, %v4727_v7 }
 0x1a1   : > { %v834_v46 = vmul.f32 %v3680_v24, %v4732_v15  ;;  %v776_v20 = vadd.f32 1e-05, %v751_v36  ;;  %1148 = vst [vmem:[#allocation2 + $0x24] sm:$0xff] %v3315_v6  ;;  %1149 = vst [vmem:[#allocation2 + $0x2c] sm:$0xf] %v3316_v1 }
 0x1a2   : > { %v775_v22 = vadd.f32 1e-05, %v750_v5  ;;  %v695_v16 = vpop.xlane.xlu1 %694  ;;  %v3682_v62 = vpop.eup %3681  ;;  %v3321_v37 = vpack.c.bf16 %v833_v13, %v832_v4  ;;  %v6277_v13 = vld [vmem:[#allocation46_spill] sm:$0xff] }
 0x1a3   : > { %v3322_v32 = vpack.c.bf16 %v834_v46, %v834_v46  ;;  %3691 = vrsqrt.f32 %v776_v20  ;;  %v753_v56 = vmul.f32 0.0026041667, %v695_v16  ;;  %v3684_v49 = vpop.eup %3683  ;;  %v829_v3 = vmul.f32 %v3682_v62, %v4735_v2  ;;  %v6278_v20 = vld [vmem:[#allocation47_spill] sm:$0xff]  ;;  %v6279_v16 = vld [vmem:[#allocation48_spill] sm:$0xff] }
 0x1a4   : > { %v830_v47 = vmul.f32 %v3682_v62, %v4738_v11  ;;  %v831_v57 = vmul.f32 %v3682_v62, %v4745_v38  ;;  %3693 = vrsqrt.f32 %v775_v22  ;;  %1154 = vst [vmem:[#allocation2 + $0x48] sm:$0xff] %v3321_v37  ;;  %v838_v7 = vmul.f32 %v3684_v49, %v4752_v27 }
 0x1a5   : > { %1155 = vst [vmem:[#allocation2 + $0x50] sm:$0xf] %v3322_v32  ;;  %v839_v15 = vmul.f32 %v3684_v49, %v4755_v14  ;;  %v840_v18 = vmul.f32 %v3684_v49, %v4758_v26  ;;  %v778_v54 = vadd.f32 1e-05, %v753_v56  ;;  %v691_v53 = vpop.xlane.xlu0 %690 }
 0x1a6   : > { %v3319_v39 = vpack.c.bf16 %v830_v47, %v829_v3  ;;  %v3320_v9 = vpack.c.bf16 %v831_v57, %v831_v57  ;;  %v752_v10 = vmul.f32 0.0026041667, %v691_v53  ;;  %v703_v59 = vpop.xlane.xlu1 %702  ;;  %v3686_v2 = vpop.eup %3685  ;;  %v6280_v57 = vld [vmem:[#allocation49_spill] sm:$0xff] }
 0x1a7   : > { %v3325_v17 = vpack.c.bf16 %v839_v15, %v838_v7  ;;  %v3326_v11 = vpack.c.bf16 %v840_v18, %v840_v18  ;;  %3695 = vrsqrt.f32 %v778_v54  ;;  %v755_v38 = vmul.f32 0.0026041667, %v703_v59  ;;  %v6281_v15 = vld [vmem:[#allocation50_spill] sm:$0xff]  ;;  %v6282_v54 = vld [vmem:[#allocation53_spill] sm:$0xff] }
 0x1a8   : > { %1152 = vst [vmem:[#allocation2 + $0x3c] sm:$0xff] %v3319_v39  ;;  %1153 = vst [vmem:[#allocation2 + $0x44] sm:$0xf] %v3320_v9  ;;  %v835_v12 = vmul.f32 %v3686_v2, %v4761_v42  ;;  %v836_v27 = vmul.f32 %v3686_v2, %v4770_v41  ;;  %v837_v14 = vmul.f32 %v3686_v2, %v4777_v30  ;;  %v777_v26 = vadd.f32 1e-05, %v752_v10  ;;  %v6283_v39 = vld [vmem:[#allocation51_spill] sm:$0xff] }
 0x1a9   : > { %1158 = vst [vmem:[#allocation2 + $0x60] sm:$0xff] %v3325_v17  ;;  %1159 = vst [vmem:[#allocation2 + $0x68] sm:$0xf] %v3326_v11  ;;  %v780_v58 = vadd.f32 1e-05, %v755_v38  ;;  %v699_v40 = vpop.xlane.xlu0 %698  ;;  %v6284_v10 = vld [vmem:[#allocation52_spill] sm:$0xff] }
 0x1aa   : > { %v3688_v28 = vpop.eup %3687  ;;  %v3323_v29 = vpack.c.bf16 %v836_v27, %v835_v12  ;;  %v3324_v0 = vpack.c.bf16 %v837_v14, %v837_v14  ;;  %3697 = vrsqrt.f32 %v777_v26  ;;  %v754_v36 = vmul.f32 0.0026041667, %v699_v40  ;;  %v6285_v2 = vld [vmem:[#allocation54_spill] sm:$0xff] }
 0x1ab   : > { %v844_v63 = vmul.f32 %v3688_v28, %v4782_v44  ;;  %v845_v24 = vmul.f32 %v3688_v28, %v4789_v45  ;;  %v846_v42 = vmul.f32 %v3688_v28, %v4792_v52  ;;  %3699 = vrsqrt.f32 %v780_v58  ;;  %v711_v41 = vpop.xlane.xlu1 %710 }
 0x1ac   : > { %1156 = vst [vmem:[#allocation2 + $0x54] sm:$0xff] %v3323_v29  ;;  %1157 = vst [vmem:[#allocation2 + $0x5c] sm:$0xf] %v3324_v0  ;;  %v779_v30 = vadd.f32 1e-05, %v754_v36  ;;  %v6286_v36 = vld [vmem:[#allocation55_spill] sm:$0xff] }
 0x1ad   : > { %v757_v6 = vmul.f32 0.0026041667, %v711_v41  ;;  %v3690_v1 = vpop.eup %3689  ;;  %v3329_v5 = vpack.c.bf16 %v845_v24, %v844_v63  ;;  %v3330_v4 = vpack.c.bf16 %v846_v42, %v846_v42  ;;  %v6287_v24 = vld [vmem:[#allocation56_spill] sm:$0xff]  ;;  %v6288_v41 = vld [vmem:[#allocation57_spill] sm:$0xff] }
 0x1ae   : > { %v841_v46 = vmul.f32 %v3690_v1, %v6277_v13  ;;  %v842_v22 = vmul.f32 %v3690_v1, %v6278_v20  ;;  %v843_v62 = vmul.f32 %v3690_v1, %v6279_v16  ;;  %3701 = vrsqrt.f32 %v779_v30  ;;  %v707_v44 = vpop.xlane.xlu0 %706 }
 0x1af   : > { %1162 = vst [vmem:[#allocation2 + $0x78] sm:$0xff] %v3329_v5  ;;  %1163 = vst [vmem:[#allocation2 + $0x80] sm:$0xf] %v3330_v4  ;;  %v782_v45 = vadd.f32 1e-05, %v757_v6  ;;  %v719_v37 = vpop.xlane.xlu1 %718 }
 0x1b0   : > { %v756_v52 = vmul.f32 0.0026041667, %v707_v44  ;;  %v3692_v32 = vpop.eup %3691  ;;  %v3327_v56 = vpack.c.bf16 %v842_v22, %v841_v46  ;;  %v3328_v49 = vpack.c.bf16 %v843_v62, %v843_v62  ;;  %v759_v3 = vmul.f32 0.0026041667, %v719_v37  ;;  %v6289_v62 = vld [vmem:[#allocation58_spill] sm:$0xff] }
 0x1b1   : > { %v3694_v47 = vpop.eup %3693  ;;  %v850_v7 = vmul.f32 %v3692_v32, %v6280_v57  ;;  %v851_v18 = vmul.f32 %v3692_v32, %v6281_v15  ;;  %v852_v53 = vmul.f32 %v3692_v32, %v6282_v54  ;;  %3703 = vrsqrt.f32 %v782_v45  ;;  %v6290_v45 = vld [vmem:[#allocation15_spill] sm:$0xff]  ;;  %v6291_v32 = vld [vmem:[#allocation18_spill] sm:$0xff] }
 0x1b2   : > { %1160 = vst [vmem:[#allocation2 + $0x6c] sm:$0xff] %v3327_v56  ;;  %1161 = vst [vmem:[#allocation2 + $0x74] sm:$0xf] %v3328_v49  ;;  %v847_v9 = vmul.f32 %v3694_v47, %v6283_v39  ;;  %v848_v59 = vmul.f32 %v3694_v47, %v6284_v10  ;;  %v849_v17 = vmul.f32 %v3694_v47, %v6285_v2  ;;  %v781_v11 = vadd.f32 1e-05, %v756_v52  ;;  %v715_v38 = vpop.xlane.xlu0 %714  ;;  %v6292_v49 = vld [vmem:[#allocation16_spill] sm:$0xff] }
 0x1b3   : > { %v3333_v12 = vpack.c.bf16 %v851_v18, %v850_v7  ;;  %v3334_v27 = vpack.c.bf16 %v852_v53, %v852_v53  ;;  %v784_v14 = vadd.f32 1e-05, %v759_v3  ;;  %v758_v26 = vmul.f32 0.0026041667, %v715_v38  ;;  %v727_v58 = vpop.xlane.xlu1 %726  ;;  %v6293_v47 = vld [vmem:[#allocation17_spill] sm:$0xff] }
 0x1b4   : > { %v3696_v40 = vpop.eup %3695  ;;  %v3331_v28 = vpack.c.bf16 %v848_v59, %v847_v9  ;;  %v3332_v29 = vpack.c.bf16 %v849_v17, %v849_v17  ;;  %3705 = vrsqrt.f32 %v781_v11  ;;  %v761_v0 = vmul.f32 0.0026041667, %v727_v58  ;;  %v6294_v2 = vld [vmem:[#allocation21_spill] sm:$0xff]  ;;  %v6295_v58 = vld [vmem:[#allocation19_spill] sm:$0xff] }
 0x1b5   : > { %1166 = vst [vmem:[#allocation2 + $0x90] sm:$0xff] %v3333_v12  ;;  %1167 = vst [vmem:[#allocation2 + $0x98] sm:$0xf] %v3334_v27  ;;  %v856_v63 = vmul.f32 %v3696_v40, %v6286_v36  ;;  %v857_v42 = vmul.f32 %v3696_v40, %v6287_v24  ;;  %v858_v30 = vmul.f32 %v3696_v40, %v6288_v41  ;;  %3707 = vrsqrt.f32 %v784_v14 }
 0x1b6   : > { %1164 = vst [vmem:[#allocation2 + $0x84] sm:$0xff] %v3331_v28  ;;  %1165 = vst [vmem:[#allocation2 + $0x8c] sm:$0xf] %v3332_v29  ;;  %v783_v6 = vadd.f32 1e-05, %v758_v26  ;;  %v723_v5 = vpop.xlane.xlu0 %722  ;;  %v6296_v28 = vld [vmem:[#allocation20_spill] sm:$0xff] }
 0x1b7   : > { %v786_v1 = vadd.f32 1e-05, %v761_v0  ;;  %v3698_v4 = vpop.eup %3697  ;;  %v3337_v13 = vpack.c.bf16 %v857_v42, %v856_v63  ;;  %v3338_v46 = vpack.c.bf16 %v858_v30, %v858_v30  ;;  %v760_v20 = vmul.f32 0.0026041667, %v723_v5  ;;  %v738_v22 = vpop.xlane.xlu1 %737  ;;  %v6297_v0 = vld [vmem:[#allocation24_spill] sm:$0xff] }
 0x1b8   : > { %v3700_v16 = vpop.eup %3699  ;;  %v853_v44 = vmul.f32 %v3698_v4, %v6289_v62  ;;  %v854_v52 = vmul.f32 %v3698_v4, %v6290_v45  ;;  %v855_v37 = vmul.f32 %v3698_v4, %v4867_v23  ;;  %3709 = vrsqrt.f32 %v783_v6 }
 0x1b9   : > { %1170 = vst [vmem:[#allocation2 + $0xa8] sm:$0xff] %v3337_v13  ;;  %1171 = vst [vmem:[#allocation2 + $0xb0] sm:$0xf] %v3338_v46  ;;  %v862_v56 = vmul.f32 %v3700_v16, %v6291_v32  ;;  %v863_v3 = vmul.f32 %v3700_v16, %v6292_v49  ;;  %v864_v57 = vmul.f32 %v3700_v16, %v6293_v47  ;;  %3711 = vrsqrt.f32 %v786_v1 }
 0x1ba   : > { %v3335_v7 = vpack.c.bf16 %v854_v52, %v853_v44  ;;  %v3336_v15 = vpack.c.bf16 %v855_v37, %v855_v37  ;;  %v785_v18 = vadd.f32 1e-05, %v760_v20  ;;  %v763_v54 = vmul.f32 0.0026041667, %v738_v22  ;;  %v731_v53 = vpop.xlane.xlu0 %730 }
 0x1bb   : > { %v3702_v39 = vpop.eup %3701  ;;  %v3341_v9 = vpack.c.bf16 %v863_v3, %v862_v56  ;;  %v3342_v10 = vpack.c.bf16 %v864_v57, %v864_v57  ;;  %v762_v59 = vmul.f32 0.0026041667, %v731_v53  ;;  %v6303_v53 = vld [vmem:[#allocation25_spill] sm:$0xff] }
 0x1bc   : > { %1168 = vst [vmem:[#allocation2 + $0x9c] sm:$0xff] %v3335_v7  ;;  %1169 = vst [vmem:[#allocation2 + $0xa4] sm:$0xf] %v3336_v15  ;;  %v859_v23 = vmul.f32 %v3702_v39, %v4887_v48  ;;  %v860_v17 = vmul.f32 %v3702_v39, %v6294_v2  ;;  %v861_v11 = vmul.f32 %v3702_v39, %v4893_v8  ;;  %3713 = vrsqrt.f32 %v785_v18  ;;  %v6302_v15 = vld [vmem:[#allocation45_spill] sm:$0xff] }
 0x1bd   : > { %1174 = vst [vmem:[#allocation2 + $0xc0] sm:$0xff] %v3341_v9  ;;  %1175 = vst [vmem:[#allocation2 + $0xc8] sm:$0xf] %v3342_v10  ;;  %v788_v38 = vadd.f32 1e-05, %v763_v54  ;;  %v6304_v9 = vld [vmem:[#allocation26_spill] sm:$0xff] }
 0x1be   : > { %v787_v12 = vadd.f32 1e-05, %v762_v59  ;;  %v3704_v27 = vpop.eup %3703  ;;  %v3339_v14 = vpack.c.bf16 %v860_v17, %v859_v23  ;;  %v3340_v26 = vpack.c.bf16 %v861_v11, %v861_v11  ;;  %v6305_v59 = vld [vmem:[#allocation30_spill] sm:$0xff] }
 0x1bf   : > { %v868_v40 = vmul.f32 %v3704_v27, %v6295_v58  ;;  %v869_v29 = vmul.f32 %v3704_v27, %v6296_v28  ;;  %v870_v36 = vmul.f32 %v3704_v27, %v6297_v0  ;;  %3715 = vrsqrt.f32 %v788_v38 }
 0x1c0   : > { %1172 = vst [vmem:[#allocation2 + $0xb4] sm:$0xff] %v3339_v14  ;;  %1173 = vst [vmem:[#allocation2 + $0xbc] sm:$0xf] %v3340_v26  ;;  %3717 = vrsqrt.f32 %v787_v12 }
 0x1c1   : > { %v3706_v48 = vpop.eup %3705  ;;  %v3345_v8 = vpack.c.bf16 %v869_v29, %v868_v40  ;;  %v3346_v63 = vpack.c.bf16 %v870_v36, %v870_v36 }
 0x1c2   : > { %v3708_v24 = vpop.eup %3707  ;;  %v865_v42 = vmul.f32 %v3706_v48, %v4909_v55  ;;  %v866_v41 = vmul.f32 %v3706_v48, %v4916_v35  ;;  %v867_v30 = vmul.f32 %v3706_v48, %v4921_v50 }
 0x1c3   : > { %1178 = vst [vmem:[#allocation2 + $0xd8] sm:$0xff] %v3345_v8  ;;  %1179 = vst [vmem:[#allocation2 + $0xe0] sm:$0xf] %v3346_v63  ;;  %v874_v6 = vmul.f32 %v3708_v24, %v4928_v19  ;;  %v875_v1 = vmul.f32 %v3708_v24, %v4931_v21  ;;  %v876_v5 = vmul.f32 %v3708_v24, %v4934_v43  ;;  %v6298_v21 = vld [vmem:[#allocation22_spill] sm:$0xff] }
 0x1c4   : > { %v3343_v4 = vpack.c.bf16 %v866_v41, %v865_v42  ;;  %v3344_v13 = vpack.c.bf16 %v867_v30, %v867_v30 }
 0x1c5   : > { %v3710_v46 = vpop.eup %3709  ;;  %v3349_v20 = vpack.c.bf16 %v875_v1, %v874_v6  ;;  %v3350_v22 = vpack.c.bf16 %v876_v5, %v876_v5 }
 0x1c6   : > { %v3712_v16 = vpop.eup %3711  ;;  %1176 = vst [vmem:[#allocation2 + $0xcc] sm:$0xff] %v3343_v4  ;;  %1177 = vst [vmem:[#allocation2 + $0xd4] sm:$0xf] %v3344_v13  ;;  %v871_v55 = vmul.f32 %v3710_v46, %v4937_v33  ;;  %v872_v35 = vmul.f32 %v3710_v46, %v4946_v60  ;;  %v873_v50 = vmul.f32 %v3710_v46, %v4953_v51  ;;  %v6299_v33 = vld [vmem:[#allocation23_spill] sm:$0xff] }
 0x1c7   : > { %1182 = vst [vmem:[#allocation2 + $0xf0] sm:$0xff] %v3349_v20  ;;  %1183 = vst [vmem:[#allocation2 + $0xf8] sm:$0xf] %v3350_v22  ;;  %v880_v19 = vmul.f32 %v3712_v16, %v4956_v34  ;;  %v881_v43 = vmul.f32 %v3712_v16, %v6298_v21  ;;  %v882_v62 = vmul.f32 %v3712_v16, %v4966_v61  ;;  %v6300_v60 = vld [vmem:[#allocation27_spill] sm:$0xff]  ;;  %v6301_v61 = vld [vmem:[#allocation44_spill] sm:$0xff] }
 0x1c8   : > { %v3347_v44 = vpack.c.bf16 %v872_v35, %v871_v55  ;;  %v3348_v45 = vpack.c.bf16 %v873_v50, %v873_v50 }
 0x1c9   : > { %v3714_v52 = vpop.eup %3713  ;;  %v3353_v37 = vpack.c.bf16 %v881_v43, %v880_v19  ;;  %v3354_v32 = vpack.c.bf16 %v882_v62, %v882_v62 }
 0x1ca   : > { %1180 = vst [vmem:[#allocation2 + $0xe4] sm:$0xff] %v3347_v44  ;;  %1181 = vst [vmem:[#allocation2 + $0xec] sm:$0xf] %v3348_v45  ;;  %v877_v56 = vmul.f32 %v3714_v52, %v6299_v33  ;;  %v878_v49 = vmul.f32 %v3714_v52, %v6300_v60  ;;  %v879_v51 = vmul.f32 %v3714_v52, %v4983_v31 }
 0x1cb   : > { %1186 = vst [vmem:[#allocation2 + $0x108] sm:$0xff] %v3353_v37  ;;  %1187 = vst [vmem:[#allocation2 + $0x110] sm:$0xf] %v3354_v32 }
 0x1cc   : > { %v3716_v34 = vpop.eup %3715  ;;  %v3351_v3 = vpack.c.bf16 %v878_v49, %v877_v56  ;;  %v3352_v47 = vpack.c.bf16 %v879_v51, %v879_v51 }
 0x1cd   : > { %v3718_v57 = vpop.eup %3717  ;;  %v886_v7 = vmul.f32 %v3716_v34, %v6301_v61  ;;  %v887_v18 = vmul.f32 %v3716_v34, %v6302_v15  ;;  %v888_v54 = vmul.f32 %v3716_v34, %v4717_v25 }
 0x1ce   : > { %1184 = vst [vmem:[#allocation2 + $0xfc] sm:$0xff] %v3351_v3  ;;  %1185 = vst [vmem:[#allocation2 + $0x104] sm:$0xf] %v3352_v47  ;;  %v883_v39 = vmul.f32 %v3718_v57, %v6303_v53  ;;  %v884_v10 = vmul.f32 %v3718_v57, %v6304_v9  ;;  %v885_v31 = vmul.f32 %v3718_v57, %v6305_v59 }
 0x1cf   : > { %v3357_v23 = vpack.c.bf16 %v887_v18, %v886_v7  ;;  %v3358_v2 = vpack.c.bf16 %v888_v54, %v888_v54 }
 0x1d0   : > { %v3355_v17 = vpack.c.bf16 %v884_v10, %v883_v39  ;;  %v3356_v11 = vpack.c.bf16 %v885_v31, %v885_v31 }
 0x1d1   : > { %1190 = vst [vmem:[#allocation2 + $0x120] sm:$0x33] %v3357_v23  ;;  %1191 = vst [vmem:[#allocation2 + $0x128] sm:$0x3] %v3358_v2 }
 0x1d2   : > { %1188 = vst [vmem:[#allocation2 + $0x114] sm:$0xff] %v3355_v17  ;;  %1189 = vst [vmem:[#allocation2 + $0x11c] sm:$0xf] %v3356_v11 }
 0x1d3 PF: > { %v3719_v25 = vld [vmem:[%s4402_s27 + $0xac] ss:$12 sps:$4 sm:$0xff]   ;;  %v4208_v12 = vmov 0   ;;  %v3723_v27 = vld [vmem:[%s4402_s27 + $0xa8] ss:$12 sps:$4 sm:$0xff]   ;;  %vm4210_vm1 = vmmov 0  }
 0x1d4   : > { %v3721_v38 = vld [vmem:[%s4402_s27 + $0x22c] ss:$12 sps:$4 sm:$0xff]   ;;  %2135 = vmatprep.mubr.bf16.mxu1 %v4208_v12  ;;  %1942 = vmatprep.subr.bf16.mxu0 %v3719_v25  ;;  %v3724_v14 = vld [vmem:[%s4402_s27 + $0x228] ss:$12 sps:$4 sm:$0xff]   ;;  %v3729_v40 = vld [vmem:[%s4402_s27 + $0x90] ss:$12 sps:$4 sm:$0xff]  }
 0x1d5   : > { %2103 = vmatprep.subr.bf16.mxu1 %v3721_v38  ;;  %v3725_v26 = vld [vmem:[%s4402_s27 + $0x94] ss:$12 sps:$4 sm:$0xff]   ;;  %1943 = vmatpush1.bf16.msra.mxu0 %v3723_v27  ;;  %v3730_v28 = vld [vmem:[%s4402_s27 + $0x210] ss:$12 sps:$4 sm:$0xff]   ;;  %v3735_v36 = vld [vmem:[%s4402_s27 + $0x78] ss:$12 sps:$4 sm:$0xff]  }
 0x1d6   : > { %2104 = vmatpush1.bf16.msra.mxu1 %v3724_v14  ;;  %v3727_v58 = vld [vmem:[%s4402_s27 + $0x214] ss:$12 sps:$4 sm:$0xff]   ;;  %1944 = vmatprep.subr.bf16.mxu0 %v3725_v26  ;;  %v3731_v29 = vld [vmem:[%s4402_s27 + $0x7c] ss:$12 sps:$4 sm:$0xff]   ;;  %v3736_v48 = vld [vmem:[%s4402_s27 + $0x1f8] ss:$12 sps:$4 sm:$0xff]  }
 0x1d7   : > { %2105 = vmatprep.subr.bf16.mxu1 %v3727_v58  ;;  %v3733_v0 = vld [vmem:[%s4402_s27 + $0x1fc] ss:$12 sps:$4 sm:$0xff]   ;;  %v3737_v8 = vld [vmem:[%s4402_s27 + $0x64] ss:$12 sps:$4 sm:$0xff]   ;;  %v3741_v24 = vld [vmem:[%s4402_s27 + $0x60] ss:$12 sps:$4 sm:$0xff]  }
 0x1d8   : > { %v3739_v63 = vld [vmem:[%s4402_s27 + $0x1e4] ss:$12 sps:$4 sm:$0xff]   ;;  %v3742_v42 = vld [vmem:[%s4402_s27 + $0x1e0] ss:$12 sps:$4 sm:$0xff]   ;;  %v3747_v6 = vld [vmem:[%s4402_s27 + $0x48] ss:$12 sps:$4 sm:$0xff]  }
 0x1d9   : > { %1945 = vmatpush1.bf16.msra.mxu0 %v3729_v40  ;;  %v3743_v41 = vld [vmem:[%s4402_s27 + $0x4c] ss:$12 sps:$4 sm:$0xff]   ;;  %v3748_v1 = vld [vmem:[%s4402_s27 + $0x1c8] ss:$12 sps:$4 sm:$0xff]   ;;  %v3753_v13 = vld [vmem:[%s4402_s27 + $0x30] ss:$12 sps:$4 sm:$0xff]  }
 0x1da   : > { %2106 = vmatpush1.bf16.msra.mxu1 %v3730_v28  ;;  %1946 = vmatprep.subr.bf16.mxu0 %v3731_v29  ;;  %v3745_v30 = vld [vmem:[%s4402_s27 + $0x1cc] ss:$12 sps:$4 sm:$0xff]   ;;  %v3749_v5 = vld [vmem:[%s4402_s27 + $0x34] ss:$12 sps:$4 sm:$0xff]   ;;  %v3754_v46 = vld [vmem:[%s4402_s27 + $0x1b0] ss:$12 sps:$4 sm:$0xff]  }
 0x1db   : > { %2107 = vmatprep.subr.bf16.mxu1 %v3733_v0  ;;  %v3751_v4 = vld [vmem:[%s4402_s27 + $0x1b4] ss:$12 sps:$4 sm:$0xff]   ;;  %v3755_v20 = vld [vmem:[%s4402_s27 + $0x1c] ss:$12 sps:$4 sm:$0xff]   ;;  %v3759_v16 = vld [vmem:[%s4402_s27 + $0x18] ss:$12 sps:$4 sm:$0xff]  }
 0x1dc   : > { %v3757_v22 = vld [vmem:[%s4402_s27 + $0x19c] ss:$12 sps:$4 sm:$0xff]   ;;  %v3760_v55 = vld [vmem:[%s4402_s27 + $0x198] ss:$12 sps:$4 sm:$0xff]   ;;  %v3765_v19 = vld [vmem:[%s4402_s27] ss:$12 sps:$4 sm:$0xff]  }
 0x1dd   : > { %1947 = vmatpush1.bf16.msra.mxu0 %v3735_v36  ;;  %v3761_v35 = vld [vmem:[%s4402_s27 + $0x4] ss:$12 sps:$4 sm:$0xff]   ;;  %v3766_v21 = vld [vmem:[%s4402_s27 + $0x180] ss:$12 sps:$4 sm:$0xff]   ;;  %v3770_v45 = vld [vmem:[%s4402_s27 + $0x168] ss:$12 sps:$4 sm:$0xff]  }
 0x1de   : > { %2108 = vmatpush1.bf16.msra.mxu1 %v3736_v48  ;;  %1948 = vmatprep.subr.bf16.mxu0 %v3737_v8  ;;  %v3763_v50 = vld [vmem:[%s4402_s27 + $0x184] ss:$12 sps:$4 sm:$0xff]   ;;  %v3767_v43 = vld [vmem:[%s4402_s27 + $0x16c] ss:$12 sps:$4 sm:$0xff]   ;;  %v3771_v37 = vld [vmem:[%s4402_s27 + $0x154] ss:$12 sps:$4 sm:$0xff]  }
 0x1df   : > { %2109 = vmatprep.subr.bf16.mxu1 %v3739_v63  ;;  %v3773_v62 = vld [vmem:[%s4402_s27 + $0x170] ss:$12 sps:$4 sm:$0xff]   ;;  %v3787_v32 = vld [vmem:[%s4402_s27 + $0x158] ss:$12 sps:$4 sm:$0xff]   ;;  %v3799_v34 = vld [vmem:[%s4402_s27 + $0x140] ss:$12 sps:$4 sm:$0xff]  }
 0x1e0   : > { %v5137_v44 = vld [vmem:[#allocation2 + $0x8] ss:$12 sps:$4 sm:$0xff]   ;;  %v3776_v60 = vld [vmem:[%s4402_s27 + $0x13c] ss:$12 sps:$4 sm:$0xff]   ;;  %v5153_v47 = vld [vmem:[#allocation2 + $0x4] ss:$12 sps:$4 sm:$0xff]  }
 0x1e1   : > { %1949 = vmatpush1.bf16.msra.mxu0 %v3741_v24  ;;  %v3775_v52 = vld [vmem:[%s4402_s27 + $0xb0] ss:$12 sps:$4 sm:$0xff]   ;;  %v3788_v56 = vld [vmem:[%s4402_s27 + $0x98] ss:$12 sps:$4 sm:$0xff]   ;;  %v3803_v57 = vld [vmem:[%s4402_s27 + $0x80] ss:$12 sps:$4 sm:$0xff]   ;;  %1974 = vmatprep.mubr.bf16.mxu0 %v5153_v47 }
 0x1e2   : > { %2110 = vmatpush1.bf16.msra.mxu1 %v3742_v42  ;;  %1950 = vmatprep.subr.bf16.mxu0 %v3743_v41  ;;  %v3774_v33 = vld [vmem:[%s4402_s27 + $0x150] ss:$12 sps:$4 sm:$0xff]   ;;  %v3779_v51 = vld [vmem:[%s4402_s27 + $0x138] ss:$12 sps:$4 sm:$0xff]   ;;  %v3782_v61 = vld [vmem:[%s4402_s27 + $0x120] ss:$12 sps:$4 sm:$0xff]  }
 0x1e3   : > { %2111 = vmatprep.subr.bf16.mxu1 %v3745_v30  ;;  %v5148_v49 = vld [vmem:[#allocation2 + $0x20] ss:$12 sps:$4 sm:$0xff]   ;;  %v3780_v3 = vld [vmem:[%s4402_s27 + $0x124] ss:$12 sps:$4 sm:$0xff]   ;;  %v3783_v7 = vld [vmem:[%s4402_s27 + $0x10c] ss:$12 sps:$4 sm:$0xff]  }
 0x1e4   : > { %v5161_v15 = vld [vmem:[#allocation2 + $0x38] ss:$12 sps:$4 sm:$0xff]   ;;  %v3791_v9 = vld [vmem:[%s4402_s27 + $0xf0] ss:$12 sps:$4 sm:$0xff]   ;;  %v5171_v59 = vld [vmem:[#allocation2 + $0x50] ss:$12 sps:$4 sm:$0xff]  }
 0x1e5   : > { %1951 = vmatpush1.bf16.msra.mxu0 %v3747_v6  ;;  %v3786_v18 = vld [vmem:[%s4402_s27 + $0x108] ss:$12 sps:$4 sm:$0xff]   ;;  %v3795_v31 = vld [vmem:[%s4402_s27 + $0xd8] ss:$12 sps:$4 sm:$0xff]   ;;  %v3821_v2 = vld [vmem:[%s4402_s27 + $0x110] ss:$12 sps:$4 sm:$0xff]  }
 0x1e6   : > { %2112 = vmatpush1.bf16.msra.mxu1 %v3748_v1  ;;  %1952 = vmatprep.subr.bf16.mxu0 %v3749_v5  ;;  %v3789_v54 = vld [vmem:[%s4402_s27 + $0xf4] ss:$12 sps:$4 sm:$0xff]   ;;  %v3792_v10 = vld [vmem:[%s4402_s27 + $0xdc] ss:$12 sps:$4 sm:$0xff]   ;;  %v3796_v23 = vld [vmem:[%s4402_s27 + $0xc4] ss:$12 sps:$4 sm:$0xff]  }
 0x1e7   : > { %2113 = vmatprep.subr.bf16.mxu1 %v3751_v4  ;;  %v3810_v53 = vld [vmem:[%s4402_s27 + $0x128] ss:$12 sps:$4 sm:$0xff]   ;;  %v3822_v17 = vld [vmem:[%s4402_s27 + $0x50] ss:$12 sps:$4 sm:$0xff]   ;;  %v3798_v11 = vld [vmem:[%s4402_s27 + $0xc0] ss:$12 sps:$4 sm:$0xff]  }
 0x1e8   : > { %v3811_v39 = vld [vmem:[%s4402_s27 + $0x68] ss:$12 sps:$4 sm:$0xff]   ;;  %v3828_v38 = vld [vmem:[%s4402_s27 + $0xf8] ss:$12 sps:$4 sm:$0xff]   ;;  %v5187_v26 = vld [vmem:[%s4402_s27 + $0x230] ss:$12 sps:$4 sm:$0xff]  }
 0x1e9   : > { %1953 = vmatpush1.bf16.msra.mxu0 %v3753_v13  ;;  %v5180_v25 = vld [vmem:[#allocation2] ss:$12 sps:$4 sm:$0xff]   ;;  %v3829_v27 = vld [vmem:[%s4402_s27 + $0x38] ss:$12 sps:$4 sm:$0xff]   ;;  %v4209_v40 = vmov 0.0   ;;  %s3303_s6 = sshll.u32 %s4186_s16, 1 }
 0x1ea   : > { %2114 = vmatpush1.bf16.msra.mxu1 %v3754_v46  ;;  %1954 = vmatprep.subr.bf16.mxu0 %v3755_v20  ;;  %v5184_v14 = vld [vmem:[#allocation2 + $0x68] ss:$12 sps:$4 sm:$0xff]   ;;  %v5200_v29 = vld [vmem:[#allocation2 + $0x18] ss:$12 sps:$4 sm:$0xff]   ;;  %v5205_v48 = vld [vmem:[#allocation2 + $0x80] ss:$12 sps:$4 sm:$0xff]   ;;  %s2995_s9 = sadd.s32 %s4182_s15, %s3303_s6 }
 0x1eb   : > { %2115 = vmatprep.subr.bf16.mxu1 %v3757_v22  ;;  %v5189_v58 = vld [vmem:[#allocation2 + $0x1c] ss:$12 sps:$4 sm:$0xff]   ;;  %v3839_v0 = vld [vmem:[%s4402_s27 + $0xe0] ss:$12 sps:$4 sm:$0xff]   ;;  %v5208_v8 = vld [vmem:[#allocation2 + $0x34] ss:$12 sps:$4 sm:$0xff]  }
 0x1ec   : > { %v5197_v28 = vld [vmem:[%s4402_s27 + $0x218] ss:$12 sps:$4 sm:$0xff]   ;;  %v3840_v36 = vld [vmem:[%s4402_s27 + $0x20] ss:$12 sps:$4 sm:$0xff]   ;;  %v3848_v24 = vld [vmem:[%s4402_s27 + $0xc8] ss:$12 sps:$4 sm:$0xff]  }
 0x1ed   : > { %1955 = vmatpush1.bf16.msra.mxu0 %v3759_v16  ;;  %v5212_v63 = vld [vmem:[%s4402_s27 + $0x200] ss:$12 sps:$4 sm:$0xff]   ;;  %v5220_v42 = vld [vmem:[%s4402_s27 + $0x1e8] ss:$12 sps:$4 sm:$0xff]   ;;  %v5234_v5 = vld [vmem:[%s4402_s27 + $0x1d0] ss:$12 sps:$4 sm:$0xff]  }
 0x1ee   : > { %2116 = vmatpush1.bf16.msra.mxu1 %v3760_v55  ;;  %1956 = vmatprep.subr.bf16.mxu0 %v3761_v35  ;;  %v3851_v41 = vld [vmem:[%s4402_s27 + $0x8] ss:$12 sps:$4 sm:$0xff]   ;;  %v5225_v30 = vld [vmem:[#allocation2 + $0x30] ss:$12 sps:$4 sm:$0xff]   ;;  %v5246_v13 = vld [vmem:[#allocation2 + $0x48] ss:$12 sps:$4 sm:$0xff]  }
 0x1ef   : > { %2117 = vmatprep.subr.bf16.mxu1 %v3763_v50  ;;  %v5227_v6 = vld [vmem:[#allocation2 + $0x98] ss:$12 sps:$4 sm:$0xff]   ;;  %v5243_v4 = vld [vmem:[%s4402_s27 + $0x1b8] ss:$12 sps:$4 sm:$0xff]   ;;  %v5266_v55 = vld [vmem:[#allocation2 + $0x60] ss:$12 sps:$4 sm:$0xff]  }
 0x1f0   : > { %v5229_v1 = vld [vmem:[#allocation2 + $0x4c] ss:$12 sps:$4 sm:$0xff]   ;;  %v5248_v46 = vld [vmem:[#allocation2 + $0xb0] ss:$12 sps:$4 sm:$0xff]   ;;  %v5268_v35 = vld [vmem:[#allocation2 + $0xc8] ss:$12 sps:$4 sm:$0xff]  }
 0x1f1   : > { %1957 = vmatpush1.bf16.msra.mxu0 %v3765_v19  ;;  %v5250_v20 = vld [vmem:[#allocation2 + $0x64] ss:$12 sps:$4 sm:$0xff]   ;;  %v5263_v16 = vld [vmem:[%s4402_s27 + $0x188] ss:$12 sps:$4 sm:$0xff]   ;;  %v5270_v50 = vld [vmem:[#allocation2 + $0x7c] ss:$12 sps:$4 sm:$0xff]  }
 0x1f2   : > { %2118 = vmatpush1.bf16.msra.mxu1 %v3766_v21  ;;  %1958 = vmatprep.subr.bf16.mxu0 %v3767_v43  ;;  %v5254_v22 = vld [vmem:[%s4402_s27 + $0x1a0] ss:$12 sps:$4 sm:$0xff]   ;;  %v5279_v21 = vld [vmem:[#allocation2 + $0xe0] ss:$12 sps:$4 sm:$0xff]   ;;  %s3002_s4 = sshll.u32 %s4412_s29, 4  ;;  %s3359_s16 = smul.u32 384, %s2995_s9  ;;  %s6049_s4 = int_to_ptr.vmem [resolvable:$true] %s3002_s4 }
 0x1f3   : > { %3360 = vmatprep.subr.bf16.mxu1 %v3773_v62  ;;  %v5277_v19 = vld [vmem:[#allocation2 + $0x78] ss:$12 sps:$4 sm:$0xff]   ;;  %v5281_v43 = vld [vmem:[#allocation2 + $0x94] ss:$12 sps:$4 sm:$0xff]   ;;  %v5287_v62 = vld [vmem:[#allocation2 + $0x90] ss:$12 sps:$4 sm:$0xff]  }
 0x1f4   : > { %s6055_s21 = scalar_lea.hbm %s6112_s3, %s3359_s16  ;;  %s2987_s5 = scalar_lea.sflag [#allocation5], %s4399_s26 }
 0x1f5   : > { %2136 = vmatmul.mubr.bf16.vlgmr.msra.gmra.mxu1 %v5137_v44  ;;  %1959 = vmatpush2.bf16.msra.mxu0 %v3770_v45  ;;  %v5289_v45 = vld [vmem:[#allocation2 + $0xf8] ss:$12 sps:$4 sm:$0xff]   ;;  %s4098_s7 = scalar_lea.vmem %s6049_s4, 9600  ;;  %p6306_p0 = scmp.ne.s32.totalorder %s6183_s8, 0 }
 0x1f6   : > { %3361 = vmatpush3.bf16.msra.mxu1 %v3775_v52  ;;  %1960 = vmatprep.subr.bf16.mxu0 %v3771_v37  ;;  %v5291_v52 = vld [vmem:[#allocation2 + $0xac] ss:$12 sps:$4 sm:$0xff]   ;;  %v5297_v37 = vld [vmem:[#allocation2 + $0xa8] ss:$12 sps:$4 sm:$0xff]   ;;  %p4099_p9 = scmp.ne.s32.totalorder %s6049_s4, %s4098_s7  ;;  %s4211_s24 = smov [#allocation9]  }
 0x1f7   : > { %2145 = vmatprep.mubr.bf16.mxu1 %v4208_v12  ;;  %3362 = vmatprep.subr.bf16.mxu1 %v3787_v32  ;;  %v5299_v32 = vld [vmem:[#allocation2 + $0x110] ss:$12 sps:$4 sm:$0xff]   ;;  %s4102_s30 = sshll.u32 %s4211_s24, 4  ;;  %s4103_s30 = int_to_ptr.vmem [resolvable:$false] %s4102_s30 }
 0x1f8   : > { %p4100_p1 = pnand %p4099_p9, %p6306_p0  ;;  %s4104_s22 = scalar_lea.vmem %s4103_s30, 19200 }
 0x1f9   : > { %1961 = vmatpush2.bf16.msra.mxu0 %v3774_v33  ;;  %v5301_v33 = vld [vmem:[#allocation2 + $0xc4] ss:$12 sps:$4 sm:$0xff]   ;;  %p4105_p2 = scmp.lt.s32.totalorder %s6049_s4, %s4103_s30  ;;  %p4106_p3 = scmp.lt.s32.totalorder %s4104_s22, %s4098_s7 }
 0x1fa   : > { %3363 = vmatpush3.bf16.msra.mxu1 %v3788_v56  ;;  %1962 = vmatprep.subr.bf16.mxu0 %v3776_v60  ;;  %v5307_v56 = vld [vmem:[#allocation2 + $0xc0] ss:$12 sps:$4 sm:$0xff]   ;;  %v5309_v60 = vld [vmem:[#allocation2 + $0x128] ss:$0 sps:$4 sm:$0x33]   ;;  %p4101_p13 = pneg %p4100_p1 }
 0x1fb   : > { %3364 = vmatprep.subr.bf16.mxu1 %v3799_v34  ;;  %v3855_v34 = vld [vmem:[#allocation2 + $0xd8] ss:$12 sps:$4 sm:$0xff]   ;;  %p4107_p5 = por %p4106_p3, %p4105_p2 }
 0x1fd   : > { %2146 = vmatmul.mubr.bf16.gmra.mxu1 %v5148_v49  ;;  %1963 = vmatpush2.bf16.msra.mxu0 %v3779_v51  ;;  %v3853_v51 = vld [vmem:[#allocation2 + $0xdc] ss:$12 sps:$4 sm:$0xff]   ;;  %p4108_p8 = pnand %p4107_p5, %p4101_p13 }
 0x1fe   : > { %2155 = vmatprep.mubr.bf16.mxu1 %v4208_v12  ;;  %1964 = vmatprep.subr.bf16.mxu0 %v3780_v3  ;;  %v3856_v3 = vld [vmem:[#allocation2 + $0xf4] ss:$12 sps:$4 sm:$0xff]  }
 0x1ff   : > { %3365 = vmatpush3.bf16.msra.mxu1 %v3803_v57  ;;  %v3860_v57 = vld [vmem:[#allocation2 + $0x10c] ss:$12 sps:$4 sm:$0xff]  }
 0x200   : > { %3366 = vmatprep.subr.bf16.mxu1 %v3810_v53 }
 0x201   : > { %1965 = vmatpush2.bf16.msra.mxu0 %v3782_v61  ;;  %v3862_v61 = vld [vmem:[#allocation2 + $0x108] ss:$12 sps:$4 sm:$0xff]  }
 0x202   : > { %1966 = vmatprep.subr.bf16.mxu0 %v3783_v7 }
 0x203   : > { %3367 = vmatpush3.bf16.msra.mxu1 %v3811_v39 }
 0x204   : > { %3368 = vmatprep.subr.bf16.mxu1 %v3821_v2 }
 0x205   : > { %2156 = vmatmul.mubr.bf16.gmra.mxu1 %v5161_v15  ;;  %1967 = vmatpush2.bf16.msra.mxu0 %v3786_v18 }
 0x206   : > { %2165 = vmatprep.mubr.bf16.mxu1 %v4208_v12  ;;  %1968 = vmatprep.subr.bf16.mxu0 %v3789_v54 }
 0x207   : > { %3369 = vmatpush3.bf16.msra.mxu1 %v3822_v17 }
 0x208   : > { %3370 = vmatprep.subr.bf16.mxu1 %v3828_v38 }
 0x209   : > { %1969 = vmatpush2.bf16.msra.mxu0 %v3791_v9 }
 0x20a   : > { %1970 = vmatprep.subr.bf16.mxu0 %v3792_v10 }
 0x20b   : > { %3371 = vmatpush3.bf16.msra.mxu1 %v3829_v27 }
 0x20c   : > { %3372 = vmatprep.subr.bf16.mxu1 %v3839_v0 }
 0x20d   : > { %2166 = vmatmul.mubr.bf16.gmra.mxu1 %v5171_v59  ;;  %1971 = vmatpush2.bf16.msra.mxu0 %v3795_v31  ;;  %v1340_v31 = vlaneseq }
 0x20e   : > { %2175 = vmatprep.mubr.bf16.mxu1 %v4208_v12  ;;  %1972 = vmatprep.subr.bf16.mxu0 %v3796_v23 }
 0x20f   : > { %3373 = vmatpush3.bf16.msra.mxu1 %v3840_v36  ;;  %v5393_v17 = vshrl.u32 %v1340_v31, 7 }
 0x210   : > { %3374 = vmatprep.subr.bf16.mxu1 %v3848_v24 }
 0x211   : > { %1973 = vmatpush2.bf16.msra.mxu0 %v3798_v11  ;;  %v1342_v38 = vsub.s32 0, %v5393_v17 }
 0x212   : > { %3475 = vmatprep.subr.bf16.mxu0 %v4209_v40 }
 0x213   : > { %3375 = vmatpush3.bf16.msra.mxu1 %v3851_v41 }
 0x214   : > { %1975 = vmatmul.mubr.bf16.vlgmr.msra.gmra.mxu0 %v5180_v25  ;;  %3543 = vmatprep.subr.bf16.mxu1 %v4209_v40 }
 0x215   : > { %2176 = vmatmul.mubr.bf16.gmra.mxu1 %v5184_v14  ;;  %3476 = vmatpush3.bf16.msra.mxu0 %v5187_v26 }
 0x216   : > { %1984 = vmatprep.mubr.bf16.mxu0 %v5189_v58  ;;  %2185 = vmatprep.mubr.bf16.mxu1 %v4208_v12 }
 0x217   : > { %3477 = vmatprep.subr.bf16.mxu0 %v4209_v40 }
 0x219   : > { %3478 = vmatpush3.bf16.msra.mxu0 %v5197_v28 }
 0x21a   : > { %3479 = vmatprep.subr.bf16.mxu0 %v4209_v40 }
 0x21c   : > { %1985 = vmatmul.mubr.bf16.gmra.mxu0 %v5200_v29 }
 0x21d   : > { %2186 = vmatmul.mubr.bf16.gmra.mxu1 %v5205_v48  ;;  %1994 = vmatprep.mubr.bf16.mxu0 %v5208_v8 }
 0x21e   : > { %2195 = vmatprep.mubr.bf16.mxu1 %v4208_v12  ;;  %3480 = vmatpush3.bf16.msra.mxu0 %v5212_v63 }
 0x21f   : > { %3481 = vmatprep.subr.bf16.mxu0 %v4209_v40 }
 0x222   : > { %3482 = vmatpush3.bf16.msra.mxu0 %v5220_v42 }
 0x223   : > { %3483 = vmatprep.subr.bf16.mxu0 %v4209_v40 }
 0x224   : > { %1995 = vmatmul.mubr.bf16.gmra.mxu0 %v5225_v30 }
 0x225   : > { %2196 = vmatmul.mubr.bf16.gmra.mxu1 %v5227_v6  ;;  %2004 = vmatprep.mubr.bf16.mxu0 %v5229_v1 }
 0x226   : > { %2205 = vmatprep.mubr.bf16.mxu1 %v4208_v12  ;;  %3484 = vmatpush3.bf16.msra.mxu0 %v5234_v5 }
 0x227   : > { %3485 = vmatprep.subr.bf16.mxu0 %v4209_v40 }
 0x22a   : > { %3486 = vmatpush3.bf16.msra.mxu0 %v5243_v4 }
 0x22b   : > { %3487 = vmatprep.subr.bf16.mxu0 %v4209_v40 }
 0x22c   : > { %2005 = vmatmul.mubr.bf16.gmra.mxu0 %v5246_v13 }
 0x22d   : > { %2206 = vmatmul.mubr.bf16.gmra.mxu1 %v5248_v46  ;;  %2014 = vmatprep.mubr.bf16.mxu0 %v5250_v20 }
 0x22e   : > { %2215 = vmatprep.mubr.bf16.mxu1 %v4208_v12  ;;  %3488 = vmatpush3.bf16.msra.mxu0 %v5254_v22 }
 0x22f   : > { %3489 = vmatprep.subr.bf16.mxu0 %v4209_v40 }
 0x232   : > { %3490 = vmatpush3.bf16.msra.mxu0 %v5263_v16 }
 0x234   : > { %2015 = vmatmul.mubr.bf16.gmra.mxu0 %v5266_v55 }
 0x235   : > { %2216 = vmatmul.mubr.bf16.gmra.mxu1 %v5268_v35  ;;  %2024 = vmatprep.mubr.bf16.mxu0 %v5270_v50 }
 0x236   : > { %2225 = vmatprep.mubr.bf16.mxu1 %v4208_v12 }
 0x23c   : > { %2025 = vmatmul.mubr.bf16.gmra.mxu0 %v5277_v19 }
 0x23d   : > { %2226 = vmatmul.mubr.bf16.gmra.mxu1 %v5279_v21  ;;  %2034 = vmatprep.mubr.bf16.mxu0 %v5281_v43 }
 0x23e   : > { %2235 = vmatprep.mubr.bf16.mxu1 %v4208_v12 }
 0x244   : > { %2035 = vmatmul.mubr.bf16.gmra.mxu0 %v5287_v62 }
 0x245   : > { %2236 = vmatmul.mubr.bf16.gmra.mxu1 %v5289_v45  ;;  %2044 = vmatprep.mubr.bf16.mxu0 %v5291_v52 }
 0x246   : > { %2245 = vmatprep.mubr.bf16.mxu1 %v4208_v12 }
 0x24c   : > { %2045 = vmatmul.mubr.bf16.gmra.mxu0 %v5297_v37 }
 0x24d   : > { %2246 = vmatmul.mubr.bf16.gmra.mxu1 %v5299_v32  ;;  %2054 = vmatprep.mubr.bf16.mxu0 %v5301_v33 }
 0x24e   : > { %2255 = vmatprep.mubr.bf16.mxu1 %v4208_v12  ;;  %v3859_v12 = vld [vmem:[#allocation2 + $0xf0] ss:$12 sps:$4 sm:$0xff]  }
 0x254   : > { %2055 = vmatmul.mubr.bf16.gmra.mxu0 %v5307_v56 }
 0x255   : > { %2256 = vmatmul.mubr.bf16.gmra.mxu1 %v5309_v60  ;;  %2064 = vmatprep.mubr.bf16.mxu0 %v3853_v51 }
 0x256   : > { %2296 = vmatprep.mubr.bf16.mxu1 %v5153_v47  ;;  %v1240_v47 = vld [vmem:[#allocation2 + $0x120] sm:$0x33] }
 0x257   : > { %v3229_v7 = vcombine.high %v1240_v47, %v1240_v47  ;;  %v3228_v18 = vcombine.low %v1240_v47, %v1240_v47 }
 0x25c   : > { %2065 = vmatmul.mubr.bf16.gmra.mxu0 %v3855_v34 }
 0x25d   : > { %2297 = vmatmul.mubr.bf16.vlgmr.msra.gmra.mxu1 %v5180_v25  ;;  %2074 = vmatprep.mubr.bf16.mxu0 %v3856_v3 }
 0x25e   : > { %3551 = vmatpush3.bf16.msra.mxu1 %v5187_v26  ;;  %2304 = vmatprep.mubr.bf16.mxu1 %v5189_v58  ;;  %v1346_v26 = vsub.s32 1, %v5393_v17 }
 0x25f   : > { %3544 = vmatprep.subr.bf16.mxu1 %v4209_v40 }
 0x262   : > { %3552 = vmatpush3.bf16.msra.mxu1 %v5197_v28 }
 0x263   : > { %3545 = vmatprep.subr.bf16.mxu1 %v4209_v40 }
 0x264   : > { %2075 = vmatmul.mubr.bf16.gmra.mxu0 %v3859_v12 }
 0x265   : > { %2305 = vmatmul.mubr.bf16.gmra.mxu1 %v5200_v29  ;;  %2084 = vmatprep.mubr.bf16.mxu0 %v3860_v57 }
 0x266   : > { %2312 = vmatprep.mubr.bf16.mxu1 %v5208_v8  ;;  %3553 = vmatpush3.bf16.msra.mxu1 %v5212_v63 }
 0x267   : > { %3546 = vmatprep.subr.bf16.mxu1 %v4209_v40 }
 0x26a   : > { %3554 = vmatpush3.bf16.msra.mxu1 %v5220_v42 }
 0x26b   : > { %3547 = vmatprep.subr.bf16.mxu1 %v4209_v40 }
 0x26c   : > { %2085 = vmatmul.mubr.bf16.gmra.mxu0 %v3862_v61 }
 0x26d   : > { %2313 = vmatmul.mubr.bf16.gmra.mxu1 %v5225_v30  ;;  %2094 = vmatprep.mubr.bf16.mxu0 %v3229_v7 }
 0x26e   : > { %2320 = vmatprep.mubr.bf16.mxu1 %v5229_v1  ;;  %3555 = vmatpush3.bf16.msra.mxu1 %v5234_v5 }
 0x26f   : > { %3548 = vmatprep.subr.bf16.mxu1 %v4209_v40 }
 0x272   : > { %3556 = vmatpush3.bf16.msra.mxu1 %v5243_v4 }
 0x273   : > { %3549 = vmatprep.subr.bf16.mxu1 %v4209_v40 }
 0x274   : > { %2095 = vmatmul.mubr.bf16.gmra.mxu0 %v3228_v18 }
 0x275   : > { %2321 = vmatmul.mubr.bf16.gmra.mxu1 %v5246_v13  ;;  %3491 = vmatprep.mubr.msk.bf16.mxu0 %vm4210_vm1, %v4209_v40 }
 0x276   : > { %2328 = vmatprep.mubr.bf16.mxu1 %v5250_v20  ;;  %3557 = vmatpush3.bf16.msra.mxu1 %v5254_v22 }
 0x277   : > { %3550 = vmatprep.subr.bf16.mxu1 %v4209_v40 }
 0x27a   : > { %3558 = vmatpush3.bf16.msra.mxu1 %v5263_v16 }
 0x27c   : > { %3492 = vmatmul.mubr.bf16.vlgmr.msra.gmra.mxu0 %v5137_v44 }
 0x27d   : > { %2329 = vmatmul.mubr.bf16.gmra.mxu1 %v5266_v55  ;;  %3495 = vmatprep.mubr.msk.bf16.mxu0 %vm4210_vm1, %v4209_v40 }
 0x27e   : > { %2336 = vmatprep.mubr.bf16.mxu1 %v5270_v50 }
 0x284   : > { %3496 = vmatmul.mubr.bf16.gmra.mxu0 %v5148_v49 }
 0x285   : > { %2337 = vmatmul.mubr.bf16.gmra.mxu1 %v5277_v19  ;;  %3499 = vmatprep.mubr.msk.bf16.mxu0 %vm4210_vm1, %v4209_v40 }
 0x286   : > { %2344 = vmatprep.mubr.bf16.mxu1 %v5281_v43 }
 0x28c   : > { %3500 = vmatmul.mubr.bf16.gmra.mxu0 %v5161_v15 }
 0x28d   : > { %2345 = vmatmul.mubr.bf16.gmra.mxu1 %v5287_v62  ;;  %3503 = vmatprep.mubr.msk.bf16.mxu0 %vm4210_vm1, %v4209_v40 }
 0x28e   : > { %2352 = vmatprep.mubr.bf16.mxu1 %v5291_v52 }
 0x294   : > { %3504 = vmatmul.mubr.bf16.gmra.mxu0 %v5171_v59 }
 0x295   : > { %2353 = vmatmul.mubr.bf16.gmra.mxu1 %v5297_v37  ;;  %3507 = vmatprep.mubr.msk.bf16.mxu0 %vm4210_vm1, %v4209_v40 }
 0x296   : > { %2360 = vmatprep.mubr.bf16.mxu1 %v5301_v33 }
 0x29c   : > { %3508 = vmatmul.mubr.bf16.gmra.mxu0 %v5184_v14  ;;  %v5405_v14 = vld [vmem:[%s4410_s28] sm:$0x7] }
 0x29d   : > { %2361 = vmatmul.mubr.bf16.gmra.mxu1 %v5307_v56  ;;  %3511 = vmatprep.mubr.msk.bf16.mxu0 %vm4210_vm1, %v4209_v40  ;;  %v5416_v29 = vrot.slane %v5405_v14, %v1346_v26 }
 0x29e   : > { %2368 = vmatprep.mubr.bf16.mxu1 %v3853_v51 }
 0x2a4   : > { %3512 = vmatmul.mubr.bf16.gmra.mxu0 %v5205_v48 }
 0x2a5   : > { %2369 = vmatmul.mubr.bf16.gmra.mxu1 %v3855_v34  ;;  %3515 = vmatprep.mubr.msk.bf16.mxu0 %vm4210_vm1, %v4209_v40 }
 0x2a6   : > { %2376 = vmatprep.mubr.bf16.mxu1 %v3856_v3 }
 0x2ac   : > { %3516 = vmatmul.mubr.bf16.gmra.mxu0 %v5227_v6 }
 0x2ad   : > { %2377 = vmatmul.mubr.bf16.gmra.mxu1 %v3859_v12  ;;  %3519 = vmatprep.mubr.msk.bf16.mxu0 %vm4210_vm1, %v4209_v40 }
 0x2ae   : > { %2384 = vmatprep.mubr.bf16.mxu1 %v3860_v57 }
 0x2b4   : > { %3520 = vmatmul.mubr.bf16.gmra.mxu0 %v5248_v46 }
 0x2b5   : > { %v2137_v44 = vpop.f32.mrf.mxu1  ;;  %2385 = vmatmul.mubr.bf16.gmra.mxu1 %v3862_v61  ;;  %3523 = vmatprep.mubr.msk.bf16.mxu0 %vm4210_vm1, %v4209_v40 }
 0x2b6   : > { %2392 = vmatprep.mubr.bf16.mxu1 %v3229_v7 }
 0x2b7   : > { %v2139_v49 = vpop.f32.mrf.mxu1 }
 0x2b9   : > { %v2141_v15 = vpop.f32.mrf.mxu1 }
 0x2bb   : > { %v2143_v54 = vpop.f32.mrf.mxu1 }
 0x2bc   : > { %3524 = vmatmul.mubr.bf16.gmra.mxu0 %v5268_v35 }
 0x2bd   : > { %v2147_v53 = vpop.f32.mrf.mxu1  ;;  %2393 = vmatmul.mubr.bf16.gmra.mxu1 %v3228_v18  ;;  %3527 = vmatprep.mubr.msk.bf16.mxu0 %vm4210_vm1, %v4209_v40 }
 0x2be   : > { %3535 = vmatprep.mubr.msk.bf16.mxu1 %vm4210_vm1, %v4209_v40 }
 0x2bf   : > { %v2149_v39 = vpop.f32.mrf.mxu1 }
 0x2c1   : > { %v5377_v9 = vpop.f32.mrf.mxu1 }
 0x2c3   : > { %v5379_v10 = vpop.f32.mrf.mxu1 }
 0x2c4   : > { %3528 = vmatmul.mubr.bf16.gmra.mxu0 %v5279_v21 }
 0x2c5   : > { %v5381_v59 = vpop.f32.mrf.mxu1  ;;  %3536 = vmatmul.mubr.bf16.vlgmr.msra.gmra.mxu1 %v5299_v32  ;;  %3531 = vmatprep.mubr.msk.bf16.mxu0 %vm4210_vm1, %v4209_v40 }
 0x2c6   : > { %3539 = vmatprep.mubr.msk.bf16.mxu1 %vm4210_vm1, %v4209_v40  ;;  %v5411_v40 = vrot.slane %v5405_v14, %v1342_v38 }
 0x2c7   : > { %v5389_v23 = vpop.f32.mrf.mxu1 }
 0x2c9   : > { %v5391_v2 = vpop.f32.mrf.mxu1 }
 0x2cb   : > { %v5395_v11 = vpop.f32.mrf.mxu1 }
 0x2cc   : > { %3532 = vmatmul.mubr.bf16.gmra.mxu0 %v5289_v45 }
 0x2cd   : > { %v5397_v25 = vpop.f32.mrf.mxu1  ;;  %3540 = vmatmul.mubr.bf16.gmra.mxu1 %v5309_v60 }
 0x2cf   : > { %v5402_v27 = vpop.f32.mrf.mxu1 }
 0x2d1   : > { %v5408_v58 = vpop.f32.mrf.mxu1 }
 0x2d3   : > { %v5413_v28 = vpop.f32.mrf.mxu1 }
 0x2d4   : > { %v1976_v0 = vpop.f32.mrf.mxu0 }
 0x2d5   : > { %v5418_v36 = vpop.f32.mrf.mxu1  ;;  %v1977_v48 = vadd.f32 %v1976_v0, %v5411_v40 }
 0x2d6   : > { %v1978_v8 = vpop.f32.mrf.mxu0 }
 0x2d7   : > { %v5421_v63 = vpop.f32.mrf.mxu1  ;;  %v2138_v24 = vadd.f32 %v2137_v44, %v1977_v48  ;;  %v1979_v42 = vadd.f32 %v1978_v8, %v5416_v29 }
 0x2d8   : > { %v1980_v41 = vpop.f32.mrf.mxu0 }
 0x2d9   : > { %v5424_v30 = vpop.f32.mrf.mxu1  ;;  %v2611_v6 = vmul.f32 0.70710677, %v2138_v24  ;;  %v2140_v1 = vadd.f32 %v2139_v49, %v1979_v42  ;;  %v1981_v5 = vadd.f32 %v1980_v41, %v5411_v40  ;;  %v2536_v26 = vmul.f32 0.5, %v2138_v24 }
 0x2da   : > { %v1982_v4 = vpop.f32.mrf.mxu0 }
 0x2db   : > { %v5427_v13 = vpop.f32.mrf.mxu1  ;;  %3866 = verf.f32 %v2611_v6  ;;  %v2612_v46 = vmul.f32 0.70710677, %v2140_v1  ;;  %v2142_v20 = vadd.f32 %v2141_v15, %v1981_v5  ;;  %v1983_v22 = vadd.f32 %v1982_v4, %v5416_v29 }
 0x2dc   : > { %v1986_v16 = vpop.f32.mrf.mxu0  ;;  %v2537_v5 = vmul.f32 0.5, %v2140_v1 }
 0x2dd   : > { %v5430_v55 = vpop.f32.mrf.mxu1  ;;  %3868 = verf.f32 %v2612_v46  ;;  %v2614_v35 = vmul.f32 0.70710677, %v2142_v20  ;;  %v1987_v50 = vadd.f32 %v1986_v16, %v5411_v40  ;;  %v5433_v19 = vadd.f32 %v2143_v54, %v1983_v22 }
 0x2de   : > { %v1988_v21 = vpop.f32.mrf.mxu0 }
 0x2df   : > { %v5435_v43 = vpop.f32.mrf.mxu1  ;;  %3870 = verf.f32 %v2614_v35  ;;  %v5437_v62 = vadd.f32 %v2147_v53, %v1987_v50  ;;  %v1989_v45 = vadd.f32 %v1988_v21, %v5416_v29  ;;  %v2615_v52 = vmul.f32 0.70710677, %v5433_v19 }
 0x2e0   : > { %v1990_v37 = vpop.f32.mrf.mxu0  ;;  %v2539_v21 = vmul.f32 0.5, %v2142_v20 }
 0x2e1   : > { %v5441_v32 = vpop.f32.mrf.mxu1  ;;  %v2617_v33 = vmul.f32 0.70710677, %v5437_v62  ;;  %v5444_v56 = vadd.f32 %v2149_v39, %v1989_v45  ;;  %v1991_v60 = vadd.f32 %v1990_v37, %v5411_v40  ;;  %3872 = verf.f32 %v2615_v52 }
 0x2e2   : > { %v1992_v51 = vpop.f32.mrf.mxu0 }
 0x2e3   : > { %v5447_v34 = vpop.f32.mrf.mxu1  ;;  %3874 = verf.f32 %v2617_v33  ;;  %v2618_v3 = vmul.f32 0.70710677, %v5444_v56  ;;  %v5451_v12 = vadd.f32 %v5377_v9, %v1991_v60  ;;  %v1993_v57 = vadd.f32 %v1992_v51, %v5416_v29 }
 0x2e4   : > { %v1996_v47 = vpop.f32.mrf.mxu0 }
 0x2e5   : > { %v5454_v61 = vpop.f32.mrf.mxu1  ;;  %3876 = verf.f32 %v2618_v3  ;;  %v2620_v7 = vmul.f32 0.70710677, %v5451_v12  ;;  %v1997_v18 = vadd.f32 %v1996_v47, %v5411_v40  ;;  %v5459_v44 = vadd.f32 %v5379_v10, %v1993_v57 }
 0x2e6   : > { %v1998_v49 = vpop.f32.mrf.mxu0  ;;  %v2540_v47 = vmul.f32 0.5, %v5433_v19 }
 0x2e7   : > { %v5461_v15 = vpop.f32.mrf.mxu1  ;;  %3878 = verf.f32 %v2620_v7  ;;  %v5464_v54 = vadd.f32 %v5381_v59, %v1997_v18  ;;  %v1999_v53 = vadd.f32 %v1998_v49, %v5416_v29  ;;  %v2621_v9 = vmul.f32 0.70710677, %v5459_v44 }
 0x2e8   : > { %v3867_v39 = vpop.eup %3866  ;;  %v2000_v31 = vpop.f32.mrf.mxu0 }
 0x2e9   : > { %v5468_v38 = vpop.f32.mrf.mxu1  ;;  %v2761_v0 = vadd.f32 1.0, %v3867_v39  ;;  %v2623_v10 = vmul.f32 0.70710677, %v5464_v54  ;;  %v5472_v48 = vadd.f32 %v5389_v23, %v1999_v53  ;;  %3880 = verf.f32 %v2621_v9 }
 0x2ea   : > { %v3869_v8 = vpop.eup %3868  ;;  %v2001_v59 = vadd.f32 %v2000_v31, %v5411_v40  ;;  %v2002_v42 = vpop.f32.mrf.mxu0  ;;  %v2542_v53 = vmul.f32 0.5, %v5437_v62 }
 0x2eb   : > { %v5475_v41 = vpop.f32.mrf.mxu1  ;;  %v2836_v6 = vmul.f32 %v2761_v0, %v2536_v26  ;;  %v2762_v4 = vadd.f32 1.0, %v3869_v8  ;;  %3882 = verf.f32 %v2623_v10  ;;  %v2624_v24 = vmul.f32 0.70710677, %v5472_v48 }
 0x2ec   : > { %v3871_v46 = vpop.eup %3870  ;;  %v5479_v22 = vadd.f32 %v5391_v2, %v2001_v59  ;;  %v2003_v23 = vadd.f32 %v2002_v42, %v5416_v29  ;;  %v2006_v16 = vpop.f32.mrf.mxu0  ;;  %v2543_v59 = vmul.f32 0.5, %v5444_v56 }
 0x2ed   : > { %v5482_v35 = vpop.f32.mrf.mxu1  ;;  %2911 = vst [vmem:[%s4412_s29] sm:$0xff] %v2836_v6  ;;  %v2837_v50 = vmul.f32 %v2762_v4, %v2537_v5  ;;  %v2764_v45 = vadd.f32 1.0, %v3871_v46  ;;  %v2007_v1 = vadd.f32 %v2006_v16, %v5411_v40  ;;  %3884 = verf.f32 %v2624_v24 }
 0x2ee   : > { %v2626_v52 = vmul.f32 0.70710677, %v5479_v22  ;;  %v5488_v37 = vadd.f32 %v5395_v11, %v2003_v23  ;;  %v2008_v2 = vpop.f32.mrf.mxu0  ;;  %v3873_v60 = vpop.eup %3872  ;;  %v2545_v23 = vmul.f32 0.5, %v5451_v12 }
 0x2ef   : > { %v5490_v33 = vpop.f32.mrf.mxu1  ;;  %2912 = vst [vmem:[%s4412_s29 + $0x8] sm:$0xff] %v2837_v50  ;;  %v2839_v51 = vmul.f32 %v2764_v45, %v2539_v21  ;;  %v5494_v3 = vadd.f32 %v5397_v25, %v2007_v1  ;;  %v2009_v20 = vadd.f32 %v2008_v2, %v5416_v29  ;;  %v2765_v7 = vadd.f32 1.0, %v3873_v60 }
 0x2f0   : > { %v3875_v57 = vpop.eup %3874  ;;  %3886 = verf.f32 %v2626_v52  ;;  %v2627_v18 = vmul.f32 0.70710677, %v5488_v37  ;;  %v2010_v11 = vpop.f32.mrf.mxu0 }
 0x2f1   : > { %v5499_v49 = vpop.f32.mrf.mxu1  ;;  %2914 = vst [vmem:[%s4412_s29 + $0x18] sm:$0xff] %v2839_v51  ;;  %v2767_v39 = vadd.f32 1.0, %v3875_v57  ;;  %v2629_v25 = vmul.f32 0.70710677, %v5494_v3  ;;  %v5505_v9 = vadd.f32 %v5402_v27, %v2009_v20  ;;  %v2840_v26 = vmul.f32 %v2765_v7, %v2540_v47 }
 0x2f2   : > { %v3877_v31 = vpop.eup %3876  ;;  %3888 = verf.f32 %v2627_v18  ;;  %v2011_v19 = vadd.f32 %v2010_v11, %v5411_v40  ;;  %v2012_v0 = vpop.f32.mrf.mxu0  ;;  %v2546_v51 = vmul.f32 0.5, %v5459_v44  ;;  %v2548_v7 = vmul.f32 0.5, %v5464_v54 }
 0x2f3   : > { %v5508_v10 = vpop.f32.mrf.mxu1  ;;  %v2842_v8 = vmul.f32 %v2767_v39, %v2542_v53  ;;  %v2768_v42 = vadd.f32 1.0, %v3877_v31  ;;  %3890 = verf.f32 %v2629_v25  ;;  %2915 = vst [vmem:[%s4412_s29 + $0x20] sm:$0xff] %v2840_v26  ;;  %v2630_v6 = vmul.f32 0.70710677, %v5505_v9 }
 0x2f4   : > { %v3879_v62 = vpop.eup %3878  ;;  %v5514_v27 = vadd.f32 %v5408_v58, %v2011_v19  ;;  %v2013_v5 = vadd.f32 %v2012_v0, %v5416_v29  ;;  %v2016_v4 = vpop.f32.mrf.mxu0  ;;  %v2549_v54 = vmul.f32 0.5, %v5472_v48 }
 0x2f5   : > { %v5517_v46 = vpop.f32.mrf.mxu1  ;;  %2917 = vst [vmem:[%s4412_s29 + $0x30] sm:$0xff] %v2842_v8  ;;  %v2843_v24 = vmul.f32 %v2768_v42, %v2543_v59  ;;  %v2770_v56 = vadd.f32 1.0, %v3879_v62  ;;  %v2017_v16 = vadd.f32 %v2016_v4, %v5411_v40  ;;  %3892 = verf.f32 %v2630_v6 }
 0x2f6   : > { %v2632_v50 = vmul.f32 0.70710677, %v5514_v27  ;;  %v5524_v21 = vadd.f32 %v5413_v28, %v2013_v5  ;;  %v2018_v58 = vpop.f32.mrf.mxu0  ;;  %v3881_v1 = vpop.eup %3880  ;;  %v2551_v4 = vmul.f32 0.5, %v5479_v22  ;;  %v2552_v22 = vmul.f32 0.5, %v5488_v37 }
 0x2f7   : > { %v5526_v45 = vpop.f32.mrf.mxu1  ;;  %2918 = vst [vmem:[%s4412_s29 + $0x38] sm:$0xff] %v2843_v24  ;;  %v2845_v52 = vmul.f32 %v2770_v56, %v2545_v23  ;;  %v5530_v2 = vadd.f32 %v5418_v36, %v2017_v16  ;;  %v2019_v12 = vadd.f32 %v2018_v58, %v5416_v29  ;;  %v2771_v20 = vadd.f32 1.0, %v3881_v1 }
 0x2f8   : > { %v3883_v60 = vpop.eup %3882  ;;  %3894 = verf.f32 %v2632_v50  ;;  %v2633_v57 = vmul.f32 0.70710677, %v5524_v21  ;;  %v2020_v28 = vpop.f32.mrf.mxu0 }
 0x2f9   : > { %v5535_v47 = vpop.f32.mrf.mxu1  ;;  %2920 = vst [vmem:[%s4412_s29 + $0x48] sm:$0xff] %v2845_v52  ;;  %v2773_v18 = vadd.f32 1.0, %v3883_v60  ;;  %v2635_v36 = vmul.f32 0.70710677, %v5530_v2  ;;  %v5541_v11 = vadd.f32 %v5421_v63, %v2019_v12  ;;  %v2846_v53 = vmul.f32 %v2771_v20, %v2546_v51 }
 0x2fa   : > { %3896 = verf.f32 %v2633_v57  ;;  %v2021_v44 = vadd.f32 %v2020_v28, %v5411_v40  ;;  %v2022_v39 = vpop.f32.mrf.mxu0  ;;  %v3885_v31 = vpop.eup %3884  ;;  %v2554_v20 = vmul.f32 0.5, %v5494_v3 }
 0x2fb   : > { %v5544_v25 = vpop.f32.mrf.mxu1  ;;  %v2848_v26 = vmul.f32 %v2773_v18, %v2548_v7  ;;  %3898 = verf.f32 %v2635_v36  ;;  %v2636_v19 = vmul.f32 0.70710677, %v5541_v11  ;;  %2921 = vst [vmem:[%s4412_s29 + $0x50] sm:$0xff] %v2846_v53  ;;  %v2774_v0 = vadd.f32 1.0, %v3885_v31 }
 0x2fc   : > { %v5550_v63 = vadd.f32 %v5424_v30, %v2021_v44  ;;  %v2023_v8 = vadd.f32 %v2022_v39, %v5416_v29  ;;  %v2026_v59 = vpop.f32.mrf.mxu0  ;;  %v2555_v39 = vmul.f32 0.5, %v5505_v9  ;;  %v2557_v9 = vmul.f32 0.5, %v5514_v27 }
 0x2fd   : > { %v5553_v42 = vpop.f32.mrf.mxu1  ;;  %v3887_v62 = vpop.eup %3886  ;;  %2923 = vst [vmem:[%s4412_s29 + $0x60] sm:$0xff] %v2848_v26  ;;  %3900 = verf.f32 %v2636_v19  ;;  %v2027_v6 = vadd.f32 %v2026_v59, %v5411_v40  ;;  %v2849_v5 = vmul.f32 %v2774_v0, %v2549_v54 }
 0x2fe   : > { %v2776_v24 = vadd.f32 1.0, %v3887_v62  ;;  %v2638_v48 = vmul.f32 0.70710677, %v5550_v63  ;;  %v2028_v23 = vpop.f32.mrf.mxu0  ;;  %v5562_v16 = vadd.f32 %v5427_v13, %v2023_v8 }
 0x2ff   : > { %v5559_v30 = vpop.f32.mrf.mxu1  ;;  %v3889_v56 = vpop.eup %3888  ;;  %v5565_v50 = vadd.f32 %v5430_v55, %v2027_v6  ;;  %v2029_v58 = vadd.f32 %v2028_v23, %v5416_v29  ;;  %2924 = vst [vmem:[%s4412_s29 + $0x68] sm:$0xff] %v2849_v5 }
 0x300   : > { %v3891_v1 = vpop.eup %3890  ;;  %v2851_v52 = vmul.f32 %v2776_v24, %v2551_v4  ;;  %v2777_v12 = vadd.f32 1.0, %v3889_v56  ;;  %3902 = verf.f32 %v2638_v48  ;;  %v2030_v60 = vpop.f32.mrf.mxu0  ;;  %v2639_v57 = vmul.f32 0.70710677, %v5562_v16 }
 0x301   : > { %v5570_v51 = vpop.f32.mrf.mxu1  ;;  %v2779_v13 = vadd.f32 1.0, %v3891_v1  ;;  %v2641_v28 = vmul.f32 0.70710677, %v5565_v50  ;;  %v5577_v7 = vadd.f32 %v5435_v43, %v2029_v58  ;;  %v2031_v37 = vadd.f32 %v2030_v60, %v5411_v40 }
 0x302   : > { %2926 = vst [vmem:[%s4412_s29 + $0x78] sm:$0xff] %v2851_v52  ;;  %v2852_v55 = vmul.f32 %v2777_v12, %v2552_v22  ;;  %v2032_v18 = vpop.f32.mrf.mxu0  ;;  %v3893_v53 = vpop.eup %3892  ;;  %3904 = verf.f32 %v2639_v57  ;;  %v2558_v48 = vmul.f32 0.5, %v5524_v21  ;;  %v2560_v12 = vmul.f32 0.5, %v5530_v2 }
 0x303   : > { %v5580_v36 = vpop.f32.mrf.mxu1  ;;  %v2854_v44 = vmul.f32 %v2779_v13, %v2554_v20  ;;  %v2033_v3 = vadd.f32 %v2032_v18, %v5416_v29  ;;  %v2780_v31 = vadd.f32 1.0, %v3893_v53  ;;  %3906 = verf.f32 %v2641_v28 }
 0x304   : > { %2927 = vst [vmem:[%s4412_s29 + $0x80] sm:$0xff] %v2852_v55  ;;  %v2642_v26 = vmul.f32 0.70710677, %v5577_v7  ;;  %v2036_v43 = vpop.f32.mrf.mxu0  ;;  %v5590_v0 = vadd.f32 %v5441_v32, %v2031_v37  ;;  %v2561_v57 = vmul.f32 0.5, %v5541_v11 }
 0x305   : > { %v5586_v19 = vpop.f32.mrf.mxu1  ;;  %v3895_v54 = vpop.eup %3894  ;;  %2929 = vst [vmem:[%s4412_s29 + $0x90] sm:$0xff] %v2854_v44  ;;  %v5593_v8 = vadd.f32 %v5447_v34, %v2033_v3  ;;  %v2037_v59 = vadd.f32 %v2036_v43, %v5411_v40  ;;  %v2855_v62 = vmul.f32 %v2780_v31, %v2555_v39 }
 0x306   : > { %v2782_v6 = vadd.f32 1.0, %v3895_v54  ;;  %3908 = verf.f32 %v2642_v26  ;;  %v2038_v5 = vpop.f32.mrf.mxu0  ;;  %v2644_v32 = vmul.f32 0.70710677, %v5590_v0  ;;  %v2563_v26 = vmul.f32 0.5, %v5550_v63 }
 0x307   : > { %v5597_v4 = vpop.f32.mrf.mxu1  ;;  %v3897_v24 = vpop.eup %3896  ;;  %v2645_v23 = vmul.f32 0.70710677, %v5593_v8  ;;  %2930 = vst [vmem:[%s4412_s29 + $0x98] sm:$0xff] %v2855_v62  ;;  %v5604_v1 = vadd.f32 %v5454_v61, %v2037_v59  ;;  %v2039_v27 = vadd.f32 %v2038_v5, %v5416_v29 }
 0x308   : > { %v3899_v34 = vpop.eup %3898  ;;  %v2857_v56 = vmul.f32 %v2782_v6, %v2557_v9  ;;  %v2783_v58 = vadd.f32 1.0, %v3897_v24  ;;  %v2040_v52 = vpop.f32.mrf.mxu0  ;;  %3910 = verf.f32 %v2644_v32  ;;  %v2564_v24 = vmul.f32 0.5, %v5562_v16 }
 0x309   : > { %v5607_v22 = vpop.f32.mrf.mxu1  ;;  %v2785_v21 = vadd.f32 1.0, %v3899_v34  ;;  %v2041_v60 = vadd.f32 %v2040_v52, %v5411_v40  ;;  %3912 = verf.f32 %v2645_v23  ;;  %v2647_v61 = vmul.f32 0.70710677, %v5604_v1 }
 0x30a   : > { %v3901_v20 = vpop.eup %3900  ;;  %2932 = vst [vmem:[%s4412_s29 + $0xa8] sm:$0xff] %v2857_v56  ;;  %v2858_v13 = vmul.f32 %v2783_v58, %v2558_v48  ;;  %v2042_v55 = vpop.f32.mrf.mxu0  ;;  %v5617_v2 = vadd.f32 %v5461_v15, %v2039_v27  ;;  %v2566_v16 = vmul.f32 0.5, %v5565_v50 }
 0x30b   : > { %v5614_v28 = vpop.f32.mrf.mxu1  ;;  %v2860_v37 = vmul.f32 %v2785_v21, %v2560_v12  ;;  %v2786_v18 = vadd.f32 1.0, %v3901_v20  ;;  %v5620_v53 = vadd.f32 %v5468_v38, %v2041_v60  ;;  %3914 = verf.f32 %v2647_v61 }
 0x30c   : > { %2933 = vst [vmem:[%s4412_s29 + $0xb0] sm:$0xff] %v2858_v13  ;;  %v2043_v44 = vadd.f32 %v2042_v55, %v5416_v29  ;;  %v2046_v11 = vpop.f32.mrf.mxu0  ;;  %v2648_v43 = vmul.f32 0.70710677, %v5617_v2 }
 0x30d   : > { %v5624_v3 = vpop.f32.mrf.mxu1  ;;  %v3903_v39 = vpop.eup %3902  ;;  %2935 = vst [vmem:[%s4412_s29 + $0xc0] sm:$0xff] %v2860_v37  ;;  %v2861_v31 = vmul.f32 %v2786_v18, %v2561_v57  ;;  %v2650_v54 = vmul.f32 0.70710677, %v5620_v53  ;;  %v2047_v59 = vadd.f32 %v2046_v11, %v5411_v40 }
 0x30e   : > { %v2788_v15 = vadd.f32 1.0, %v3903_v39  ;;  %v5631_v38 = vadd.f32 %v5475_v41, %v2043_v44  ;;  %v2048_v62 = vpop.f32.mrf.mxu0  ;;  %3916 = verf.f32 %v2648_v43  ;;  %v2569_v39 = vmul.f32 0.5, %v5590_v0 }
 0x30f   : > { %v5634_v9 = vpop.f32.mrf.mxu1  ;;  %2936 = vst [vmem:[%s4412_s29 + $0xc8] sm:$0xff] %v2861_v31  ;;  %v2049_v6 = vadd.f32 %v2048_v62, %v5416_v29  ;;  %v3905_v5 = vpop.eup %3904  ;;  %3918 = verf.f32 %v2650_v54  ;;  %v5643_v56 = vadd.f32 %v5482_v35, %v2047_v59  ;;  %v2567_v35 = vmul.f32 0.5, %v5577_v7 }
 0x310   : > { %v2863_v63 = vmul.f32 %v2788_v15, %v2563_v26  ;;  %v2651_v48 = vmul.f32 0.70710677, %v5631_v38  ;;  %v2050_v32 = vpop.f32.mrf.mxu0  ;;  %v3907_v23 = vpop.eup %3906  ;;  %v2789_v34 = vadd.f32 1.0, %v3905_v5  ;;  %v2570_v0 = vmul.f32 0.5, %v5593_v8 }
 0x311   : > { %v5640_v41 = vpop.f32.mrf.mxu1  ;;  %v5646_v58 = vadd.f32 %v5490_v33, %v2049_v6  ;;  %v2051_v27 = vadd.f32 %v2050_v32, %v5411_v40  ;;  %v2791_v52 = vadd.f32 1.0, %v3907_v23  ;;  %v2653_v13 = vmul.f32 0.70710677, %v5643_v56 }
 0x312   : > { %2938 = vst [vmem:[%s4412_s29 + $0xd8] sm:$0xff] %v2863_v63  ;;  %3920 = verf.f32 %v2651_v48  ;;  %v2052_v12 = vpop.f32.mrf.mxu0  ;;  %v2864_v20 = vmul.f32 %v2789_v34, %v2564_v24  ;;  %v2572_v32 = vmul.f32 0.5, %v5604_v1 }
 0x313   : > { %v5651_v21 = vpop.f32.mrf.mxu1  ;;  %v3909_v60 = vpop.eup %3908  ;;  %v2866_v33 = vmul.f32 %v2791_v52, %v2566_v16  ;;  %v2654_v61 = vmul.f32 0.70710677, %v5646_v58  ;;  %v5657_v55 = vadd.f32 %v5499_v49, %v2051_v27  ;;  %3922 = verf.f32 %v2653_v13 }
 0x314   : > { %v2792_v57 = vadd.f32 1.0, %v3909_v60  ;;  %v2056_v50 = vpop.f32.mrf.mxu0  ;;  %2939 = vst [vmem:[%s4412_s29 + $0xe0] sm:$0xff] %v2864_v20  ;;  %v2053_v18 = vadd.f32 %v2052_v12, %v5416_v29  ;;  %v2573_v20 = vmul.f32 0.5, %v5617_v2  ;;  %v2575_v2 = vmul.f32 0.5, %v5620_v53 }
 0x315   : > { %v5659_v37 = vpop.f32.mrf.mxu1  ;;  %v2057_v44 = vadd.f32 %v2056_v50, %v5411_v40  ;;  %v3911_v7 = vpop.eup %3910  ;;  %2941 = vst [vmem:[%s4412_s29 + $0xf0] sm:$0xff] %v2866_v33  ;;  %3924 = verf.f32 %v2654_v61  ;;  %v2656_v31 = vmul.f32 0.70710677, %v5657_v55 }
 0x316   : > { %v2867_v11 = vmul.f32 %v2792_v57, %v2567_v35  ;;  %v2058_v49 = vpop.f32.mrf.mxu0  ;;  %v3913_v43 = vpop.eup %3912  ;;  %v2794_v15 = vadd.f32 1.0, %v3911_v7  ;;  %v5670_v54 = vadd.f32 %v5508_v10, %v2053_v18 }
 0x317   : > { %v5667_v26 = vpop.f32.mrf.mxu1  ;;  %v5673_v59 = vadd.f32 %v5517_v46, %v2057_v44  ;;  %v2059_v62 = vadd.f32 %v2058_v49, %v5416_v29  ;;  %v2795_v6 = vadd.f32 1.0, %v3913_v43  ;;  %3926 = verf.f32 %v2656_v31 }
 0x318   : > { %2942 = vst [vmem:[%s4412_s29 + $0xf8] sm:$0xff] %v2867_v11  ;;  %v2060_v5 = vpop.f32.mrf.mxu0  ;;  %v3915_v24 = vpop.eup %3914  ;;  %v2869_v48 = vmul.f32 %v2794_v15, %v2569_v39  ;;  %v2657_v10 = vmul.f32 0.70710677, %v5670_v54 }
 0x319   : > { %v2261_v63 = vpop.f32.mrf.mxu1  ;;  %v2870_v23 = vmul.f32 %v2795_v6, %v2570_v0  ;;  %v2797_v46 = vadd.f32 1.0, %v3915_v24  ;;  %v2659_v34 = vmul.f32 0.70710677, %v5673_v59  ;;  %v5682_v27 = vadd.f32 %v5526_v45, %v2059_v62 }
 0x31a   : > { %v2062_v16 = vpop.f32.mrf.mxu0  ;;  %2944 = vst [vmem:[%s4412_s29 + $0x108] sm:$0xff] %v2869_v48  ;;  %3928 = verf.f32 %v2657_v10  ;;  %v2061_v52 = vadd.f32 %v2060_v5, %v5411_v40  ;;  %v2578_v24 = vmul.f32 0.5, %v5643_v56  ;;  %v2579_v56 = vmul.f32 0.5, %v5646_v58 }
 0x31b   : > { %v2262_v8 = vpop.f32.mrf.mxu1  ;;  %v2063_v12 = vadd.f32 %v2062_v16, %v5416_v29  ;;  %v3917_v60 = vpop.eup %3916  ;;  %2945 = vst [vmem:[%s4412_s29 + $0x110] sm:$0xff] %v2870_v23  ;;  %v2872_v1 = vmul.f32 %v2797_v46, %v2572_v32  ;;  %3930 = verf.f32 %v2659_v34  ;;  %v2660_v35 = vmul.f32 0.70710677, %v5682_v27 }
 0x31c   : > { %v2066_v13 = vpop.f32.mrf.mxu0  ;;  %v3919_v33 = vpop.eup %3918  ;;  %v2798_v57 = vadd.f32 1.0, %v3917_v60  ;;  %v5693_v61 = vadd.f32 %v5535_v47, %v2061_v52  ;;  %v2576_v47 = vmul.f32 0.5, %v5631_v38 }
 0x31d   : > { %v5690_v45 = vpop.f32.mrf.mxu1  ;;  %v5696_v50 = vadd.f32 %v5544_v25, %v2063_v12  ;;  %v2067_v18 = vadd.f32 %v2066_v13, %v5411_v40  ;;  %2947 = vst [vmem:[%s4412_s29 + $0x120] sm:$0xff] %v2872_v1  ;;  %v2800_v44 = vadd.f32 1.0, %v3919_v33  ;;  %3932 = verf.f32 %v2660_v35 }
 0x31e   : > { %v2068_v7 = vpop.f32.mrf.mxu0  ;;  %v2873_v31 = vmul.f32 %v2798_v57, %v2573_v20  ;;  %v2662_v49 = vmul.f32 0.70710677, %v5693_v61 }
 0x31f   : > { %v5701_v11 = vpop.f32.mrf.mxu1  ;;  %v3921_v39 = vpop.eup %3920  ;;  %v2875_v25 = vmul.f32 %v2800_v44, %v2575_v2  ;;  %v2663_v15 = vmul.f32 0.70710677, %v5696_v50  ;;  %v5707_v62 = vadd.f32 %v5553_v42, %v2067_v18  ;;  %v2069_v6 = vadd.f32 %v2068_v7, %v5416_v29 }
 0x320   : > { %v2801_v43 = vadd.f32 1.0, %v3921_v39  ;;  %v2070_v53 = vpop.f32.mrf.mxu0  ;;  %2948 = vst [vmem:[%s4412_s29 + $0x128] sm:$0xff] %v2873_v31  ;;  %3934 = verf.f32 %v2662_v49  ;;  %v3923_v38 = vpop.eup %3922  ;;  %v2582_v7 = vmul.f32 0.5, %v5670_v54  ;;  %v2584_v54 = vmul.f32 0.5, %v5673_v59 }
 0x321   : > { %v5709_v0 = vpop.f32.mrf.mxu1  ;;  %v2071_v5 = vadd.f32 %v2070_v53, %v5411_v40  ;;  %2950 = vst [vmem:[%s4412_s29 + $0x138] sm:$0xff] %v2875_v25  ;;  %3936 = verf.f32 %v2663_v15  ;;  %v2665_v48 = vmul.f32 0.70710677, %v5707_v62  ;;  %v2803_v23 = vadd.f32 1.0, %v3923_v38 }
 0x322   : > { %v2876_v63 = vmul.f32 %v2801_v43, %v2576_v47  ;;  %v2072_v42 = vpop.f32.mrf.mxu0  ;;  %v3925_v10 = vpop.eup %3924  ;;  %v5720_v46 = vadd.f32 %v5559_v30, %v2069_v6  ;;  %v2581_v30 = vmul.f32 0.5, %v5657_v55 }
 0x323   : > { %v5717_v32 = vpop.f32.mrf.mxu1  ;;  %v5723_v34 = vadd.f32 %v5570_v51, %v2071_v5  ;;  %v2073_v16 = vadd.f32 %v2072_v42, %v5416_v29  ;;  %v2804_v8 = vadd.f32 1.0, %v3925_v10  ;;  %3938 = verf.f32 %v2665_v48 }
 0x324   : > { %2951 = vst [vmem:[%s4412_s29 + $0x140] sm:$0xff] %v2876_v63  ;;  %v2076_v52 = vpop.f32.mrf.mxu0  ;;  %v3927_v60 = vpop.eup %3926  ;;  %v2878_v1 = vmul.f32 %v2803_v23, %v2578_v24  ;;  %v2666_v20 = vmul.f32 0.70710677, %v5720_v46 }
 0x325   : > { %v5728_v12 = vpop.f32.mrf.mxu1  ;;  %v2879_v51 = vmul.f32 %v2804_v8, %v2579_v56  ;;  %v2806_v35 = vadd.f32 1.0, %v3927_v60  ;;  %v2668_v13 = vmul.f32 0.70710677, %v5723_v34  ;;  %v5734_v33 = vadd.f32 %v5580_v36, %v2073_v16 }
 0x326   : > { %v2078_v58 = vpop.f32.mrf.mxu0  ;;  %2953 = vst [vmem:[%s4412_s29 + $0x150] sm:$0xff] %v2878_v1  ;;  %3940 = verf.f32 %v2666_v20  ;;  %v2077_v18 = vadd.f32 %v2076_v52, %v5411_v40  ;;  %v2587_v52 = vmul.f32 0.5, %v5693_v61 }
 0x327   : > { %v5736_v57 = vpop.f32.mrf.mxu1  ;;  %v2079_v2 = vadd.f32 %v2078_v58, %v5416_v29  ;;  %v3929_v55 = vpop.eup %3928  ;;  %2954 = vst [vmem:[%s4412_s29 + $0x158] sm:$0xff] %v2879_v51  ;;  %v2881_v44 = vmul.f32 %v2806_v35, %v2581_v30  ;;  %3942 = verf.f32 %v2668_v13  ;;  %v2669_v39 = vmul.f32 0.70710677, %v5734_v33 }
 0x328   : > { %v2080_v36 = vpop.f32.mrf.mxu0  ;;  %v3931_v47 = vpop.eup %3930  ;;  %v2807_v49 = vadd.f32 1.0, %v3929_v55  ;;  %v5747_v25 = vadd.f32 %v5586_v19, %v2077_v18  ;;  %v2585_v19 = vmul.f32 0.5, %v5682_v27  ;;  %v2588_v58 = vmul.f32 0.5, %v5696_v50 }
 0x329   : > { %v5744_v31 = vpop.f32.mrf.mxu1  ;;  %v5750_v43 = vadd.f32 %v5597_v4, %v2079_v2  ;;  %v2081_v15 = vadd.f32 %v2080_v36, %v5411_v40  ;;  %2956 = vst [vmem:[%s4412_s29 + $0x168] sm:$0xff] %v2881_v44  ;;  %v2809_v53 = vadd.f32 1.0, %v3931_v47  ;;  %3944 = verf.f32 %v2669_v39 }
 0x32a   : > { %v2082_v6 = vpop.f32.mrf.mxu0  ;;  %v3933_v38 = vpop.eup %3932  ;;  %v2882_v63 = vmul.f32 %v2807_v49, %v2582_v7  ;;  %v2671_v24 = vmul.f32 0.70710677, %v5747_v25 }
 0x32b   : > { %v5755_v5 = vpop.f32.mrf.mxu1  ;;  %v2884_v4 = vmul.f32 %v2809_v53, %v2584_v54  ;;  %v2810_v48 = vadd.f32 1.0, %v3933_v38  ;;  %v2672_v42 = vmul.f32 0.70710677, %v5750_v43  ;;  %v5761_v10 = vadd.f32 %v5607_v22, %v2081_v15 }
 0x32c   : > { %v2086_v59 = vpop.f32.mrf.mxu0  ;;  %2957 = vst [vmem:[%s4412_s29 + $0x170] sm:$0xff] %v2882_v63  ;;  %3946 = verf.f32 %v2671_v24  ;;  %v2083_v16 = vadd.f32 %v2082_v6, %v5416_v29  ;;  %v2591_v6 = vmul.f32 0.5, %v5720_v46 }
 0x32d   : > { %v5763_v23 = vpop.f32.mrf.mxu1  ;;  %v2087_v56 = vadd.f32 %v2086_v59, %v5411_v40  ;;  %v3935_v27 = vpop.eup %3934  ;;  %2959 = vst [vmem:[%s4412_s29 + $0x180] sm:$0xff] %v2884_v4  ;;  %v2885_v8 = vmul.f32 %v2810_v48, %v2585_v19  ;;  %3948 = verf.f32 %v2672_v42  ;;  %v2674_v60 = vmul.f32 0.70710677, %v5761_v10 }
 0x32e   : > { %v2088_v22 = vpop.f32.mrf.mxu0  ;;  %v3937_v30 = vpop.eup %3936  ;;  %v2812_v20 = vadd.f32 1.0, %v3935_v27  ;;  %v5774_v51 = vadd.f32 %v5614_v28, %v2083_v16  ;;  %v2590_v28 = vmul.f32 0.5, %v5707_v62  ;;  %v2593_v59 = vmul.f32 0.5, %v5723_v34 }
 0x32f   : > { %v5771_v1 = vpop.f32.mrf.mxu1  ;;  %v5777_v35 = vadd.f32 %v5624_v3, %v2087_v56  ;;  %v2089_v13 = vadd.f32 %v2088_v22, %v5416_v29  ;;  %2960 = vst [vmem:[%s4412_s29 + $0x188] sm:$0xff] %v2885_v8  ;;  %v2813_v61 = vadd.f32 1.0, %v3937_v30  ;;  %3950 = verf.f32 %v2674_v60 }
 0x330   : > { %v2090_v18 = vpop.f32.mrf.mxu0  ;;  %v3939_v55 = vpop.eup %3938  ;;  %v2887_v44 = vmul.f32 %v2812_v20, %v2587_v52  ;;  %v2675_v7 = vmul.f32 0.70710677, %v5774_v51  ;;  %v1350_v3 = vsub.s32 2, %v5393_v17 }
 0x331   : > { %v5782_v2 = vpop.f32.mrf.mxu1  ;;  %v2888_v39 = vmul.f32 %v2813_v61, %v2588_v58  ;;  %v2815_v36 = vadd.f32 1.0, %v3939_v55  ;;  %v2677_v47 = vmul.f32 0.70710677, %v5777_v35  ;;  %v5789_v50 = vadd.f32 %v5634_v9, %v2089_v13 }
 0x332   : > { %v2092_v49 = vpop.f32.mrf.mxu0  ;;  %2962 = vst [vmem:[%s4412_s29 + $0x198] sm:$0xff] %v2887_v44  ;;  %3952 = verf.f32 %v2675_v7  ;;  %v2091_v54 = vadd.f32 %v2090_v18, %v5411_v40  ;;  %v5813_v27 = vrot.slane %v5405_v14, %v1350_v3  ;;  %v2596_v55 = vmul.f32 0.5, %v5747_v25 }
 0x333   : > { %v5791_v15 = vpop.f32.mrf.mxu1  ;;  %v2093_v62 = vadd.f32 %v2092_v49, %v5416_v29  ;;  %v3941_v53 = vpop.eup %3940  ;;  %2963 = vst [vmem:[%s4412_s29 + $0x1a0] sm:$0xff] %v2888_v39  ;;  %v2890_v17 = vmul.f32 %v2815_v36, %v2590_v28  ;;  %3954 = verf.f32 %v2677_v47  ;;  %v2678_v38 = vmul.f32 0.70710677, %v5789_v50 }
 0x334   : > { %v2096_v9 = vpop.f32.mrf.mxu0  ;;  %v3943_v19 = vpop.eup %3942  ;;  %v2816_v24 = vadd.f32 1.0, %v3941_v53  ;;  %v5802_v4 = vadd.f32 %v5640_v41, %v2091_v54  ;;  %v2597_v7 = vmul.f32 0.5, %v5750_v43  ;;  %v2599_v49 = vmul.f32 0.5, %v5761_v10 }
 0x335   : > { %v5799_v63 = vpop.f32.mrf.mxu1  ;;  %v5805_v48 = vadd.f32 %v5651_v21, %v2093_v62  ;;  %v2097_v42 = vadd.f32 %v2096_v9, %v5411_v40  ;;  %2965 = vst [vmem:[%s4412_s29 + $0x1b0] sm:$0xff] %v2890_v17  ;;  %v2818_v46 = vadd.f32 1.0, %v3943_v19  ;;  %3956 = verf.f32 %v2678_v38 }
 0x336   : > { %v2098_v16 = vpop.f32.mrf.mxu0  ;;  %v3945_v41 = vpop.eup %3944  ;;  %v2891_v8 = vmul.f32 %v2816_v24, %v2591_v6  ;;  %v3378_v21 = vadd.f32 %v5701_v11, %v5690_v45  ;;  %v2594_v40 = vmul.f32 0.5, %v5734_v33  ;;  %v2680_v52 = vmul.f32 0.70710677, %v5802_v4 }
 0x337   : > { %v5810_v56 = vpop.f32.mrf.mxu1  ;;  %v2893_v34 = vmul.f32 %v2818_v46, %v2593_v59  ;;  %v2819_v60 = vadd.f32 1.0, %v3945_v41  ;;  %v2681_v22 = vmul.f32 0.70710677, %v5805_v48  ;;  %v5821_v30 = vadd.f32 %v5659_v37, %v2097_v42 }
 0x338   : > { %v2100_v20 = vpop.f32.mrf.mxu0  ;;  %2966 = vst [vmem:[%s4412_s29 + $0x1b8] sm:$0xff] %v2891_v8  ;;  %3958 = verf.f32 %v2680_v52  ;;  %v2099_v13 = vadd.f32 %v2098_v16, %v5416_v29  ;;  %v3381_v33 = vadd.f32 %v5717_v32, %v5709_v0  ;;  %v2299_v29 = vadd.f32 %v3378_v21, %v5813_v27 }
 0x339   : > { %v5823_v14 = vpop.f32.mrf.mxu1  ;;  %v3947_v45 = vpop.eup %3946  ;;  %2968 = vst [vmem:[%s4412_s29 + $0x1c8] sm:$0xff] %v2893_v34  ;;  %v2894_v11 = vmul.f32 %v2819_v60, %v2594_v40  ;;  %3960 = verf.f32 %v2681_v22  ;;  %v2683_v58 = vmul.f32 0.70710677, %v5821_v30  ;;  %v3384_v43 = vadd.f32 %v5736_v57, %v5728_v12 }
 0x33a   : > { %v2101_v61 = vpop.f32.mrf.mxu0  ;;  %v3949_v18 = vpop.eup %3948  ;;  %v2821_v44 = vadd.f32 1.0, %v3947_v45  ;;  %v5835_v28 = vadd.f32 %v5667_v26, %v2099_v13  ;;  %v2302_v6 = vadd.f32 %v3381_v33, %v5813_v27  ;;  %v2600_v42 = vmul.f32 0.5, %v5774_v51 }
 0x33b   : > { %v5831_v37 = vpop.f32.mrf.mxu1  ;;  %2969 = vst [vmem:[%s4412_s29 + $0x1d0] sm:$0xff] %v2894_v11  ;;  %v2822_v0 = vadd.f32 1.0, %v3949_v18  ;;  %3962 = verf.f32 %v2683_v58  ;;  %v2602_v12 = vmul.f32 0.5, %v5777_v35  ;;  %v3387_v40 = vadd.f32 %v5755_v5, %v5744_v31 }
 0x33c   : > { %v2434_v3 = vpop.f32.mrf.mxu0  ;;  %v3951_v39 = vpop.eup %3950  ;;  %v2896_v36 = vmul.f32 %v2821_v44, %v2596_v55  ;;  %v2684_v25 = vmul.f32 0.70710677, %v5835_v28  ;;  %v2307_v52 = vadd.f32 %v3384_v43, %v5813_v27  ;;  %v2603_v60 = vmul.f32 0.5, %v5789_v50 }
 0x33d   : > { %v5840_v32 = vpop.f32.mrf.mxu1  ;;  %v5843_v47 = vadd.f32 %v2434_v3, %v2299_v29  ;;  %v2897_v26 = vmul.f32 %v2822_v0, %v2597_v7  ;;  %v2824_v54 = vadd.f32 1.0, %v3951_v39  ;;  %v3390_v31 = vadd.f32 %v5771_v1, %v5763_v23 }
 0x33e   : > { %v3493_v53 = vpop.f32.mrf.mxu0  ;;  %2971 = vst [vmem:[%s4412_s29 + $0x1e0] sm:$0xff] %v2896_v36  ;;  %3964 = verf.f32 %v2684_v25  ;;  %v2605_v50 = vmul.f32 0.5, %v5802_v4  ;;  %v2310_v55 = vadd.f32 %v3387_v40, %v5813_v27  ;;  %v2606_v44 = vmul.f32 0.5, %v5805_v48 }
 0x33f   : > { %v5846_v62 = vpop.f32.mrf.mxu1  ;;  %v2613_v17 = vmul.f32 0.70710677, %v5843_v47  ;;  %v3953_v38 = vpop.eup %3952  ;;  %2972 = vst [vmem:[%s4412_s29 + $0x1e8] sm:$0xff] %v2897_v26  ;;  %v2899_v9 = vmul.f32 %v2824_v54, %v2599_v49  ;;  %v3393_v39 = vadd.f32 %v5791_v15, %v5782_v2  ;;  %v2608_v36 = vmul.f32 0.5, %v5821_v30 }
 0x340   : > { %v2437_v10 = vpop.f32.mrf.mxu0  ;;  %v3955_v24 = vpop.eup %3954  ;;  %v2825_v59 = vadd.f32 1.0, %v3953_v38  ;;  %v2315_v54 = vadd.f32 %v3390_v31, %v5813_v27  ;;  %v2609_v2 = vmul.f32 0.5, %v5835_v28 }
 0x341   : > { %v5854_v19 = vpop.f32.mrf.mxu1  ;;  %3966 = verf.f32 %v2613_v17  ;;  %v5857_v46 = vadd.f32 %v2437_v10, %v2302_v6  ;;  %2974 = vst [vmem:[%s4412_s29 + $0x1f8] sm:$0xff] %v2899_v9  ;;  %v2827_v57 = vadd.f32 1.0, %v3955_v24  ;;  %v3396_v9 = vadd.f32 %v5810_v56, %v5799_v63 }
 0x342   : > { %v3494_v41 = vpop.f32.mrf.mxu0  ;;  %v3957_v8 = vpop.eup %3956  ;;  %v2900_v21 = vmul.f32 %v2825_v59, %v2600_v42  ;;  %v2318_v42 = vadd.f32 %v3393_v39, %v5813_v27  ;;  %v3399_v56 = vadd.f32 %v5831_v37, %v5823_v14 }
 0x343   : > { %v5861_v16 = vpop.f32.mrf.mxu1  ;;  %v2616_v51 = vmul.f32 0.70710677, %v5857_v46  ;;  %v2902_v34 = vmul.f32 %v2827_v57, %v2602_v12  ;;  %v2828_v22 = vadd.f32 1.0, %v3957_v8  ;;  %v2538_v12 = vmul.f32 0.5, %v5843_v47 }
 0x344   : > { %v2442_v35 = vpop.f32.mrf.mxu0  ;;  %2975 = vst [vmem:[%s4412_s29 + $0x200] sm:$0xff] %v2900_v21  ;;  %v2541_v47 = vmul.f32 0.5, %v5857_v46  ;;  %v2326_v37 = vadd.f32 %v3399_v56, %v5813_v27  ;;  %v3402_v46 = vadd.f32 %v5846_v62, %v5840_v32 }
 0x345   : > { %v5868_v20 = vpop.f32.mrf.mxu1  ;;  %3968 = verf.f32 %v2616_v51  ;;  %v5871_v13 = vadd.f32 %v2442_v35, %v2307_v52  ;;  %v3959_v45 = vpop.eup %3958  ;;  %2977 = vst [vmem:[%s4412_s29 + $0x210] sm:$0xff] %v2902_v34  ;;  %v2903_v11 = vmul.f32 %v2828_v22, %v2603_v60  ;;  %v2323_v22 = vadd.f32 %v3396_v9, %v5813_v27 }
 0x346   : > { %v3497_v33 = vpop.f32.mrf.mxu0  ;;  %v3961_v58 = vpop.eup %3960  ;;  %v2830_v61 = vadd.f32 1.0, %v3959_v45 }
 0x347   : > { %v5876_v5 = vpop.f32.mrf.mxu1  ;;  %v2619_v18 = vmul.f32 0.70710677, %v5871_v13  ;;  %2978 = vst [vmem:[%s4412_s29 + $0x218] sm:$0xff] %v2903_v11  ;;  %v2831_v29 = vadd.f32 1.0, %v3961_v58 }
 0x348   : > { %v2445_v23 = vpop.f32.mrf.mxu0  ;;  %v3963_v1 = vpop.eup %3962  ;;  %v2905_v0 = vmul.f32 %v2830_v61, %v2605_v50  ;;  %v2544_v50 = vmul.f32 0.5, %v5871_v13 }
 0x349   : > { %v5883_v7 = vpop.f32.mrf.mxu1  ;;  %3970 = verf.f32 %v2619_v18  ;;  %v5885_v3 = vadd.f32 %v2445_v23, %v2310_v55  ;;  %v2906_v4 = vmul.f32 %v2831_v29, %v2606_v44  ;;  %v2833_v25 = vadd.f32 1.0, %v3963_v1 }
 0x34a   : > { %v3498_v48 = vpop.f32.mrf.mxu0  ;;  %2980 = vst [vmem:[%s4412_s29 + $0x228] sm:$0xff] %v2905_v0  ;;  %v3405_v0 = vadd.f32 %v5861_v16, %v5854_v19 }
 0x34b   : > { %v5890_v26 = vpop.f32.mrf.mxu1  ;;  %v2622_v49 = vmul.f32 0.70710677, %v5885_v3  ;;  %v3965_v53 = vpop.eup %3964  ;;  %2981 = vst [vmem:[%s4412_s29 + $0x230] sm:$0xff] %v2906_v4  ;;  %v2908_v43 = vmul.f32 %v2833_v25, %v2608_v36  ;;  %v2547_v32 = vmul.f32 0.5, %v5885_v3  ;;  %v2331_v36 = vadd.f32 %v3402_v46, %v5813_v27 }
 0x34c   : > { %v2450_v6 = vpop.f32.mrf.mxu0  ;;  %v2834_v15 = vadd.f32 1.0, %v3965_v53  ;;  %v2334_v16 = vadd.f32 %v3405_v0, %v5813_v27  ;;  %v3408_v3 = vadd.f32 %v5876_v5, %v5868_v20 }
 0x34d   : > { %v5896_v17 = vpop.f32.mrf.mxu1  ;;  %3972 = verf.f32 %v2622_v49  ;;  %v5899_v30 = vadd.f32 %v2450_v6, %v2315_v54  ;;  %2983 = vst [vmem:[%s4412_s29 + $0x240] sm:$0xf] %v2908_v43 }
 0x34e   : > { %v3967_v38 = vpop.eup %3966  ;;  %v3501_v24 = vpop.f32.mrf.mxu0  ;;  %v2909_v59 = vmul.f32 %v2834_v15, %v2609_v2 }
 0x34f   : > { %v5904_v10 = vpop.f32.mrf.mxu1  ;;  %v2763_v28 = vadd.f32 1.0, %v3967_v38  ;;  %v2625_v57 = vmul.f32 0.70710677, %v5899_v30  ;;  %v2550_v6 = vmul.f32 0.5, %v5899_v30 }
 0x350   : > { %v2453_v8 = vpop.f32.mrf.mxu0  ;;  %2984 = vst [vmem:[%s4412_s29 + $0x248] sm:$0xf] %v2909_v59 }
 0x351   : > { %v5909_v41 = vpop.f32.mrf.mxu1  ;;  %v2838_v21 = vmul.f32 %v2763_v28, %v2538_v12  ;;  %3974 = verf.f32 %v2625_v57  ;;  %v2454_v40 = vadd.f32 %v2453_v8, %v2318_v42  ;;  %v3411_v12 = vadd.f32 %v5890_v26, %v5883_v7 }
 0x352   : > { %v3969_v63 = vpop.eup %3968  ;;  %v3502_v52 = vpop.f32.mrf.mxu0  ;;  %v2339_v8 = vadd.f32 %v3408_v3, %v5813_v27 }
 0x353   : > { %v5914_v51 = vpop.f32.mrf.mxu1  ;;  %2913 = vst [vmem:[%s4412_s29 + $0x10] sm:$0xff] %v2838_v21  ;;  %v2766_v34 = vadd.f32 1.0, %v3969_v63  ;;  %v2628_v60 = vmul.f32 0.70710677, %v2454_v40  ;;  %v2553_v20 = vmul.f32 0.5, %v2454_v40  ;;  %v2342_v26 = vadd.f32 %v3411_v12, %v5813_v27 }
 0x354   : > { %v2458_v45 = vpop.f32.mrf.mxu0  ;;  %v3414_v40 = vadd.f32 %v5904_v10, %v5896_v17 }
 0x355   : > { %v5919_v35 = vpop.f32.mrf.mxu1  ;;  %v2841_v11 = vmul.f32 %v2766_v34, %v2541_v47  ;;  %3976 = verf.f32 %v2628_v60  ;;  %v2459_v31 = vadd.f32 %v2458_v45, %v2323_v22 }
 0x356   : > { %v3971_v33 = vpop.eup %3970  ;;  %v3505_v14 = vpop.f32.mrf.mxu0 }
 0x357   : > { %v5921_v58 = vpop.f32.mrf.mxu1  ;;  %2916 = vst [vmem:[%s4412_s29 + $0x28] sm:$0xff] %v2841_v11  ;;  %v2769_v61 = vadd.f32 1.0, %v3971_v33  ;;  %v2631_v18 = vmul.f32 0.70710677, %v2459_v31  ;;  %v2556_v60 = vmul.f32 0.5, %v2459_v31 }
 0x358   : > { %v2461_v44 = vpop.f32.mrf.mxu0 }
 0x359   : > { %v5928_v55 = vpop.f32.mrf.mxu1  ;;  %v2844_v29 = vmul.f32 %v2769_v61, %v2544_v50  ;;  %3978 = verf.f32 %v2631_v18  ;;  %v2462_v23 = vadd.f32 %v2461_v44, %v2326_v37  ;;  %v3417_v50 = vadd.f32 %v5914_v51, %v5909_v41 }
 0x35a   : > { %v3973_v1 = vpop.eup %3972  ;;  %v3506_v39 = vpop.f32.mrf.mxu0  ;;  %v2347_v44 = vadd.f32 %v3414_v40, %v5813_v27 }
 0x35b   : > { %v5932_v4 = vpop.f32.mrf.mxu1  ;;  %2919 = vst [vmem:[%s4412_s29 + $0x40] sm:$0xff] %v2844_v29  ;;  %v2772_v62 = vadd.f32 1.0, %v3973_v1  ;;  %v2634_v13 = vmul.f32 0.70710677, %v2462_v23  ;;  %v2559_v17 = vmul.f32 0.5, %v2462_v23  ;;  %v2350_v51 = vadd.f32 %v3417_v50, %v5813_v27 }
 0x35c   : > { %v2466_v48 = vpop.f32.mrf.mxu0  ;;  %v3420_v23 = vadd.f32 %v5921_v58, %v5919_v35 }
 0x35d   : > { %v5937_v25 = vpop.f32.mrf.mxu1  ;;  %v2847_v49 = vmul.f32 %v2772_v62, %v2547_v32  ;;  %3980 = verf.f32 %v2634_v13  ;;  %v2467_v54 = vadd.f32 %v2466_v48, %v2331_v36 }
 0x35e   : > { %v3975_v53 = vpop.eup %3974  ;;  %v3509_v19 = vpop.f32.mrf.mxu0 }
 0x35f   : > { %v5939_v43 = vpop.f32.mrf.mxu1  ;;  %2922 = vst [vmem:[%s4412_s29 + $0x58] sm:$0xff] %v2847_v49  ;;  %v2775_v2 = vadd.f32 1.0, %v3975_v53  ;;  %v2637_v15 = vmul.f32 0.70710677, %v2467_v54  ;;  %v2562_v13 = vmul.f32 0.5, %v2467_v54 }
 0x360   : > { %v2469_v9 = vpop.f32.mrf.mxu0 }
 0x361   : > { %v5946_v38 = vpop.f32.mrf.mxu1  ;;  %v2850_v24 = vmul.f32 %v2775_v2, %v2550_v6  ;;  %3982 = verf.f32 %v2637_v15  ;;  %v2470_v42 = vadd.f32 %v2469_v9, %v2334_v16  ;;  %v3423_v6 = vadd.f32 %v5932_v4, %v5928_v55 }
 0x362   : > { %v3977_v59 = vpop.eup %3976  ;;  %v3510_v57 = vpop.f32.mrf.mxu0  ;;  %v2355_v9 = vadd.f32 %v3420_v23, %v5813_v27  ;;  %v3426_v4 = vadd.f32 %v5939_v43, %v5937_v25 }
 0x363   : > { %v5950_v28 = vpop.f32.mrf.mxu1  ;;  %2925 = vst [vmem:[%s4412_s29 + $0x70] sm:$0xff] %v2850_v24  ;;  %v2778_v5 = vadd.f32 1.0, %v3977_v59  ;;  %v2640_v30 = vmul.f32 0.70710677, %v2470_v42  ;;  %v2565_v35 = vmul.f32 0.5, %v2470_v42  ;;  %v2358_v55 = vadd.f32 %v3423_v6, %v5813_v27 }
 0x364   : > { %v2474_v63 = vpop.f32.mrf.mxu0 }
 0x365   : > { %v5954_v21 = vpop.f32.mrf.mxu1  ;;  %v2853_v56 = vmul.f32 %v2778_v5, %v2553_v20  ;;  %3984 = verf.f32 %v2640_v30  ;;  %v2475_v52 = vadd.f32 %v2474_v63, %v2339_v8 }
 0x366   : > { %v3979_v47 = vpop.eup %3978  ;;  %v3513_v7 = vpop.f32.mrf.mxu0 }
 0x367   : > { %v5956_v34 = vpop.f32.mrf.mxu1  ;;  %2928 = vst [vmem:[%s4412_s29 + $0x88] sm:$0xff] %v2853_v56  ;;  %v2781_v22 = vadd.f32 1.0, %v3979_v47  ;;  %v2643_v45 = vmul.f32 0.70710677, %v2475_v52  ;;  %v2568_v42 = vmul.f32 0.5, %v2475_v52 }
 0x368   : > { %v2477_v33 = vpop.f32.mrf.mxu0 }
 0x369   : > { %v5962_v11 = vpop.f32.mrf.mxu1  ;;  %v2856_v14 = vmul.f32 %v2781_v22, %v2556_v60  ;;  %3986 = verf.f32 %v2643_v45  ;;  %v2478_v37 = vadd.f32 %v2477_v33, %v2342_v26  ;;  %v3429_v60 = vadd.f32 %v5950_v28, %v5946_v38 }
 0x36a   : > { %v3981_v46 = vpop.eup %3980  ;;  %v3514_v18 = vpop.f32.mrf.mxu0  ;;  %v2363_v33 = vadd.f32 %v3426_v4, %v5813_v27  ;;  %v3432_v38 = vadd.f32 %v5956_v34, %v5954_v21 }
 0x36b   : > { %v5966_v61 = vpop.f32.mrf.mxu1  ;;  %2931 = vst [vmem:[%s4412_s29 + $0xa0] sm:$0xff] %v2856_v14  ;;  %v2784_v10 = vadd.f32 1.0, %v3981_v46  ;;  %v2646_v31 = vmul.f32 0.70710677, %v2478_v37  ;;  %v2571_v25 = vmul.f32 0.5, %v2478_v37 }
 0x36c   : > { %v2482_v1 = vpop.f32.mrf.mxu0  ;;  %v3435_v21 = vadd.f32 %v5966_v61, %v5962_v11 }
 0x36d   : > { %v5970_v29 = vpop.f32.mrf.mxu1  ;;  %v2859_v0 = vmul.f32 %v2784_v10, %v2559_v17  ;;  %3988 = verf.f32 %v2646_v31  ;;  %v2483_v39 = vadd.f32 %v2482_v1, %v2347_v44  ;;  %v2366_v31 = vadd.f32 %v3429_v60, %v5813_v27 }
 0x36e   : > { %v3983_v32 = vpop.eup %3982  ;;  %v3517_v41 = vpop.f32.mrf.mxu0 }
 0x36f   : > { %v5972_v62 = vpop.f32.mrf.mxu1  ;;  %2934 = vst [vmem:[%s4412_s29 + $0xb8] sm:$0xff] %v2859_v0  ;;  %v2787_v36 = vadd.f32 1.0, %v3983_v32  ;;  %v2649_v48 = vmul.f32 0.70710677, %v2483_v39  ;;  %v2574_v37 = vmul.f32 0.5, %v2483_v39 }
 0x370   : > { %v2485_v53 = vpop.f32.mrf.mxu0 }
 0x371   : > { %v5978_v49 = vpop.f32.mrf.mxu1  ;;  %v2862_v19 = vmul.f32 %v2787_v36, %v2562_v13  ;;  %3990 = verf.f32 %v2649_v48  ;;  %v2486_v16 = vadd.f32 %v2485_v53, %v2350_v51  ;;  %v2371_v53 = vadd.f32 %v3432_v38, %v5813_v27 }
 0x372   : > { %v3985_v3 = vpop.eup %3984  ;;  %v3518_v15 = vpop.f32.mrf.mxu0 }
 0x373   : > { %v5982_v2 = vpop.f32.mrf.mxu1  ;;  %2937 = vst [vmem:[%s4412_s29 + $0xd0] sm:$0xff] %v2862_v19  ;;  %v2790_v58 = vadd.f32 1.0, %v3985_v3  ;;  %v2652_v54 = vmul.f32 0.70710677, %v2486_v16  ;;  %v2577_v34 = vmul.f32 0.5, %v2486_v16  ;;  %v3438_v16 = vadd.f32 %v5972_v62, %v5970_v29 }
 0x374   : > { %v2490_v59 = vpop.f32.mrf.mxu0 }
 0x375   : > { %v3442_v24 = vpop.f32.mrf.mxu1  ;;  %v2865_v12 = vmul.f32 %v2790_v58, %v2565_v35  ;;  %3992 = verf.f32 %v2652_v54  ;;  %v5986_v57 = vadd.f32 %v2490_v59, %v2355_v9 }
 0x376   : > { %v3987_v20 = vpop.eup %3986  ;;  %v3521_v30 = vpop.f32.mrf.mxu0 }
 0x377   : > { %v3443_v5 = vpop.f32.mrf.mxu1  ;;  %2940 = vst [vmem:[%s4412_s29 + $0xe8] sm:$0xff] %v2865_v12  ;;  %v2793_v8 = vadd.f32 1.0, %v3987_v20  ;;  %v2655_v63 = vmul.f32 0.70710677, %v5986_v57  ;;  %v2580_v9 = vmul.f32 0.5, %v5986_v57  ;;  %v2374_v12 = vadd.f32 %v3435_v21, %v5813_v27 }
 0x378   : > { %v2493_v47 = vpop.f32.mrf.mxu0  ;;  %v3444_v1 = vadd.f32 %v3443_v5, %v3442_v24 }
 0x379   : > { %v3445_v56 = vpop.f32.mrf.mxu1  ;;  %v2868_v7 = vmul.f32 %v2793_v8, %v2568_v42  ;;  %3994 = verf.f32 %v2655_v63  ;;  %v5993_v26 = vadd.f32 %v2493_v47, %v2358_v55 }
 0x37a   : > { %v3989_v40 = vpop.eup %3988  ;;  %v3522_v45 = vpop.f32.mrf.mxu0  ;;  %v2387_v6 = vadd.f32 %v3444_v1, %v5813_v27 }
 0x37b   : > { %v3446_v22 = vpop.f32.mrf.mxu1  ;;  %2943 = vst [vmem:[%s4412_s29 + $0x100] sm:$0xff] %v2868_v7  ;;  %v2796_v43 = vadd.f32 1.0, %v3989_v40  ;;  %v2658_v52 = vmul.f32 0.70710677, %v5993_v26  ;;  %v2379_v40 = vadd.f32 %v3438_v16, %v5813_v27  ;;  %v2583_v60 = vmul.f32 0.5, %v5993_v26 }
 0x37c   : > { %v2498_v46 = vpop.f32.mrf.mxu0  ;;  %v3447_v19 = vadd.f32 %v3446_v22, %v3445_v56  ;;  %v3441_v56 = vadd.f32 %v5982_v2, %v5978_v49 }
 0x37d   : > { %v3448_v14 = vpop.f32.mrf.mxu1  ;;  %v2871_v50 = vmul.f32 %v2796_v43, %v2571_v25  ;;  %3996 = verf.f32 %v2658_v52  ;;  %v6000_v18 = vadd.f32 %v2498_v46, %v2363_v33 }
 0x37e   : > { %v3991_v17 = vpop.eup %3990  ;;  %v3525_v10 = vpop.f32.mrf.mxu0  ;;  %v2390_v55 = vadd.f32 %v3447_v19, %v5813_v27 }
 0x37f   : > { %v3449_v28 = vpop.f32.mrf.mxu1  ;;  %2946 = vst [vmem:[%s4412_s29 + $0x118] sm:$0xff] %v2871_v50  ;;  %v2799_v44 = vadd.f32 1.0, %v3991_v17  ;;  %v2661_v0 = vmul.f32 0.70710677, %v6000_v18  ;;  %v2586_v38 = vmul.f32 0.5, %v6000_v18  ;;  %v2382_v10 = vadd.f32 %v3441_v56, %v5813_v27 }
 0x380   : > { %v2501_v41 = vpop.f32.mrf.mxu0  ;;  %v3450_v5 = vadd.f32 %v3449_v28, %v3448_v14 }
 0x381   : > { %v3451_v32 = vpop.f32.mrf.mxu1  ;;  %v2874_v51 = vmul.f32 %v2799_v44, %v2574_v37  ;;  %3998 = verf.f32 %v2661_v0  ;;  %v6007_v23 = vadd.f32 %v2501_v41, %v2366_v31 }
 0x382   : > { %v3993_v13 = vpop.eup %3992  ;;  %v3526_v48 = vpop.f32.mrf.mxu0  ;;  %v2395_v25 = vadd.f32 %v3450_v5, %v5813_v27 }
 0x383   : > { %v3452_v36 = vpop.f32.mrf.mxu1  ;;  %2949 = vst [vmem:[%s4412_s29 + $0x130] sm:$0xff] %v2874_v51  ;;  %v2802_v39 = vadd.f32 1.0, %v3993_v13  ;;  %v2664_v3 = vmul.f32 0.70710677, %v6007_v23  ;;  %v2589_v13 = vmul.f32 0.5, %v6007_v23 }
 0x384   : > { %v2506_v15 = vpop.f32.mrf.mxu0 }
 0x385   : > { %v2522_v35 = vpop.f32.mrf.mxu1  ;;  %v2877_v58 = vmul.f32 %v2802_v39, %v2577_v34  ;;  %4000 = verf.f32 %v2664_v3  ;;  %v6015_v54 = vadd.f32 %v2506_v15, %v2371_v53 }
 0x386   : > { %v6017_v11 = vadd.f32 %v2522_v35, %v2387_v6  ;;  %v3995_v61 = vpop.eup %3994  ;;  %v3529_v24 = vpop.f32.mrf.mxu0 }
 0x387   : > { %v3537_v59 = vpop.f32.mrf.mxu1  ;;  %2952 = vst [vmem:[%s4412_s29 + $0x148] sm:$0xff] %v2877_v58  ;;  %v2805_v20 = vadd.f32 1.0, %v3995_v61  ;;  %v2667_v30 = vmul.f32 0.70710677, %v6015_v54  ;;  %v2592_v48 = vmul.f32 0.5, %v6015_v54 }
 0x388   : > { %v2679_v4 = vmul.f32 0.70710677, %v6017_v11  ;;  %v2509_v42 = vpop.f32.mrf.mxu0  ;;  %v2604_v39 = vmul.f32 0.5, %v6017_v11 }
 0x389   : > { %v2525_v8 = vpop.f32.mrf.mxu1  ;;  %v2880_v63 = vmul.f32 %v2805_v20, %v2580_v9  ;;  %4002 = verf.f32 %v2667_v30  ;;  %v2510_v29 = vadd.f32 %v2509_v42, %v2374_v12 }
 0x38a   : > { %v2526_v62 = vadd.f32 %v2525_v8, %v2390_v55  ;;  %v3997_v57 = vpop.eup %3996  ;;  %4004 = verf.f32 %v2679_v4  ;;  %v3530_v47 = vpop.f32.mrf.mxu0 }
 0x38b   : > { %v3538_v7 = vpop.f32.mrf.mxu1  ;;  %2955 = vst [vmem:[%s4412_s29 + $0x160] sm:$0xff] %v2880_v63  ;;  %v2808_v22 = vadd.f32 1.0, %v3997_v57  ;;  %v2670_v45 = vmul.f32 0.70710677, %v2510_v29  ;;  %v2595_v35 = vmul.f32 0.5, %v2510_v29 }
 0x38c   : > { %v2682_v43 = vmul.f32 0.70710677, %v2526_v62  ;;  %v2514_v52 = vpop.f32.mrf.mxu0  ;;  %v2607_v61 = vmul.f32 0.5, %v2526_v62 }
 0x38d   : > { %v2530_v33 = vpop.f32.mrf.mxu1  ;;  %v2883_v14 = vmul.f32 %v2808_v22, %v2583_v60  ;;  %4006 = verf.f32 %v2670_v45  ;;  %v2515_v46 = vadd.f32 %v2514_v52, %v2379_v40 }
 0x38e   : > { %v2531_v49 = vadd.f32 %v2530_v33, %v2395_v25  ;;  %v3999_v2 = vpop.eup %3998  ;;  %4008 = verf.f32 %v2682_v43  ;;  %v3533_v50 = vpop.f32.mrf.mxu0 }
 0x38f   : > { %v3541_v17 = vpop.f32.mrf.mxu1  ;;  %2958 = vst [vmem:[%s4412_s29 + $0x178] sm:$0xff] %v2883_v14  ;;  %v2811_v26 = vadd.f32 1.0, %v3999_v2  ;;  %v2673_v28 = vmul.f32 0.70710677, %v2515_v46  ;;  %v2598_v59 = vmul.f32 0.5, %v2515_v46 }
 0x390   : > { %v2685_v31 = vmul.f32 0.70710677, %v2531_v49  ;;  %v2517_v37 = vpop.f32.mrf.mxu0  ;;  %v2610_v20 = vmul.f32 0.5, %v2531_v49 }
 0x391   : > { %v2533_v44 = vpop.f32.mrf.mxu1  ;;  %v2886_v1 = vmul.f32 %v2811_v26, %v2586_v38  ;;  %4010 = verf.f32 %v2673_v28  ;;  %v2518_v0 = vadd.f32 %v2517_v37, %v2382_v10 }
 0x392   : > { %v4001_v32 = vpop.eup %4000  ;;  %4012 = verf.f32 %v2685_v31  ;;  %v3534_v41 = vpop.f32.mrf.mxu0 }
 0x393   : > { %v3542_v51 = vpop.f32.mrf.mxu1  ;;  %2961 = vst [vmem:[%s4412_s29 + $0x190] sm:$0xff] %v2886_v1  ;;  %v2814_v18 = vadd.f32 1.0, %v4001_v32  ;;  %v2676_v21 = vmul.f32 0.70710677, %v2518_v0  ;;  %v2601_v42 = vmul.f32 0.5, %v2518_v0 }
 0x395   : > { %v2889_v34 = vmul.f32 %v2814_v18, %v2589_v13  ;;  %4014 = verf.f32 %v2676_v21 }
 0x396   : > { %v4003_v27 = vpop.eup %4002 }
 0x397   : > { %v4005_v36 = vpop.eup %4004  ;;  %2964 = vst [vmem:[%s4412_s29 + $0x1a8] sm:$0xff] %v2889_v34  ;;  %v2817_v53 = vadd.f32 1.0, %v4003_v27 }
 0x398   : > { %v2829_v19 = vadd.f32 1.0, %v4005_v36 }
 0x399   : > { %v2892_v3 = vmul.f32 %v2817_v53, %v2592_v48 }
 0x39a   : > { %v4007_v23 = vpop.eup %4006  ;;  %v2904_v6 = vmul.f32 %v2829_v19, %v2604_v39 }
 0x39b   : > { %v4009_v15 = vpop.eup %4008  ;;  %2967 = vst [vmem:[%s4412_s29 + $0x1c0] sm:$0xff] %v2892_v3  ;;  %v2820_v58 = vadd.f32 1.0, %v4007_v23 }
 0x39c   : > { %2979 = vst [vmem:[%s4412_s29 + $0x220] sm:$0xff] %v2904_v6  ;;  %v2832_v16 = vadd.f32 1.0, %v4009_v15 }
 0x39d   : > { %v2895_v54 = vmul.f32 %v2820_v58, %v2595_v35 }
 0x39e   : > { %v4011_v9 = vpop.eup %4010  ;;  %v2907_v11 = vmul.f32 %v2832_v16, %v2607_v61 }
 0x39f   : > { %v4013_v24 = vpop.eup %4012  ;;  %2970 = vst [vmem:[%s4412_s29 + $0x1d8] sm:$0xff] %v2895_v54  ;;  %v2823_v12 = vadd.f32 1.0, %v4011_v9 }
 0x3a0   : > { %2982 = vst [vmem:[%s4412_s29 + $0x238] sm:$0xff] %v2907_v11  ;;  %v2835_v5 = vadd.f32 1.0, %v4013_v24 }
 0x3a1   : > { %v2898_v30 = vmul.f32 %v2823_v12, %v2598_v59 }
 0x3a2   : > { %v4015_v55 = vpop.eup %4014  ;;  %v2910_v4 = vmul.f32 %v2835_v5, %v2610_v20 }
 0x3a3   : > { %2973 = vst [vmem:[%s4412_s29 + $0x1f0] sm:$0xff] %v2898_v30  ;;  %v2826_v8 = vadd.f32 1.0, %v4015_v55 }
 0x3a4   : > { %2985 = vst [vmem:[%s4412_s29 + $0x250] sm:$0xf] %v2910_v4 }
 0x3a5   : > { %v2901_v63 = vmul.f32 %v2826_v8, %v2601_v42 }
 0x3a7   : > { %2976 = vst [vmem:[%s4412_s29 + $0x208] sm:$0xff] %v2901_v63 }
 0x3a8   : > { %4111 = shalt.err (!%p4108_p8)
}
 0x3a9   : > { %s4112_s23 = scalar_lea.hbm %s6055_s21, 9600  ;;  %s4116_s20 = scalar_lea.hbm %s6112_s3, 38400 }
 0x3aa   : > { %p4113_p4 = scmp.ne.s32.totalorder %s6055_s21, %s4112_s23  ;;  %p4117_p11 = scmp.lt.s32.totalorder %s6055_s21, %s6112_s3 }
 0x3ab   : > { %p4118_p12 = scmp.lt.s32.totalorder %s4116_s20, %s4112_s23 }
 0x3ac   : > { %p4114_p6 = pnand %p4113_p4, %p6306_p0 }
 0x3ad   : > { %p4119_p7 = por %p4118_p12, %p4117_p11 }
 0x3ae   : > { %p4115_p10 = pneg %p4114_p6 }
 0x3b0   : > { %p4120_p9 = pnand %p4119_p7, %p4115_p10 }
 0x3b2   : > { %4123 = shalt.err (!%p4120_p9)
}
 0x3b3   : > { %s4212_s6 = smov 384   ;;  %s4213_s9 = smov 1536  }
 0x3b4   : > { %s4214_s16 = smov 24  }
 0x3b5   : > { %3572 = dma.vmem_to_hbm [thread:$0]  (%p6306_p0), %s6049_s4, 9600, %s6055_s21, %s2987_s5, %s4212_s6, %s4213_s9, %s4214_s16  }
 0x3b6 PF: > { %p3592_p1 = scmp.ge.s32.totalorder %s4198_s19, 2  ;;  %s3017_s15 = sand.u32 1, %s4170_s12  }
 0x3b7   : > { %p6307_p13 = scmp.ne.s32.totalorder %s6184_s10, 0  ;;  %s3018_s25 = scalar_lea.sflag [#allocation5], %s3017_s15 }
 0x3b9   : > { %p3586_p2 = pnand %p3592_p1, %p6307_p13 }
 0x3bb   : > { %p3587_p3 = pneg %p3586_p2 }
 0x3bd   : > { %4165 = dma.done.wait (%p3587_p3), %s3018_s25, 9600  }
 0x3be   : > { %4167 = vsyncadd (%p3587_p3), %s3018_s25, 4294957696  ;;  %s20_s19 = sadd.s32 1, %s4198_s19   ;;  %s6308_s8 = sld [smem:[#allocation13_spill]] }
 0x3bf   : > { %p17_p5 = scmp.ge.s32.totalorder %s20_s19, 6   ;;  %s6309_s26 = sld [smem:[#allocation14_spill]] }
 0x3c0   : > { %s6310_s12 = smov %s4174_s13  ;;  %s6311_s13 = smov %s4178_s14 }
 0x3c1   : > { %s6312_s14 = smov %s4310_s11  ;;  %s6313_s15 = smov %s4190_s17 }
 0x3c2   : > { %s6314_s16 = smov %s4194_s18  ;;  %19 = sbr.rel (!%p17_p5) target bundleno = 10 (0xa), region = 97 }
 0x3c4   : > { %s6315_s17 = smov %s6308_s8 }
 0x3c5   : > { %s6316_s18 = smov %s6309_s26 }
 0x3c7   :  { %3023 = vsyncpa [#allocation4], 1 }
 0x3c8   :  { %3025 = vsyncpa [#allocation4 + $0x1], 1 }
 0x3c9   :  { %3026 = vsyncpa [#allocation7], 1 }
 0x3ca   :  { %3028 = vsyncpa [#allocation7 + $0x1], 1 }
 0x3cb   :  { %3029 = vsyncpa [#allocation5], 1 }
 0x3cc   :  { %3031 = vsyncpa [#allocation5 + $0x1], 1 }

</bundles_post_ra>
